<compile_context>
chip_gen: v6e
topology: v6e:2x2x1
jax: 0.10.0
libtpu: 0.0.40
codegen_flags: <defaults>
</compile_context>

<pallas_src>
import functools
import numpy as np
import jax
import jax.numpy as jnp
from jax.experimental import pallas as pl
from jax.experimental.pallas import tpu as pltpu


# ----------------------------- Pallas kernels -----------------------------

def linear_kernel(x_ref, w_ref, b_ref, o_ref):
    o_ref[...] = jnp.dot(x_ref[...], w_ref[...],
                         preferred_element_type=jnp.float32) + b_ref[...]


def deconv_bn_kernel(x_ref, inmask_ref, outmask_ref, scale_ref, shift_ref,
                     w00_ref, w01_ref, w10_ref, w11_ref, b_ref,
                     *out_refs, wp, r_out, apply_relu, with_stats):
    """Fused [BN affine + ReLU] -> ConvTranspose2d(3,3,s=2,p=1,op=1) -> BN-stats.

    One batch item per grid step.  x_ref is a flat zero-padded image:
      row f = m*(W+1) + p  is pixel (m, p) of the (H+1, W+1) padded input,
      followed by (W+1)+1 extra zero halo rows so the shifted slices stay in bounds.
    The transposed conv is decomposed by output parity into 4 lane-concatenated
    matmuls against pre-packed (Cin, 4*Cout_p) weights, so the kernel issues exactly
    4 wide MXU matmuls and writes one lane-dense block [yee | yeo | yoe | yoo].
    """
    y_ref = out_refs[0]

    # ---- prologue: previous layer's BatchNorm affine (+ ReLU); zero pad/halo rows ----
    a = x_ref[...].astype(jnp.float32) * scale_ref[...] + shift_ref[...]
    if apply_relu:
        a = jnp.maximum(a, 0.0)
    a = a * inmask_ref[...]          # padded positions must contribute exactly zero

    # ---- the 4 shifted views are just row slices of the flat padded image ----
    a00 = a[0:r_out].astype(jnp.bfloat16)                    # x[m  , p  ]
    a01 = a[1:r_out + 1].astype(jnp.bfloat16)                # x[m  , p+1]
    a10 = a[wp:wp + r_out].astype(jnp.bfloat16)              # x[m+1, p  ]
    a11 = a[wp + 1:wp + 1 + r_out].astype(jnp.bfloat16)      # x[m+1, p+1]

    # ---- 4 wide MXU matmuls, f32 accumulation ----
    acc = jnp.dot(a00, w00_ref[...], preferred_element_type=jnp.float32)
    acc += jnp.dot(a01, w01_ref[...], preferred_element_type=jnp.float32)
    acc += jnp.dot(a10, w10_ref[...], preferred_element_type=jnp.float32)
    acc += jnp.dot(a11, w11_ref[...], preferred_element_type=jnp.float32)
    y = acc + b_ref[...]

    y_ref[...] = y.astype(jnp.bfloat16)

    # ---- epilogue: per-channel statistics of the raw deconv output for the next BN ----
    if with_stats:
        sum_ref, sumsq_ref = out_refs[1], out_refs[2]
        ym = y * outmask_ref[...]    # drop the junk rows (p == W or m == H)
        sum_ref[...] = jnp.sum(ym, axis=0, keepdims=True)
        sumsq_ref[...] = jnp.sum(ym * y, axis=0, keepdims=True)


# ----------------------------- wrappers (glue) -----------------------------

_VMEM = pl.BlockSpec(memory_space=pltpu.MemorySpace.VMEM)


def _round_up(x, m):
    return (x + m - 1) // m * m


def pallas_linear(x, w, b):
    B = x.shape[0]
    Dout = w.shape[1]
    return pl.pallas_call(
        linear_kernel,
        out_shape=jax.ShapeDtypeStruct((B, Dout), jnp.float32),
        in_specs=[_VMEM, _VMEM, _VMEM],
        out_specs=_VMEM,
    )(x, w, b)


def pack_deconv_weights(w, b, cout_p):
    """w: (Cin, Cout, 3, 3) PyTorch ConvTranspose2d weight; b: (1, Cout).

    Returns 4 (Cin, 4*cout_p) bf16 matrices (one per shifted input; output column
    groups are [yee|yeo|yoe|yoo], zero columns where a tap does not contribute) and
    the (1, 4*cout_p) f32 bias.
    """
    cin, cout = w.shape[0], w.shape[1]
    taps = jnp.transpose(w, (2, 3, 0, 1))             # taps[kh, kw] : (Cin, Cout)
    zero = jnp.zeros((cin, cout), w.dtype)
    pad = lambda t: jnp.pad(t, ((0, 0), (0, cout_p - cout)))
    cat = lambda ts: jnp.concatenate([pad(t) for t in ts], axis=1).astype(jnp.bfloat16)
    #                     yee          yeo          yoe          yoo
    w00 = cat([taps[1, 1], taps[1, 2], taps[2, 1], taps[2, 2]])   # x[m  , p  ]
    w01 = cat([zero,       taps[1, 0], zero,       taps[2, 0]])   # x[m  , p+1]
    w10 = cat([zero,       zero,       taps[0, 1], taps[0, 2]])   # x[m+1, p  ]
    w11 = cat([zero,       zero,       zero,       taps[0, 0]])   # x[m+1, p+1]
    b4 = jnp.concatenate([jnp.pad(b, ((0, 0), (0, cout_p - cout)))] * 4, axis=1)
    return (w00, w01, w10, w11), b4.astype(jnp.float32)


def deconv_bn_block(x_img, packed_w, b4, scale, shift, cout_p,
                    *, apply_relu, with_stats):
    """x_img: (N, H, W, Cin) raw (pre-affine) NHWC activations.

    Returns the parity output (N, (H+1)*(W+1), 4*cout_p) bf16 and, if with_stats,
    per-batch (sum, sumsq) of shape (N, 1, 4*cout_p).
    """
    N, H, W, cin = x_img.shape
    Hp, Wp = H + 1, W + 1
    r_out = Hp * Wp
    r_in = r_out + Wp + 1
    C4 = 4 * cout_p

    # Single flat zero-padded copy of the input (fuses with the caller's interleave
    # under jit) — no per-tap input replication in HBM.
    xp = jnp.pad(x_img, ((0, 0), (0, 1), (0, 1), (0, 0))).reshape(N, r_out, cin)
    xflat = jnp.pad(xp, ((0, 0), (0, r_in - r_out), (0, 0))).astype(jnp.bfloat16)

    # Static row-validity masks (1.0 on real image pixels, 0.0 on pad / halo rows).
    valid = np.zeros((Hp, Wp), np.float32)
    valid[:H, :W] = 1.0
    in_mask_np = np.zeros((r_in, 1), np.float32)
    in_mask_np[:r_out, 0] = valid.reshape(-1)
    in_mask = jnp.asarray(in_mask_np)
    out_mask = jnp.asarray(in_mask_np[:r_out])

    scale2 = scale.reshape(1, cin).astype(jnp.float32)
    shift2 = shift.reshape(1, cin).astype(jnp.float32)
    w00, w01, w10, w11 = packed_w

    def const(shape):
        return pl.BlockSpec(shape, lambda b: (0,) * len(shape))

    xspec = pl.BlockSpec((None, r_in, cin), lambda b: (b, 0, 0))
    yspec = pl.BlockSpec((None, r_out, C4), lambda b: (b, 0, 0))
    sspec = pl.BlockSpec((None, 1, C4), lambda b: (b, 0, 0))

    in_specs = [
        xspec,
        const((r_in, 1)), const((r_out, 1)),
        const((1, cin)), const((1, cin)),
        const((cin, C4)), const((cin, C4)), const((cin, C4)), const((cin, C4)),
        const((1, C4)),
    ]

    y_shape = jax.ShapeDtypeStruct((N, r_out, C4), jnp.bfloat16)
    s_shape = jax.ShapeDtypeStruct((N, 1, C4), jnp.float32)
    if with_stats:
        out_specs = (yspec, sspec, sspec)
        out_shape = (y_shape, s_shape, s_shape)
    else:
        out_specs = yspec
        out_shape = y_shape

    kernel = functools.partial(deconv_bn_kernel, wp=Wp, r_out=r_out,
                               apply_relu=apply_relu, with_stats=with_stats)
    outs = pl.pallas_call(
        kernel,
        grid=(N,),
        in_specs=in_specs,
        out_specs=out_specs,
        out_shape=out_shape,
        compiler_params=pltpu.CompilerParams(
            dimension_semantics=("parallel",),
            vmem_limit_bytes=64 * 1024 * 1024),
    )(xflat, in_mask, out_mask, scale2, shift2, w00, w01, w10, w11, b4)

    if with_stats:
        y_par, s, ss = outs
        return y_par, (s, ss)
    return outs, None


def parity_to_image(y_par, N, H, W, cout, cout_p):
    """(N, (H+1)*(W+1), 4*cout_p) parity planes -> (N, 2H, 2W, cout) NHWC image."""
    Hp, Wp = H + 1, W + 1
    y = y_par.reshape(N, Hp, Wp, 2, 2, cout_p)[:, :H, :W, :, :, :cout]
    y = y.transpose(0, 1, 3, 2, 4, 5).reshape(N, 2 * H, 2 * W, cout)
    return y


# ----------------------------- decoder model -----------------------------

def init_decoder_params(key, cond_dim, latent_dim, n_chan):
    keys = list(jax.random.split(key, 2 + 4 * (len(n_chan) - 1)))
    nxt = iter(keys).__next__
    din, dout = latent_dim + cond_dim, n_chan[0] * 4
    params = {
        "fc1_w": jax.random.normal(nxt(), (din, dout), jnp.float32) / np.sqrt(din),
        "fc1_b": 0.01 * jax.random.normal(nxt(), (1, dout), jnp.float32),
        "convs": [],
    }
    for i in range(len(n_chan) - 1):
        cin, cout = n_chan[i], n_chan[i + 1]
        layer = {
            "w": jax.random.normal(nxt(), (cin, cout, 3, 3), jnp.float32)
                 / np.sqrt(cin * 9),                       # PyTorch deconv weight shape
            "b": 0.01 * jax.random.normal(nxt(), (1, cout), jnp.float32),
        }
        if i < len(n_chan) - 2:                            # conv1 blocks have BatchNorm
            layer["gamma"] = 1.0 + 0.1 * jax.random.normal(nxt(), (1, cout), jnp.float32)
            layer["beta"] = 0.1 * jax.random.normal(nxt(), (1, cout), jnp.float32)
        params["convs"].append(layer)
    return params


def decoder_forward(u, cond, params, n_chan, eps=1e-5):
    # x = cat([u, cond], 1); fc1; view(-1, C0, 2, 2); [deconv+BN+ReLU]*; final deconv.
    x = jnp.concatenate([u, cond], axis=1)
    x = pallas_linear(x, params["fc1_w"], params["fc1_b"])
    B = x.shape[0]
    x_img = x.reshape(B, n_chan[0], 2, 2).transpose(0, 2, 3, 1)  # torch .view, NCHW->NHWC

    scale = jnp.ones((n_chan[0],), jnp.float32)   # first deconv has no preceding BN/ReLU
    shift = jnp.zeros((n_chan[0],), jnp.float32)
    apply_relu = False

    n_layers = len(n_chan) - 1
    for i, layer in enumerate(params["convs"]):
        cout = n_chan[i + 1]
        cout_p = _round_up(cout, 32)               # lane-dense output: 4*cout_p % 128 == 0
        last = (i == n_layers - 1)
        packed_w, b4 = pack_deconv_weights(layer["w"], layer["b"], cout_p)

        H, W = x_img.shape[1], x_img.shape[2]
        y_par, stats = deconv_bn_block(x_img, packed_w, b4, scale, shift, cout_p,
                                       apply_relu=apply_relu, with_stats=not last)
        x_img = parity_to_image(y_par, B, H, W, cout, cout_p)   # raw (pre-BN) output

        if not last:
            s, ss = stats
            s = s.reshape(B, 4, cout_p)[:, :, :cout].sum(axis=(0, 1))
            ss = ss.reshape(B, 4, cout_p)[:, :, :cout].sum(axis=(0, 1))
            cnt = B * 4 * H * W                    # = B * (2H) * (2W)
            mean = s / cnt
            var = ss / cnt - mean * mean           # biased batch variance (torch training mode)
            scale = layer["gamma"][0] / jnp.sqrt(var + eps)
            shift = layer["beta"][0] - mean * scale
            apply_relu = True                      # applied in the next deconv's prologue

    return jnp.transpose(x_img, (0, 3, 1, 2)).astype(jnp.float32)  # back to NCHW


# ----------------------------- pure-JAX reference -----------------------------

def _ref_conv_transpose2d(x, w, b):
    # PyTorch ConvTranspose2d(k=3, s=2, p=1, op=1) semantics, NHWC, w: (Cin,Cout,3,3)
    N, H, W, _ = x.shape
    Cout = w.shape[1]
    y = jnp.zeros((N, 2 * H + 2, 2 * W + 2, Cout), jnp.float32)
    for kh in range(3):
        for kw in range(3):
            c = jnp.einsum("nhwc,cd->nhwd", x, w[:, :, kh, kw],
                           precision=jax.lax.Precision.HIGHEST)
            y = y.at[:, kh:kh + 2 * H:2, kw:kw + 2 * W:2, :].add(c)
    return y[:, 1:1 + 2 * H, 1:1 + 2 * W, :] + b[0]


def _ref_forward(u, cond, params, n_chan, eps=1e-5):
    x = jnp.concatenate([u, cond], axis=1)
    x = jnp.dot(x, params["fc1_w"], precision=jax.lax.Precision.HIGHEST) + params["fc1_b"][0]
    B = x.shape[0]
    x = x.reshape(B, n_chan[0], 2, 2).transpose(0, 2, 3, 1)
    for i, layer in enumerate(params["convs"]):
        x = _ref_conv_transpose2d(x, layer["w"], layer["b"])
        if i < len(n_chan) - 2:
            mean = x.mean(axis=(0, 1, 2))
            var = x.var(axis=(0, 1, 2))
            x = (x - mean) / jnp.sqrt(var + eps) * layer["gamma"][0] + layer["beta"][0]
            x = jnp.maximum(x, 0.0)
    return x.transpose(0, 3, 1, 2)


# ----------------------------- main -----------------------------

if __name__ == "__main__":
    # Small config with the same structure as the default
    # n_chan=[1024,512,256,128,128,128,3]: 3 deconv+BN+ReLU blocks + final deconv.
    cond_dim, latent_dim = 8, 32
    n_chan = [64, 32, 16, 8, 3]
    batch = 2

    key = jax.random.PRNGKey(0)
    kp, ku, kc = jax.random.split(key, 3)
    params = init_decoder_params(kp, cond_dim, latent_dim, n_chan)
    u = jax.random.normal(ku, (batch, latent_dim), jnp.float32)
    cond = jax.random.normal(kc, (batch, cond_dim), jnp.float32)

    fwd = jax.jit(lambda u_, c_, p_: decoder_forward(u_, c_, p_, n_chan))
    out = jax.block_until_ready(fwd(u, cond, params))

    expected_hw = 2 * 2 ** (len(n_chan) - 1)
    assert out.shape == (batch, n_chan[-1], expected_hw, expected_hw), out.shape

    ref = _ref_forward(u, cond, params, n_chan)
    np.testing.assert_allclose(np.asarray(out), np.asarray(ref), rtol=5e-2, atol=5e-2)

    print("KERNEL_OK")
</pallas_src>

<mosaic_0001>
module attributes {stable_mosaic.version = 11 : i64} {
  func.func @linear_kernel(%arg0: memref<2x40xf32, #tpu.memory_space<vmem>>, %arg1: memref<40x256xf32, #tpu.memory_space<vmem>>, %arg2: memref<1x256xf32, #tpu.memory_space<vmem>>, %arg3: memref<2x256xf32, #tpu.memory_space<vmem>>) attributes {dimension_semantics = [], scalar_prefetch = 0 : i64, scratch_operands = 0 : i64, tpu.core_type = #tpu.core_type<tc>} {
    %c0 = arith.constant 0 : index
    %c0_0 = arith.constant 0 : index
    %0 = vector.load %arg0[%c0, %c0_0] : memref<2x40xf32, #tpu.memory_space<vmem>>, vector<2x40xf32>
    %c0_1 = arith.constant 0 : index
    %c0_2 = arith.constant 0 : index
    %1 = vector.load %arg1[%c0_1, %c0_2] : memref<40x256xf32, #tpu.memory_space<vmem>>, vector<40x256xf32>
    %cst = arith.constant dense<0.000000e+00> : vector<2x256xf32>
    %2 = tpu.matmul %0, %1, %cst {dimension_numbers = #tpu.dot_dimension_numbers<[1], [0], [0], [1], [0, 0, 1, 1], [], []>} : vector<2x40xf32>, vector<40x256xf32>, vector<2x256xf32> -> vector<2x256xf32>
    %c0_3 = arith.constant 0 : index
    %c0_4 = arith.constant 0 : index
    %3 = vector.load %arg2[%c0_3, %c0_4] : memref<1x256xf32, #tpu.memory_space<vmem>>, vector<1x256xf32>
    %4 = vector.broadcast %3 : vector<1x256xf32> to vector<2x256xf32>
    %5 = arith.addf %2, %4 : vector<2x256xf32>
    %c0_5 = arith.constant 0 : index
    %c0_6 = arith.constant 0 : index
    %6 = vector.load %arg3[%c0_5, %c0_6] : memref<2x256xf32, #tpu.memory_space<vmem>>, vector<2x256xf32>
    tpu.vector_store %arg3[%c0_5, %c0_6], %5 {strides = array<i32>} : memref<2x256xf32, #tpu.memory_space<vmem>>, vector<2x256xf32>,
    return
  }
}

module attributes {stable_mosaic.version = 11 : i64} {
  func.func @deconv_bn_kernel(%arg0: i32, %arg1: memref<1x13x64xbf16, #tpu.memory_space<vmem>>, %arg2: memref<13x1xf32, #tpu.memory_space<vmem>>, %arg3: memref<9x1xf32, #tpu.memory_space<vmem>>, %arg4: memref<1x64xf32, #tpu.memory_space<vmem>>, %arg5: memref<1x64xf32, #tpu.memory_space<vmem>>, %arg6: memref<64x128xbf16, #tpu.memory_space<vmem>>, %arg7: memref<64x128xbf16, #tpu.memory_space<vmem>>, %arg8: memref<64x128xbf16, #tpu.memory_space<vmem>>, %arg9: memref<64x128xbf16, #tpu.memory_space<vmem>>, %arg10: memref<1x128xf32, #tpu.memory_space<vmem>>, %arg11: memref<1x9x128xbf16, #tpu.memory_space<vmem>>, %arg12: memref<1x1x128xf32, #tpu.memory_space<vmem>>, %arg13: memref<1x1x128xf32, #tpu.memory_space<vmem>>) attributes {dimension_semantics = [#tpu.dimension_semantics<parallel>], iteration_bounds = array<i64: 2>, scalar_prefetch = 0 : i64, scratch_operands = 0 : i64, tpu.core_type = #tpu.core_type<tc>, window_params = [{transform_indices = @transform_0, window_bounds = array<i64: 1, 13, 64>}, {pipeline_mode = #tpu.pipeline_mode<synchronous>, transform_indices = @transform_1, window_bounds = array<i64: 13, 1>}, {pipeline_mode = #tpu.pipeline_mode<synchronous>, transform_indices = @transform_2, window_bounds = array<i64: 9, 1>}, {pipeline_mode = #tpu.pipeline_mode<synchronous>, transform_indices = @transform_3, window_bounds = array<i64: 1, 64>}, {pipeline_mode = #tpu.pipeline_mode<synchronous>, transform_indices = @transform_4, window_bounds = array<i64: 1, 64>}, {pipeline_mode = #tpu.pipeline_mode<synchronous>, transform_indices = @transform_5, window_bounds = array<i64: 64, 128>}, {pipeline_mode = #tpu.pipeline_mode<synchronous>, transform_indices = @transform_6, window_bounds = array<i64: 64, 128>}, {pipeline_mode = #tpu.pipeline_mode<synchronous>, transform_indices = @transform_7, window_bounds = array<i64: 64, 128>}, {pipeline_mode = #tpu.pipeline_mode<synchronous>, transform_indices = @transform_8, window_bounds = array<i64: 64, 128>}, {pipeline_mode = #tpu.pipeline_mode<synchronous>, transform_indices = @transform_9, window_bounds = array<i64: 1, 128>}, {transform_indices = @transform_10, window_bounds = array<i64: 1, 9, 128>}, {transform_indices = @transform_11, window_bounds = array<i64: 1, 1, 128>}, {transform_indices = @transform_12, window_bounds = array<i64: 1, 1, 128>}]} {
    %c0 = arith.constant 0 : index
    %c0_0 = arith.constant 0 : index
    %c0_1 = arith.constant 0 : index
    %0 = vector.load %arg1[%c0, %c0_0, %c0_1] : memref<1x13x64xbf16, #tpu.memory_space<vmem>>, vector<1x13x64xbf16>
    %1 = vector.shape_cast %0 : vector<1x13x64xbf16> to vector<13x64xbf16>
    %2 = arith.extf %1 : vector<13x64xbf16> to vector<13x64xf32>
    %c0_2 = arith.constant 0 : index
    %c0_3 = arith.constant 0 : index
    %3 = vector.load %arg4[%c0_2, %c0_3] : memref<1x64xf32, #tpu.memory_space<vmem>>, vector<1x64xf32>
    %4 = vector.broadcast %3 : vector<1x64xf32> to vector<13x64xf32>
    %5 = arith.mulf %2, %4 : vector<13x64xf32>
    %c0_4 = arith.constant 0 : index
    %c0_5 = arith.constant 0 : index
    %6 = vector.load %arg5[%c0_4, %c0_5] : memref<1x64xf32, #tpu.memory_space<vmem>>, vector<1x64xf32>
    %7 = vector.broadcast %6 : vector<1x64xf32> to vector<13x64xf32>
    %8 = arith.addf %5, %7 : vector<13x64xf32>
    %c0_6 = arith.constant 0 : index
    %c0_7 = arith.constant 0 : index
    %9 = vector.load %arg2[%c0_6, %c0_7] : memref<13x1xf32, #tpu.memory_space<vmem>>, vector<13x1xf32>
    %10 = vector.broadcast %9 : vector<13x1xf32> to vector<13x64xf32>
    %11 = arith.mulf %8, %10 : vector<13x64xf32>
    %12 = vector.extract_strided_slice %11 {offsets = [0, 0], sizes = [9, 64], strides = [1, 1]} : vector<13x64xf32> to vector<9x64xf32>
    %13 = arith.truncf %12 : vector<9x64xf32> to vector<9x64xbf16>
    %14 = vector.extract_strided_slice %11 {offsets = [1, 0], sizes = [9, 64], strides = [1, 1]} : vector<13x64xf32> to vector<9x64xf32>
    %15 = arith.truncf %14 : vector<9x64xf32> to vector<9x64xbf16>
    %16 = vector.extract_strided_slice %11 {offsets = [3, 0], sizes = [9, 64], strides = [1, 1]} : vector<13x64xf32> to vector<9x64xf32>
    %17 = arith.truncf %16 : vector<9x64xf32> to vector<9x64xbf16>
    %18 = vector.extract_strided_slice %11 {offsets = [4, 0], sizes = [9, 64], strides = [1, 1]} : vector<13x64xf32> to vector<9x64xf32>
    %19 = arith.truncf %18 : vector<9x64xf32> to vector<9x64xbf16>
    %c0_8 = arith.constant 0 : index
    %c0_9 = arith.constant 0 : index
    %20 = vector.load %arg6[%c0_8, %c0_9] : memref<64x128xbf16, #tpu.memory_space<vmem>>, vector<64x128xbf16>
    %cst = arith.constant dense<0.000000e+00> : vector<9x128xf32>
    %21 = tpu.matmul %13, %20, %cst {dimension_numbers = #tpu.dot_dimension_numbers<[1], [0], [0], [1], [0, 0, 1, 1], [], []>} : vector<9x64xbf16>, vector<64x128xbf16>, vector<9x128xf32> -> vector<9x128xf32>
    %c0_10 = arith.constant 0 : index
    %c0_11 = arith.constant 0 : index
    %22 = vector.load %arg7[%c0_10, %c0_11] : memref<64x128xbf16, #tpu.memory_space<vmem>>, vector<64x128xbf16>
    %cst_12 = arith.constant dense<0.000000e+00> : vector<9x128xf32>
    %23 = tpu.matmul %15, %22, %cst_12 {dimension_numbers = #tpu.dot_dimension_numbers<[1], [0], [0], [1], [0, 0, 1, 1], [], []>} : vector<9x64xbf16>, vector<64x128xbf16>, vector<9x128xf32> -> vector<9x128xf32>
    %24 = arith.addf %21, %23 : vector<9x128xf32>
    %c0_13 = arith.constant 0 : index
    %c0_14 = arith.constant 0 : index
    %25 = vector.load %arg8[%c0_13, %c0_14] : memref<64x128xbf16, #tpu.memory_space<vmem>>, vector<64x128xbf16>
    %cst_15 = arith.constant dense<0.000000e+00> : vector<9x128xf32>
    %26 = tpu.matmul %17, %25, %cst_15 {dimension_numbers = #tpu.dot_dimension_numbers<[1], [0], [0], [1], [0, 0, 1, 1], [], []>} : vector<9x64xbf16>, vector<64x128xbf16>, vector<9x128xf32> -> vector<9x128xf32>
    %27 = arith.addf %24, %26 : vector<9x128xf32>
    %c0_16 = arith.constant 0 : index
    %c0_17 = arith.constant 0 : index
    %28 = vector.load %arg9[%c0_16, %c0_17] : memref<64x128xbf16, #tpu.memory_space<vmem>>, vector<64x128xbf16>
    %cst_18 = arith.constant dense<0.000000e+00> : vector<9x128xf32>
    %29 = tpu.matmul %19, %28, %cst_18 {dimension_numbers = #tpu.dot_dimension_numbers<[1], [0], [0], [1], [0, 0, 1, 1], [], []>} : vector<9x64xbf16>, vector<64x128xbf16>, vector<9x128xf32> -> vector<9x128xf32>
    %30 = arith.addf %27, %29 : vector<9x128xf32>
    %c0_19 = arith.constant 0 : index
    %c0_20 = arith.constant 0 : index
    %31 = vector.load %arg10[%c0_19, %c0_20] : memref<1x128xf32, #tpu.memory_space<vmem>>, vector<1x128xf32>
    %32 = vector.broadcast %31 : vector<1x128xf32> to vector<9x128xf32>
    %33 = arith.addf %30, %32 : vector<9x128xf32>
    %34 = arith.truncf %33 : vector<9x128xf32> to vector<9x128xbf16>
    %c0_21 = arith.constant 0 : index
    %c0_22 = arith.constant 0 : index
    %c0_23 = arith.constant 0 : index
    %35 = vector.load %arg11[%c0_21, %c0_22, %c0_23] : memref<1x9x128xbf16, #tpu.memory_space<vmem>>, vector<1x9x128xbf16>
    %36 = vector.shape_cast %35 : vector<1x9x128xbf16> to vector<9x128xbf16>
    %37 = vector.shape_cast %34 : vector<9x128xbf16> to vector<1x9x128xbf16>
    tpu.vector_store %arg11[%c0_21, %c0_22, %c0_23], %37 {strides = array<i32>} : memref<1x9x128xbf16, #tpu.memory_space<vmem>>, vector<1x9x128xbf16>,
    %c0_24 = arith.constant 0 : index
    %c0_25 = arith.constant 0 : index
    %38 = vector.load %arg3[%c0_24, %c0_25] : memref<9x1xf32, #tpu.memory_space<vmem>>, vector<9x1xf32>
    %39 = vector.broadcast %38 : vector<9x1xf32> to vector<9x128xf32>
    %40 = arith.mulf %33, %39 : vector<9x128xf32>
    %cst_26 = arith.constant dense<0.000000e+00> : vector<128xf32>
    %41 = vector.multi_reduction <add>, %40, %cst_26 [0] : vector<9x128xf32> to vector<128xf32>
    %42 = vector.shape_cast %41 : vector<128xf32> to vector<1x128xf32>
    %c0_27 = arith.constant 0 : index
    %c0_28 = arith.constant 0 : index
    %c0_29 = arith.constant 0 : index
    %43 = vector.load %arg12[%c0_27, %c0_28, %c0_29] : memref<1x1x128xf32, #tpu.memory_space<vmem>>, vector<1x1x128xf32>
    %44 = vector.shape_cast %43 : vector<1x1x128xf32> to vector<1x128xf32>
    %45 = vector.shape_cast %42 : vector<1x128xf32> to vector<1x1x128xf32>
    tpu.vector_store %arg12[%c0_27, %c0_28, %c0_29], %45 {strides = array<i32>} : memref<1x1x128xf32, #tpu.memory_space<vmem>>, vector<1x1x128xf32>,
    %46 = arith.mulf %40, %33 : vector<9x128xf32>
    %cst_30 = arith.constant dense<0.000000e+00> : vector<128xf32>
    %47 = vector.multi_reduction <add>, %46, %cst_30 [0] : vector<9x128xf32> to vector<128xf32>
    %48 = vector.shape_cast %47 : vector<128xf32> to vector<1x128xf32>
    %c0_31 = arith.constant 0 : index
    %c0_32 = arith.constant 0 : index
    %c0_33 = arith.constant 0 : index
    %49 = vector.load %arg13[%c0_31, %c0_32, %c0_33] : memref<1x1x128xf32, #tpu.memory_space<vmem>>, vector<1x1x128xf32>
    %50 = vector.shape_cast %49 : vector<1x1x128xf32> to vector<1x128xf32>
    %51 = vector.shape_cast %48 : vector<1x128xf32> to vector<1x1x128xf32>
    tpu.vector_store %arg13[%c0_31, %c0_32, %c0_33], %51 {strides = array<i32>} : memref<1x1x128xf32, #tpu.memory_space<vmem>>, vector<1x1x128xf32>,
    return
  }
  func.func @transform_0(%arg0: i32) -> (i32, i32, i32) {
    %c0_i32 = arith.constant 0 : i32
    %c0_i32_0 = arith.constant 0 : i32
    %c0_i32_1 = arith.constant 0 : i32
    return %arg0, %c0_i32, %c0_i32_0 : i32, i32, i32
  }
  func.func @transform_1(%arg0: i32) -> (i32, i32) {
    %c0_i32 = arith.constant 0 : i32
    %c0_i32_0 = arith.constant 0 : i32
    %c0_i32_1 = arith.constant 0 : i32
    return %c0_i32, %c0_i32_0 : i32, i32
  }
  func.func @transform_2(%arg0: i32) -> (i32, i32) {
    %c0_i32 = arith.constant 0 : i32
    %c0_i32_0 = arith.constant 0 : i32
    %c0_i32_1 = arith.constant 0 : i32
    return %c0_i32, %c0_i32_0 : i32, i32
  }
  func.func @transform_3(%arg0: i32) -> (i32, i32) {
    %c0_i32 = arith.constant 0 : i32
    %c0_i32_0 = arith.constant 0 : i32
    %c0_i32_1 = arith.constant 0 : i32
    return %c0_i32, %c0_i32_0 : i32, i32
  }
  func.func @transform_4(%arg0: i32) -> (i32, i32) {
    %c0_i32 = arith.constant 0 : i32
    %c0_i32_0 = arith.constant 0 : i32
    %c0_i32_1 = arith.constant 0 : i32
    return %c0_i32, %c0_i32_0 : i32, i32
  }
  func.func @transform_5(%arg0: i32) -> (i32, i32) {
    %c0_i32 = arith.constant 0 : i32
    %c0_i32_0 = arith.constant 0 : i32
    %c0_i32_1 = arith.constant 0 : i32
    return %c0_i32, %c0_i32_0 : i32, i32
  }
  func.func @transform_6(%arg0: i32) -> (i32, i32) {
    %c0_i32 = arith.constant 0 : i32
    %c0_i32_0 = arith.constant 0 : i32
    %c0_i32_1 = arith.constant 0 : i32
    return %c0_i32, %c0_i32_0 : i32, i32
  }
  func.func @transform_7(%arg0: i32) -> (i32, i32) {
    %c0_i32 = arith.constant 0 : i32
    %c0_i32_0 = arith.constant 0 : i32
    %c0_i32_1 = arith.constant 0 : i32
    return %c0_i32, %c0_i32_0 : i32, i32
  }
  func.func @transform_8(%arg0: i32) -> (i32, i32) {
    %c0_i32 = arith.constant 0 : i32
    %c0_i32_0 = arith.constant 0 : i32
    %c0_i32_1 = arith.constant 0 : i32
    return %c0_i32, %c0_i32_0 : i32, i32
  }
  func.func @transform_9(%arg0: i32) -> (i32, i32) {
    %c0_i32 = arith.constant 0 : i32
    %c0_i32_0 = arith.constant 0 : i32
    %c0_i32_1 = arith.constant 0 : i32
    return %c0_i32, %c0_i32_0 : i32, i32
  }
  func.func @transform_10(%arg0: i32) -> (i32, i32, i32) {
    %c0_i32 = arith.constant 0 : i32
    %c0_i32_0 = arith.constant 0 : i32
    %c0_i32_1 = arith.constant 0 : i32
    return %arg0, %c0_i32, %c0_i32_0 : i32, i32, i32
  }
  func.func @transform_11(%arg0: i32) -> (i32, i32, i32) {
    %c0_i32 = arith.constant 0 : i32
    %c0_i32_0 = arith.constant 0 : i32
    %c0_i32_1 = arith.constant 0 : i32
    return %arg0, %c0_i32, %c0_i32_0 : i32, i32, i32
  }
  func.func @transform_12(%arg0: i32) -> (i32, i32, i32) {
    %c0_i32 = arith.constant 0 : i32
    %c0_i32_0 = arith.constant 0 : i32
    %c0_i32_1 = arith.constant 0 : i32
    return %arg0, %c0_i32, %c0_i32_0 : i32, i32, i32
  }
}

module attributes {stable_mosaic.version = 11 : i64} {
  func.func @deconv_bn_kernel(%arg0: i32, %arg1: memref<1x31x32xbf16, #tpu.memory_space<vmem>>, %arg2: memref<31x1xf32, #tpu.memory_space<vmem>>, %arg3: memref<25x1xf32, #tpu.memory_space<vmem>>, %arg4: memref<1x32xf32, #tpu.memory_space<vmem>>, %arg5: memref<1x32xf32, #tpu.memory_space<vmem>>, %arg6: memref<32x128xbf16, #tpu.memory_space<vmem>>, %arg7: memref<32x128xbf16, #tpu.memory_space<vmem>>, %arg8: memref<32x128xbf16, #tpu.memory_space<vmem>>, %arg9: memref<32x128xbf16, #tpu.memory_space<vmem>>, %arg10: memref<1x128xf32, #tpu.memory_space<vmem>>, %arg11: memref<1x25x128xbf16, #tpu.memory_space<vmem>>, %arg12: memref<1x1x128xf32, #tpu.memory_space<vmem>>, %arg13: memref<1x1x128xf32, #tpu.memory_space<vmem>>) attributes {dimension_semantics = [#tpu.dimension_semantics<parallel>], iteration_bounds = array<i64: 2>, scalar_prefetch = 0 : i64, scratch_operands = 0 : i64, tpu.core_type = #tpu.core_type<tc>, window_params = [{transform_indices = @transform_0, window_bounds = array<i64: 1, 31, 32>}, {pipeline_mode = #tpu.pipeline_mode<synchronous>, transform_indices = @transform_1, window_bounds = array<i64: 31, 1>}, {pipeline_mode = #tpu.pipeline_mode<synchronous>, transform_indices = @transform_2, window_bounds = array<i64: 25, 1>}, {pipeline_mode = #tpu.pipeline_mode<synchronous>, transform_indices = @transform_3, window_bounds = array<i64: 1, 32>}, {pipeline_mode = #tpu.pipeline_mode<synchronous>, transform_indices = @transform_4, window_bounds = array<i64: 1, 32>}, {pipeline_mode = #tpu.pipeline_mode<synchronous>, transform_indices = @transform_5, window_bounds = array<i64: 32, 128>}, {pipeline_mode = #tpu.pipeline_mode<synchronous>, transform_indices = @transform_6, window_bounds = array<i64: 32, 128>}, {pipeline_mode = #tpu.pipeline_mode<synchronous>, transform_indices = @transform_7, window_bounds = array<i64: 32, 128>}, {pipeline_mode = #tpu.pipeline_mode<synchronous>, transform_indices = @transform_8, window_bounds = array<i64: 32, 128>}, {pipeline_mode = #tpu.pipeline_mode<synchronous>, transform_indices = @transform_9, window_bounds = array<i64: 1, 128>}, {transform_indices = @transform_10, window_bounds = array<i64: 1, 25, 128>}, {transform_indices = @transform_11, window_bounds = array<i64: 1, 1, 128>}, {transform_indices = @transform_12, window_bounds = array<i64: 1, 1, 128>}]} {
    %c0 = arith.constant 0 : index
    %c0_0 = arith.constant 0 : index
    %c0_1 = arith.constant 0 : index
    %0 = vector.load %arg1[%c0, %c0_0, %c0_1] : memref<1x31x32xbf16, #tpu.memory_space<vmem>>, vector<1x31x32xbf16>
    %1 = vector.shape_cast %0 : vector<1x31x32xbf16> to vector<31x32xbf16>
    %2 = arith.extf %1 : vector<31x32xbf16> to vector<31x32xf32>
    %c0_2 = arith.constant 0 : index
    %c0_3 = arith.constant 0 : index
    %3 = vector.load %arg4[%c0_2, %c0_3] : memref<1x32xf32, #tpu.memory_space<vmem>>, vector<1x32xf32>
    %4 = vector.broadcast %3 : vector<1x32xf32> to vector<31x32xf32>
    %5 = arith.mulf %2, %4 : vector<31x32xf32>
    %c0_4 = arith.constant 0 : index
    %c0_5 = arith.constant 0 : index
    %6 = vector.load %arg5[%c0_4, %c0_5] : memref<1x32xf32, #tpu.memory_space<vmem>>, vector<1x32xf32>
    %7 = vector.broadcast %6 : vector<1x32xf32> to vector<31x32xf32>
    %8 = arith.addf %5, %7 : vector<31x32xf32>
    %cst = arith.constant 0.000000e+00 : f32
    %9 = vector.broadcast %cst : f32 to vector<31x32xf32>
    %10 = arith.maximumf %8, %9 : vector<31x32xf32>
    %c0_6 = arith.constant 0 : index
    %c0_7 = arith.constant 0 : index
    %11 = vector.load %arg2[%c0_6, %c0_7] : memref<31x1xf32, #tpu.memory_space<vmem>>, vector<31x1xf32>
    %12 = vector.broadcast %11 : vector<31x1xf32> to vector<31x32xf32>
    %13 = arith.mulf %10, %12 : vector<31x32xf32>
    %14 = vector.extract_strided_slice %13 {offsets = [0, 0], sizes = [25, 32], strides = [1, 1]} : vector<31x32xf32> to vector<25x32xf32>
    %15 = arith.truncf %14 : vector<25x32xf32> to vector<25x32xbf16>
    %16 = vector.extract_strided_slice %13 {offsets = [1, 0], sizes = [25, 32], strides = [1, 1]} : vector<31x32xf32> to vector<25x32xf32>
    %17 = arith.truncf %16 : vector<25x32xf32> to vector<25x32xbf16>
    %18 = vector.extract_strided_slice %13 {offsets = [5, 0], sizes = [25, 32], strides = [1, 1]} : vector<31x32xf32> to vector<25x32xf32>
    %19 = arith.truncf %18 : vector<25x32xf32> to vector<25x32xbf16>
    %20 = vector.extract_strided_slice %13 {offsets = [6, 0], sizes = [25, 32], strides = [1, 1]} : vector<31x32xf32> to vector<25x32xf32>
    %21 = arith.truncf %20 : vector<25x32xf32> to vector<25x32xbf16>
    %c0_8 = arith.constant 0 : index
    %c0_9 = arith.constant 0 : index
    %22 = vector.load %arg6[%c0_8, %c0_9] : memref<32x128xbf16, #tpu.memory_space<vmem>>, vector<32x128xbf16>
    %cst_10 = arith.constant dense<0.000000e+00> : vector<25x128xf32>
    %23 = tpu.matmul %15, %22, %cst_10 {dimension_numbers = #tpu.dot_dimension_numbers<[1], [0], [0], [1], [0, 0, 1, 1], [], []>} : vector<25x32xbf16>, vector<32x128xbf16>, vector<25x128xf32> -> vector<25x128xf32>
    %c0_11 = arith.constant 0 : index
    %c0_12 = arith.constant 0 : index
    %24 = vector.load %arg7[%c0_11, %c0_12] : memref<32x128xbf16, #tpu.memory_space<vmem>>, vector<32x128xbf16>
    %cst_13 = arith.constant dense<0.000000e+00> : vector<25x128xf32>
    %25 = tpu.matmul %17, %24, %cst_13 {dimension_numbers = #tpu.dot_dimension_numbers<[1], [0], [0], [1], [0, 0, 1, 1], [], []>} : vector<25x32xbf16>, vector<32x128xbf16>, vector<25x128xf32> -> vector<25x128xf32>
    %26 = arith.addf %23, %25 : vector<25x128xf32>
    %c0_14 = arith.constant 0 : index
    %c0_15 = arith.constant 0 : index
    %27 = vector.load %arg8[%c0_14, %c0_15] : memref<32x128xbf16, #tpu.memory_space<vmem>>, vector<32x128xbf16>
    %cst_16 = arith.constant dense<0.000000e+00> : vector<25x128xf32>
    %28 = tpu.matmul %19, %27, %cst_16 {dimension_numbers = #tpu.dot_dimension_numbers<[1], [0], [0], [1], [0, 0, 1, 1], [], []>} : vector<25x32xbf16>, vector<32x128xbf16>, vector<25x128xf32> -> vector<25x128xf32>
    %29 = arith.addf %26, %28 : vector<25x128xf32>
    %c0_17 = arith.constant 0 : index
    %c0_18 = arith.constant 0 : index
    %30 = vector.load %arg9[%c0_17, %c0_18] : memref<32x128xbf16, #tpu.memory_space<vmem>>, vector<32x128xbf16>
    %cst_19 = arith.constant dense<0.000000e+00> : vector<25x128xf32>
    %31 = tpu.matmul %21, %30, %cst_19 {dimension_numbers = #tpu.dot_dimension_numbers<[1], [0], [0], [1], [0, 0, 1, 1], [], []>} : vector<25x32xbf16>, vector<32x128xbf16>, vector<25x128xf32> -> vector<25x128xf32>
    %32 = arith.addf %29, %31 : vector<25x128xf32>
    %c0_20 = arith.constant 0 : index
    %c0_21 = arith.constant 0 : index
    %33 = vector.load %arg10[%c0_20, %c0_21] : memref<1x128xf32, #tpu.memory_space<vmem>>, vector<1x128xf32>
    %34 = vector.broadcast %33 : vector<1x128xf32> to vector<25x128xf32>
    %35 = arith.addf %32, %34 : vector<25x128xf32>
    %36 = arith.truncf %35 : vector<25x128xf32> to vector<25x128xbf16>
    %c0_22 = arith.constant 0 : index
    %c0_23 = arith.constant 0 : index
    %c0_24 = arith.constant 0 : index
    %37 = vector.load %arg11[%c0_22, %c0_23, %c0_24] : memref<1x25x128xbf16, #tpu.memory_space<vmem>>, vector<1x25x128xbf16>
    %38 = vector.shape_cast %37 : vector<1x25x128xbf16> to vector<25x128xbf16>
    %39 = vector.shape_cast %36 : vector<25x128xbf16> to vector<1x25x128xbf16>
    tpu.vector_store %arg11[%c0_22, %c0_23, %c0_24], %39 {strides = array<i32>} : memref<1x25x128xbf16, #tpu.memory_space<vmem>>, vector<1x25x128xbf16>,
    %c0_25 = arith.constant 0 : index
    %c0_26 = arith.constant 0 : index
    %40 = vector.load %arg3[%c0_25, %c0_26] : memref<25x1xf32, #tpu.memory_space<vmem>>, vector<25x1xf32>
    %41 = vector.broadcast %40 : vector<25x1xf32> to vector<25x128xf32>
    %42 = arith.mulf %35, %41 : vector<25x128xf32>
    %cst_27 = arith.constant dense<0.000000e+00> : vector<128xf32>
    %43 = vector.multi_reduction <add>, %42, %cst_27 [0] : vector<25x128xf32> to vector<128xf32>
    %44 = vector.shape_cast %43 : vector<128xf32> to vector<1x128xf32>
    %c0_28 = arith.constant 0 : index
    %c0_29 = arith.constant 0 : index
    %c0_30 = arith.constant 0 : index
    %45 = vector.load %arg12[%c0_28, %c0_29, %c0_30] : memref<1x1x128xf32, #tpu.memory_space<vmem>>, vector<1x1x128xf32>
    %46 = vector.shape_cast %45 : vector<1x1x128xf32> to vector<1x128xf32>
    %47 = vector.shape_cast %44 : vector<1x128xf32> to vector<1x1x128xf32>
    tpu.vector_store %arg12[%c0_28, %c0_29, %c0_30], %47 {strides = array<i32>} : memref<1x1x128xf32, #tpu.memory_space<vmem>>, vector<1x1x128xf32>,
    %48 = arith.mulf %42, %35 : vector<25x128xf32>
    %cst_31 = arith.constant dense<0.000000e+00> : vector<128xf32>
    %49 = vector.multi_reduction <add>, %48, %cst_31 [0] : vector<25x128xf32> to vector<128xf32>
    %50 = vector.shape_cast %49 : vector<128xf32> to vector<1x128xf32>
    %c0_32 = arith.constant 0 : index
    %c0_33 = arith.constant 0 : index
    %c0_34 = arith.constant 0 : index
    %51 = vector.load %arg13[%c0_32, %c0_33, %c0_34] : memref<1x1x128xf32, #tpu.memory_space<vmem>>, vector<1x1x128xf32>
    %52 = vector.shape_cast %51 : vector<1x1x128xf32> to vector<1x128xf32>
    %53 = vector.shape_cast %50 : vector<1x128xf32> to vector<1x1x128xf32>
    tpu.vector_store %arg13[%c0_32, %c0_33, %c0_34], %53 {strides = array<i32>} : memref<1x1x128xf32, #tpu.memory_space<vmem>>, vector<1x1x128xf32>,
    return
  }
  func.func @transform_0(%arg0: i32) -> (i32, i32, i32) {
    %c0_i32 = arith.constant 0 : i32
    %c0_i32_0 = arith.constant 0 : i32
    %c0_i32_1 = arith.constant 0 : i32
    return %arg0, %c0_i32, %c0_i32_0 : i32, i32, i32
  }
  func.func @transform_1(%arg0: i32) -> (i32, i32) {
    %c0_i32 = arith.constant 0 : i32
    %c0_i32_0 = arith.constant 0 : i32
    %c0_i32_1 = arith.constant 0 : i32
    return %c0_i32, %c0_i32_0 : i32, i32
  }
  func.func @transform_2(%arg0: i32) -> (i32, i32) {
    %c0_i32 = arith.constant 0 : i32
    %c0_i32_0 = arith.constant 0 : i32
    %c0_i32_1 = arith.constant 0 : i32
    return %c0_i32, %c0_i32_0 : i32, i32
  }
  func.func @transform_3(%arg0: i32) -> (i32, i32) {
    %c0_i32 = arith.constant 0 : i32
    %c0_i32_0 = arith.constant 0 : i32
    %c0_i32_1 = arith.constant 0 : i32
    return %c0_i32, %c0_i32_0 : i32, i32
  }
  func.func @transform_4(%arg0: i32) -> (i32, i32) {
    %c0_i32 = arith.constant 0 : i32
    %c0_i32_0 = arith.constant 0 : i32
    %c0_i32_1 = arith.constant 0 : i32
    return %c0_i32, %c0_i32_0 : i32, i32
  }
  func.func @transform_5(%arg0: i32) -> (i32, i32) {
    %c0_i32 = arith.constant 0 : i32
    %c0_i32_0 = arith.constant 0 : i32
    %c0_i32_1 = arith.constant 0 : i32
    return %c0_i32, %c0_i32_0 : i32, i32
  }
  func.func @transform_6(%arg0: i32) -> (i32, i32) {
    %c0_i32 = arith.constant 0 : i32
    %c0_i32_0 = arith.constant 0 : i32
    %c0_i32_1 = arith.constant 0 : i32
    return %c0_i32, %c0_i32_0 : i32, i32
  }
  func.func @transform_7(%arg0: i32) -> (i32, i32) {
    %c0_i32 = arith.constant 0 : i32
    %c0_i32_0 = arith.constant 0 : i32
    %c0_i32_1 = arith.constant 0 : i32
    return %c0_i32, %c0_i32_0 : i32, i32
  }
  func.func @transform_8(%arg0: i32) -> (i32, i32) {
    %c0_i32 = arith.constant 0 : i32
    %c0_i32_0 = arith.constant 0 : i32
    %c0_i32_1 = arith.constant 0 : i32
    return %c0_i32, %c0_i32_0 : i32, i32
  }
  func.func @transform_9(%arg0: i32) -> (i32, i32) {
    %c0_i32 = arith.constant 0 : i32
    %c0_i32_0 = arith.constant 0 : i32
    %c0_i32_1 = arith.constant 0 : i32
    return %c0_i32, %c0_i32_0 : i32, i32
  }
  func.func @transform_10(%arg0: i32) -> (i32, i32, i32) {
    %c0_i32 = arith.constant 0 : i32
    %c0_i32_0 = arith.constant 0 : i32
    %c0_i32_1 = arith.constant 0 : i32
    return %arg0, %c0_i32, %c0_i32_0 : i32, i32, i32
  }
  func.func @transform_11(%arg0: i32) -> (i32, i32, i32) {
    %c0_i32 = arith.constant 0 : i32
    %c0_i32_0 = arith.constant 0 : i32
    %c0_i32_1 = arith.constant 0 : i32
    return %arg0, %c0_i32, %c0_i32_0 : i32, i32, i32
  }
  func.func @transform_12(%arg0: i32) -> (i32, i32, i32) {
    %c0_i32 = arith.constant 0 : i32
    %c0_i32_0 = arith.constant 0 : i32
    %c0_i32_1 = arith.constant 0 : i32
    return %arg0, %c0_i32, %c0_i32_0 : i32, i32, i32
  }
}

module attributes {stable_mosaic.version = 11 : i64} {
  func.func @deconv_bn_kernel(%arg0: i32, %arg1: memref<1x91x16xbf16, #tpu.memory_space<vmem>>, %arg2: memref<91x1xf32, #tpu.memory_space<vmem>>, %arg3: memref<81x1xf32, #tpu.memory_space<vmem>>, %arg4: memref<1x16xf32, #tpu.memory_space<vmem>>, %arg5: memref<1x16xf32, #tpu.memory_space<vmem>>, %arg6: memref<16x128xbf16, #tpu.memory_space<vmem>>, %arg7: memref<16x128xbf16, #tpu.memory_space<vmem>>, %arg8: memref<16x128xbf16, #tpu.memory_space<vmem>>, %arg9: memref<16x128xbf16, #tpu.memory_space<vmem>>, %arg10: memref<1x128xf32, #tpu.memory_space<vmem>>, %arg11: memref<1x81x128xbf16, #tpu.memory_space<vmem>>, %arg12: memref<1x1x128xf32, #tpu.memory_space<vmem>>, %arg13: memref<1x1x128xf32, #tpu.memory_space<vmem>>) attributes {dimension_semantics = [#tpu.dimension_semantics<parallel>], iteration_bounds = array<i64: 2>, scalar_prefetch = 0 : i64, scratch_operands = 0 : i64, tpu.core_type = #tpu.core_type<tc>, window_params = [{transform_indices = @transform_0, window_bounds = array<i64: 1, 91, 16>}, {pipeline_mode = #tpu.pipeline_mode<synchronous>, transform_indices = @transform_1, window_bounds = array<i64: 91, 1>}, {pipeline_mode = #tpu.pipeline_mode<synchronous>, transform_indices = @transform_2, window_bounds = array<i64: 81, 1>}, {pipeline_mode = #tpu.pipeline_mode<synchronous>, transform_indices = @transform_3, window_bounds = array<i64: 1, 16>}, {pipeline_mode = #tpu.pipeline_mode<synchronous>, transform_indices = @transform_4, window_bounds = array<i64: 1, 16>}, {pipeline_mode = #tpu.pipeline_mode<synchronous>, transform_indices = @transform_5, window_bounds = array<i64: 16, 128>}, {pipeline_mode = #tpu.pipeline_mode<synchronous>, transform_indices = @transform_6, window_bounds = array<i64: 16, 128>}, {pipeline_mode = #tpu.pipeline_mode<synchronous>, transform_indices = @transform_7, window_bounds = array<i64: 16, 128>}, {pipeline_mode = #tpu.pipeline_mode<synchronous>, transform_indices = @transform_8, window_bounds = array<i64: 16, 128>}, {pipeline_mode = #tpu.pipeline_mode<synchronous>, transform_indices = @transform_9, window_bounds = array<i64: 1, 128>}, {transform_indices = @transform_10, window_bounds = array<i64: 1, 81, 128>}, {transform_indices = @transform_11, window_bounds = array<i64: 1, 1, 128>}, {transform_indices = @transform_12, window_bounds = array<i64: 1, 1, 128>}]} {
    %c0 = arith.constant 0 : index
    %c0_0 = arith.constant 0 : index
    %c0_1 = arith.constant 0 : index
    %0 = vector.load %arg1[%c0, %c0_0, %c0_1] : memref<1x91x16xbf16, #tpu.memory_space<vmem>>, vector<1x91x16xbf16>
    %1 = vector.shape_cast %0 : vector<1x91x16xbf16> to vector<91x16xbf16>
    %2 = arith.extf %1 : vector<91x16xbf16> to vector<91x16xf32>
    %c0_2 = arith.constant 0 : index
    %c0_3 = arith.constant 0 : index
    %3 = vector.load %arg4[%c0_2, %c0_3] : memref<1x16xf32, #tpu.memory_space<vmem>>, vector<1x16xf32>
    %4 = vector.broadcast %3 : vector<1x16xf32> to vector<91x16xf32>
    %5 = arith.mulf %2, %4 : vector<91x16xf32>
    %c0_4 = arith.constant 0 : index
    %c0_5 = arith.constant 0 : index
    %6 = vector.load %arg5[%c0_4, %c0_5] : memref<1x16xf32, #tpu.memory_space<vmem>>, vector<1x16xf32>
    %7 = vector.broadcast %6 : vector<1x16xf32> to vector<91x16xf32>
    %8 = arith.addf %5, %7 : vector<91x16xf32>
    %cst = arith.constant 0.000000e+00 : f32
    %9 = vector.broadcast %cst : f32 to vector<91x16xf32>
    %10 = arith.maximumf %8, %9 : vector<91x16xf32>
    %c0_6 = arith.constant 0 : index
    %c0_7 = arith.constant 0 : index
    %11 = vector.load %arg2[%c0_6, %c0_7] : memref<91x1xf32, #tpu.memory_space<vmem>>, vector<91x1xf32>
    %12 = vector.broadcast %11 : vector<91x1xf32> to vector<91x16xf32>
    %13 = arith.mulf %10, %12 : vector<91x16xf32>
    %14 = vector.extract_strided_slice %13 {offsets = [0, 0], sizes = [81, 16], strides = [1, 1]} : vector<91x16xf32> to vector<81x16xf32>
    %15 = arith.truncf %14 : vector<81x16xf32> to vector<81x16xbf16>
    %16 = vector.extract_strided_slice %13 {offsets = [1, 0], sizes = [81, 16], strides = [1, 1]} : vector<91x16xf32> to vector<81x16xf32>
    %17 = arith.truncf %16 : vector<81x16xf32> to vector<81x16xbf16>
    %18 = vector.extract_strided_slice %13 {offsets = [9, 0], sizes = [81, 16], strides = [1, 1]} : vector<91x16xf32> to vector<81x16xf32>
    %19 = arith.truncf %18 : vector<81x16xf32> to vector<81x16xbf16>
    %20 = vector.extract_strided_slice %13 {offsets = [10, 0], sizes = [81, 16], strides = [1, 1]} : vector<91x16xf32> to vector<81x16xf32>
    %21 = arith.truncf %20 : vector<81x16xf32> to vector<81x16xbf16>
    %c0_8 = arith.constant 0 : index
    %c0_9 = arith.constant 0 : index
    %22 = vector.load %arg6[%c0_8, %c0_9] : memref<16x128xbf16, #tpu.memory_space<vmem>>, vector<16x128xbf16>
    %cst_10 = arith.constant dense<0.000000e+00> : vector<81x128xf32>
    %23 = tpu.matmul %15, %22, %cst_10 {dimension_numbers = #tpu.dot_dimension_numbers<[1], [0], [0], [1], [0, 0, 1, 1], [], []>} : vector<81x16xbf16>, vector<16x128xbf16>, vector<81x128xf32> -> vector<81x128xf32>
    %c0_11 = arith.constant 0 : index
    %c0_12 = arith.constant 0 : index
    %24 = vector.load %arg7[%c0_11, %c0_12] : memref<16x128xbf16, #tpu.memory_space<vmem>>, vector<16x128xbf16>
    %cst_13 = arith.constant dense<0.000000e+00> : vector<81x128xf32>
    %25 = tpu.matmul %17, %24, %cst_13 {dimension_numbers = #tpu.dot_dimension_numbers<[1], [0], [0], [1], [0, 0, 1, 1], [], []>} : vector<81x16xbf16>, vector<16x128xbf16>, vector<81x128xf32> -> vector<81x128xf32>
    %26 = arith.addf %23, %25 : vector<81x128xf32>
    %c0_14 = arith.constant 0 : index
    %c0_15 = arith.constant 0 : index
    %27 = vector.load %arg8[%c0_14, %c0_15] : memref<16x128xbf16, #tpu.memory_space<vmem>>, vector<16x128xbf16>
    %cst_16 = arith.constant dense<0.000000e+00> : vector<81x128xf32>
    %28 = tpu.matmul %19, %27, %cst_16 {dimension_numbers = #tpu.dot_dimension_numbers<[1], [0], [0], [1], [0, 0, 1, 1], [], []>} : vector<81x16xbf16>, vector<16x128xbf16>, vector<81x128xf32> -> vector<81x128xf32>
    %29 = arith.addf %26, %28 : vector<81x128xf32>
    %c0_17 = arith.constant 0 : index
    %c0_18 = arith.constant 0 : index
    %30 = vector.load %arg9[%c0_17, %c0_18] : memref<16x128xbf16, #tpu.memory_space<vmem>>, vector<16x128xbf16>
    %cst_19 = arith.constant dense<0.000000e+00> : vector<81x128xf32>
    %31 = tpu.matmul %21, %30, %cst_19 {dimension_numbers = #tpu.dot_dimension_numbers<[1], [0], [0], [1], [0, 0, 1, 1], [], []>} : vector<81x16xbf16>, vector<16x128xbf16>, vector<81x128xf32> -> vector<81x128xf32>
    %32 = arith.addf %29, %31 : vector<81x128xf32>
    %c0_20 = arith.constant 0 : index
    %c0_21 = arith.constant 0 : index
    %33 = vector.load %arg10[%c0_20, %c0_21] : memref<1x128xf32, #tpu.memory_space<vmem>>, vector<1x128xf32>
    %34 = vector.broadcast %33 : vector<1x128xf32> to vector<81x128xf32>
    %35 = arith.addf %32, %34 : vector<81x128xf32>
    %36 = arith.truncf %35 : vector<81x128xf32> to vector<81x128xbf16>
    %c0_22 = arith.constant 0 : index
    %c0_23 = arith.constant 0 : index
    %c0_24 = arith.constant 0 : index
    %37 = vector.load %arg11[%c0_22, %c0_23, %c0_24] : memref<1x81x128xbf16, #tpu.memory_space<vmem>>, vector<1x81x128xbf16>
    %38 = vector.shape_cast %37 : vector<1x81x128xbf16> to vector<81x128xbf16>
    %39 = vector.shape_cast %36 : vector<81x128xbf16> to vector<1x81x128xbf16>
    tpu.vector_store %arg11[%c0_22, %c0_23, %c0_24], %39 {strides = array<i32>} : memref<1x81x128xbf16, #tpu.memory_space<vmem>>, vector<1x81x128xbf16>,
    %c0_25 = arith.constant 0 : index
    %c0_26 = arith.constant 0 : index
    %40 = vector.load %arg3[%c0_25, %c0_26] : memref<81x1xf32, #tpu.memory_space<vmem>>, vector<81x1xf32>
    %41 = vector.broadcast %40 : vector<81x1xf32> to vector<81x128xf32>
    %42 = arith.mulf %35, %41 : vector<81x128xf32>
    %cst_27 = arith.constant dense<0.000000e+00> : vector<128xf32>
    %43 = vector.multi_reduction <add>, %42, %cst_27 [0] : vector<81x128xf32> to vector<128xf32>
    %44 = vector.shape_cast %43 : vector<128xf32> to vector<1x128xf32>
    %c0_28 = arith.constant 0 : index
    %c0_29 = arith.constant 0 : index
    %c0_30 = arith.constant 0 : index
    %45 = vector.load %arg12[%c0_28, %c0_29, %c0_30] : memref<1x1x128xf32, #tpu.memory_space<vmem>>, vector<1x1x128xf32>
    %46 = vector.shape_cast %45 : vector<1x1x128xf32> to vector<1x128xf32>
    %47 = vector.shape_cast %44 : vector<1x128xf32> to vector<1x1x128xf32>
    tpu.vector_store %arg12[%c0_28, %c0_29, %c0_30], %47 {strides = array<i32>} : memref<1x1x128xf32, #tpu.memory_space<vmem>>, vector<1x1x128xf32>,
    %48 = arith.mulf %42, %35 : vector<81x128xf32>
    %cst_31 = arith.constant dense<0.000000e+00> : vector<128xf32>
    %49 = vector.multi_reduction <add>, %48, %cst_31 [0] : vector<81x128xf32> to vector<128xf32>
    %50 = vector.shape_cast %49 : vector<128xf32> to vector<1x128xf32>
    %c0_32 = arith.constant 0 : index
    %c0_33 = arith.constant 0 : index
    %c0_34 = arith.constant 0 : index
    %51 = vector.load %arg13[%c0_32, %c0_33, %c0_34] : memref<1x1x128xf32, #tpu.memory_space<vmem>>, vector<1x1x128xf32>
    %52 = vector.shape_cast %51 : vector<1x1x128xf32> to vector<1x128xf32>
    %53 = vector.shape_cast %50 : vector<1x128xf32> to vector<1x1x128xf32>
    tpu.vector_store %arg13[%c0_32, %c0_33, %c0_34], %53 {strides = array<i32>} : memref<1x1x128xf32, #tpu.memory_space<vmem>>, vector<1x1x128xf32>,
    return
  }
  func.func @transform_0(%arg0: i32) -> (i32, i32, i32) {
    %c0_i32 = arith.constant 0 : i32
    %c0_i32_0 = arith.constant 0 : i32
    %c0_i32_1 = arith.constant 0 : i32
    return %arg0, %c0_i32, %c0_i32_0 : i32, i32, i32
  }
  func.func @transform_1(%arg0: i32) -> (i32, i32) {
    %c0_i32 = arith.constant 0 : i32
    %c0_i32_0 = arith.constant 0 : i32
    %c0_i32_1 = arith.constant 0 : i32
    return %c0_i32, %c0_i32_0 : i32, i32
  }
  func.func @transform_2(%arg0: i32) -> (i32, i32) {
    %c0_i32 = arith.constant 0 : i32
    %c0_i32_0 = arith.constant 0 : i32
    %c0_i32_1 = arith.constant 0 : i32
    return %c0_i32, %c0_i32_0 : i32, i32
  }
  func.func @transform_3(%arg0: i32) -> (i32, i32) {
    %c0_i32 = arith.constant 0 : i32
    %c0_i32_0 = arith.constant 0 : i32
    %c0_i32_1 = arith.constant 0 : i32
    return %c0_i32, %c0_i32_0 : i32, i32
  }
  func.func @transform_4(%arg0: i32) -> (i32, i32) {
    %c0_i32 = arith.constant 0 : i32
    %c0_i32_0 = arith.constant 0 : i32
    %c0_i32_1 = arith.constant 0 : i32
    return %c0_i32, %c0_i32_0 : i32, i32
  }
  func.func @transform_5(%arg0: i32) -> (i32, i32) {
    %c0_i32 = arith.constant 0 : i32
    %c0_i32_0 = arith.constant 0 : i32
    %c0_i32_1 = arith.constant 0 : i32
    return %c0_i32, %c0_i32_0 : i32, i32
  }
  func.func @transform_6(%arg0: i32) -> (i32, i32) {
    %c0_i32 = arith.constant 0 : i32
    %c0_i32_0 = arith.constant 0 : i32
    %c0_i32_1 = arith.constant 0 : i32
    return %c0_i32, %c0_i32_0 : i32, i32
  }
  func.func @transform_7(%arg0: i32) -> (i32, i32) {
    %c0_i32 = arith.constant 0 : i32
    %c0_i32_0 = arith.constant 0 : i32
    %c0_i32_1 = arith.constant 0 : i32
    return %c0_i32, %c0_i32_0 : i32, i32
  }
  func.func @transform_8(%arg0: i32) -> (i32, i32) {
    %c0_i32 = arith.constant 0 : i32
    %c0_i32_0 = arith.constant 0 : i32
    %c0_i32_1 = arith.constant 0 : i32
    return %c0_i32, %c0_i32_0 : i32, i32
  }
  func.func @transform_9(%arg0: i32) -> (i32, i32) {
    %c0_i32 = arith.constant 0 : i32
    %c0_i32_0 = arith.constant 0 : i32
    %c0_i32_1 = arith.constant 0 : i32
    return %c0_i32, %c0_i32_0 : i32, i32
  }
  func.func @transform_10(%arg0: i32) -> (i32, i32, i32) {
    %c0_i32 = arith.constant 0 : i32
    %c0_i32_0 = arith.constant 0 : i32
    %c0_i32_1 = arith.constant 0 : i32
    return %arg0, %c0_i32, %c0_i32_0 : i32, i32, i32
  }
  func.func @transform_11(%arg0: i32) -> (i32, i32, i32) {
    %c0_i32 = arith.constant 0 : i32
    %c0_i32_0 = arith.constant 0 : i32
    %c0_i32_1 = arith.constant 0 : i32
    return %arg0, %c0_i32, %c0_i32_0 : i32, i32, i32
  }
  func.func @transform_12(%arg0: i32) -> (i32, i32, i32) {
    %c0_i32 = arith.constant 0 : i32
    %c0_i32_0 = arith.constant 0 : i32
    %c0_i32_1 = arith.constant 0 : i32
    return %arg0, %c0_i32, %c0_i32_0 : i32, i32, i32
  }
}

module attributes {stable_mosaic.version = 11 : i64} {
  func.func @deconv_bn_kernel(%arg0: i32, %arg1: memref<1x307x8xbf16, #tpu.memory_space<vmem>>, %arg2: memref<307x1xf32, #tpu.memory_space<vmem>>, %arg3: memref<289x1xf32, #tpu.memory_space<vmem>>, %arg4: memref<1x8xf32, #tpu.memory_space<vmem>>, %arg5: memref<1x8xf32, #tpu.memory_space<vmem>>, %arg6: memref<8x128xbf16, #tpu.memory_space<vmem>>, %arg7: memref<8x128xbf16, #tpu.memory_space<vmem>>, %arg8: memref<8x128xbf16, #tpu.memory_space<vmem>>, %arg9: memref<8x128xbf16, #tpu.memory_space<vmem>>, %arg10: memref<1x128xf32, #tpu.memory_space<vmem>>, %arg11: memref<1x289x128xbf16, #tpu.memory_space<vmem>>) attributes {dimension_semantics = [#tpu.dimension_semantics<parallel>], iteration_bounds = array<i64: 2>, scalar_prefetch = 0 : i64, scratch_operands = 0 : i64, tpu.core_type = #tpu.core_type<tc>, window_params = [{transform_indices = @transform_0, window_bounds = array<i64: 1, 307, 8>}, {pipeline_mode = #tpu.pipeline_mode<synchronous>, transform_indices = @transform_1, window_bounds = array<i64: 307, 1>}, {pipeline_mode = #tpu.pipeline_mode<synchronous>, transform_indices = @transform_2, window_bounds = array<i64: 289, 1>}, {pipeline_mode = #tpu.pipeline_mode<synchronous>, transform_indices = @transform_3, window_bounds = array<i64: 1, 8>}, {pipeline_mode = #tpu.pipeline_mode<synchronous>, transform_indices = @transform_4, window_bounds = array<i64: 1, 8>}, {pipeline_mode = #tpu.pipeline_mode<synchronous>, transform_indices = @transform_5, window_bounds = array<i64: 8, 128>}, {pipeline_mode = #tpu.pipeline_mode<synchronous>, transform_indices = @transform_6, window_bounds = array<i64: 8, 128>}, {pipeline_mode = #tpu.pipeline_mode<synchronous>, transform_indices = @transform_7, window_bounds = array<i64: 8, 128>}, {pipeline_mode = #tpu.pipeline_mode<synchronous>, transform_indices = @transform_8, window_bounds = array<i64: 8, 128>}, {pipeline_mode = #tpu.pipeline_mode<synchronous>, transform_indices = @transform_9, window_bounds = array<i64: 1, 128>}, {transform_indices = @transform_10, window_bounds = array<i64: 1, 289, 128>}]} {
    %c0 = arith.constant 0 : index
    %c0_0 = arith.constant 0 : index
    %c0_1 = arith.constant 0 : index
    %0 = vector.load %arg1[%c0, %c0_0, %c0_1] : memref<1x307x8xbf16, #tpu.memory_space<vmem>>, vector<1x307x8xbf16>
    %1 = vector.shape_cast %0 : vector<1x307x8xbf16> to vector<307x8xbf16>
    %2 = arith.extf %1 : vector<307x8xbf16> to vector<307x8xf32>
    %c0_2 = arith.constant 0 : index
    %c0_3 = arith.constant 0 : index
    %3 = vector.load %arg4[%c0_2, %c0_3] : memref<1x8xf32, #tpu.memory_space<vmem>>, vector<1x8xf32>
    %4 = vector.broadcast %3 : vector<1x8xf32> to vector<307x8xf32>
    %5 = arith.mulf %2, %4 : vector<307x8xf32>
    %c0_4 = arith.constant 0 : index
    %c0_5 = arith.constant 0 : index
    %6 = vector.load %arg5[%c0_4, %c0_5] : memref<1x8xf32, #tpu.memory_space<vmem>>, vector<1x8xf32>
    %7 = vector.broadcast %6 : vector<1x8xf32> to vector<307x8xf32>
    %8 = arith.addf %5, %7 : vector<307x8xf32>
    %cst = arith.constant 0.000000e+00 : f32
    %9 = vector.broadcast %cst : f32 to vector<307x8xf32>
    %10 = arith.maximumf %8, %9 : vector<307x8xf32>
    %c0_6 = arith.constant 0 : index
    %c0_7 = arith.constant 0 : index
    %11 = vector.load %arg2[%c0_6, %c0_7] : memref<307x1xf32, #tpu.memory_space<vmem>>, vector<307x1xf32>
    %12 = vector.broadcast %11 : vector<307x1xf32> to vector<307x8xf32>
    %13 = arith.mulf %10, %12 : vector<307x8xf32>
    %14 = vector.extract_strided_slice %13 {offsets = [0, 0], sizes = [289, 8], strides = [1, 1]} : vector<307x8xf32> to vector<289x8xf32>
    %15 = arith.truncf %14 : vector<289x8xf32> to vector<289x8xbf16>
    %16 = vector.extract_strided_slice %13 {offsets = [1, 0], sizes = [289, 8], strides = [1, 1]} : vector<307x8xf32> to vector<289x8xf32>
    %17 = arith.truncf %16 : vector<289x8xf32> to vector<289x8xbf16>
    %18 = vector.extract_strided_slice %13 {offsets = [17, 0], sizes = [289, 8], strides = [1, 1]} : vector<307x8xf32> to vector<289x8xf32>
    %19 = arith.truncf %18 : vector<289x8xf32> to vector<289x8xbf16>
    %20 = vector.extract_strided_slice %13 {offsets = [18, 0], sizes = [289, 8], strides = [1, 1]} : vector<307x8xf32> to vector<289x8xf32>
    %21 = arith.truncf %20 : vector<289x8xf32> to vector<289x8xbf16>
    %c0_8 = arith.constant 0 : index
    %c0_9 = arith.constant 0 : index
    %22 = vector.load %arg6[%c0_8, %c0_9] : memref<8x128xbf16, #tpu.memory_space<vmem>>, vector<8x128xbf16>
    %cst_10 = arith.constant dense<0.000000e+00> : vector<289x128xf32>
    %23 = tpu.matmul %15, %22, %cst_10 {dimension_numbers = #tpu.dot_dimension_numbers<[1], [0], [0], [1], [0, 0, 1, 1], [], []>} : vector<289x8xbf16>, vector<8x128xbf16>, vector<289x128xf32> -> vector<289x128xf32>
    %c0_11 = arith.constant 0 : index
    %c0_12 = arith.constant 0 : index
    %24 = vector.load %arg7[%c0_11, %c0_12] : memref<8x128xbf16, #tpu.memory_space<vmem>>, vector<8x128xbf16>
    %cst_13 = arith.constant dense<0.000000e+00> : vector<289x128xf32>
    %25 = tpu.matmul %17, %24, %cst_13 {dimension_numbers = #tpu.dot_dimension_numbers<[1], [0], [0], [1], [0, 0, 1, 1], [], []>} : vector<289x8xbf16>, vector<8x128xbf16>, vector<289x128xf32> -> vector<289x128xf32>
    %26 = arith.addf %23, %25 : vector<289x128xf32>
    %c0_14 = arith.constant 0 : index
    %c0_15 = arith.constant 0 : index
    %27 = vector.load %arg8[%c0_14, %c0_15] : memref<8x128xbf16, #tpu.memory_space<vmem>>, vector<8x128xbf16>
    %cst_16 = arith.constant dense<0.000000e+00> : vector<289x128xf32>
    %28 = tpu.matmul %19, %27, %cst_16 {dimension_numbers = #tpu.dot_dimension_numbers<[1], [0], [0], [1], [0, 0, 1, 1], [], []>} : vector<289x8xbf16>, vector<8x128xbf16>, vector<289x128xf32> -> vector<289x128xf32>
    %29 = arith.addf %26, %28 : vector<289x128xf32>
    %c0_17 = arith.constant 0 : index
    %c0_18 = arith.constant 0 : index
    %30 = vector.load %arg9[%c0_17, %c0_18] : memref<8x128xbf16, #tpu.memory_space<vmem>>, vector<8x128xbf16>
    %cst_19 = arith.constant dense<0.000000e+00> : vector<289x128xf32>
    %31 = tpu.matmul %21, %30, %cst_19 {dimension_numbers = #tpu.dot_dimension_numbers<[1], [0], [0], [1], [0, 0, 1, 1], [], []>} : vector<289x8xbf16>, vector<8x128xbf16>, vector<289x128xf32> -> vector<289x128xf32>
    %32 = arith.addf %29, %31 : vector<289x128xf32>
    %c0_20 = arith.constant 0 : index
    %c0_21 = arith.constant 0 : index
    %33 = vector.load %arg10[%c0_20, %c0_21] : memref<1x128xf32, #tpu.memory_space<vmem>>, vector<1x128xf32>
    %34 = vector.broadcast %33 : vector<1x128xf32> to vector<289x128xf32>
    %35 = arith.addf %32, %34 : vector<289x128xf32>
    %36 = arith.truncf %35 : vector<289x128xf32> to vector<289x128xbf16>
    %c0_22 = arith.constant 0 : index
    %c0_23 = arith.constant 0 : index
    %c0_24 = arith.constant 0 : index
    %37 = vector.load %arg11[%c0_22, %c0_23, %c0_24] : memref<1x289x128xbf16, #tpu.memory_space<vmem>>, vector<1x289x128xbf16>
    %38 = vector.shape_cast %37 : vector<1x289x128xbf16> to vector<289x128xbf16>
    %39 = vector.shape_cast %36 : vector<289x128xbf16> to vector<1x289x128xbf16>
    tpu.vector_store %arg11[%c0_22, %c0_23, %c0_24], %39 {strides = array<i32>} : memref<1x289x128xbf16, #tpu.memory_space<vmem>>, vector<1x289x128xbf16>,
    return
  }
  func.func @transform_0(%arg0: i32) -> (i32, i32, i32) {
    %c0_i32 = arith.constant 0 : i32
    %c0_i32_0 = arith.constant 0 : i32
    %c0_i32_1 = arith.constant 0 : i32
    return %arg0, %c0_i32, %c0_i32_0 : i32, i32, i32
  }
  func.func @transform_1(%arg0: i32) -> (i32, i32) {
    %c0_i32 = arith.constant 0 : i32
    %c0_i32_0 = arith.constant 0 : i32
    %c0_i32_1 = arith.constant 0 : i32
    return %c0_i32, %c0_i32_0 : i32, i32
  }
  func.func @transform_2(%arg0: i32) -> (i32, i32) {
    %c0_i32 = arith.constant 0 : i32
    %c0_i32_0 = arith.constant 0 : i32
    %c0_i32_1 = arith.constant 0 : i32
    return %c0_i32, %c0_i32_0 : i32, i32
  }
  func.func @transform_3(%arg0: i32) -> (i32, i32) {
    %c0_i32 = arith.constant 0 : i32
    %c0_i32_0 = arith.constant 0 : i32
    %c0_i32_1 = arith.constant 0 : i32
    return %c0_i32, %c0_i32_0 : i32, i32
  }
  func.func @transform_4(%arg0: i32) -> (i32, i32) {
    %c0_i32 = arith.constant 0 : i32
    %c0_i32_0 = arith.constant 0 : i32
    %c0_i32_1 = arith.constant 0 : i32
    return %c0_i32, %c0_i32_0 : i32, i32
  }
  func.func @transform_5(%arg0: i32) -> (i32, i32) {
    %c0_i32 = arith.constant 0 : i32
    %c0_i32_0 = arith.constant 0 : i32
    %c0_i32_1 = arith.constant 0 : i32
    return %c0_i32, %c0_i32_0 : i32, i32
  }
  func.func @transform_6(%arg0: i32) -> (i32, i32) {
    %c0_i32 = arith.constant 0 : i32
    %c0_i32_0 = arith.constant 0 : i32
    %c0_i32_1 = arith.constant 0 : i32
    return %c0_i32, %c0_i32_0 : i32, i32
  }
  func.func @transform_7(%arg0: i32) -> (i32, i32) {
    %c0_i32 = arith.constant 0 : i32
    %c0_i32_0 = arith.constant 0 : i32
    %c0_i32_1 = arith.constant 0 : i32
    return %c0_i32, %c0_i32_0 : i32, i32
  }
  func.func @transform_8(%arg0: i32) -> (i32, i32) {
    %c0_i32 = arith.constant 0 : i32
    %c0_i32_0 = arith.constant 0 : i32
    %c0_i32_1 = arith.constant 0 : i32
    return %c0_i32, %c0_i32_0 : i32, i32
  }
  func.func @transform_9(%arg0: i32) -> (i32, i32) {
    %c0_i32 = arith.constant 0 : i32
    %c0_i32_0 = arith.constant 0 : i32
    %c0_i32_1 = arith.constant 0 : i32
    return %c0_i32, %c0_i32_0 : i32, i32
  }
  func.func @transform_10(%arg0: i32) -> (i32, i32, i32) {
    %c0_i32 = arith.constant 0 : i32
    %c0_i32_0 = arith.constant 0 : i32
    %c0_i32_1 = arith.constant 0 : i32
    return %arg0, %c0_i32, %c0_i32_0 : i32, i32, i32
  }
}

</mosaic_0001>

<bundles_post_ra>
// kernel: _lambda_.5
= control target key start
LH: loop header
LB: loop body
LE: loop exit
PB: predicated region body
PF: predicated region fallthrough
CT: control target
= control target key end

     0   :  { %8 = vsyncpa [#allocation3], 0  ;;  %s244_s0 = inlined_call_operand.vmem [shape: f32[2,40], index: 0, kind: input, shape index: {}]   ;;  %s245_s1 = inlined_call_operand.hbm [shape: f32[40,256], index: 1, kind: input, shape index: {}]   ;;  %s246_s2 = inlined_call_operand.hbm [shape: f32[1,256], index: 2, kind: input, shape index: {}]   ;;  %s247_s3 = inlined_call_operand.vmem [shape: f32[2,256], index: 3, kind: output, shape index: {}]  }
   0x1   :  { %9 = vsyncpa [#allocation5], 0  ;;  %s207_s12 = smov [#allocation2]  }
   0x2   :  { %s17_s13 = sshll.u32 %s207_s12, 4  ;;  %s18_s13 = int_to_ptr.vmem [resolvable:$true] %s17_s13 }
   0x3   :  { %s171_s14 = scalar_lea.vmem %s18_s13, 1280  ;;  %p176_p1 = scmp.lt.s32.totalorder %s18_s13, %s18_s13 }
   0x4   :  { %p172_p0 = scmp.ne.s32.totalorder %s18_s13, %s171_s14  ;;  %p177_p2 = scmp.lt.s32.totalorder %s171_s14, %s171_s14 }
   0x6   :  { %p178_p3 = por %p177_p2, %p176_p1 }
   0x8   :  { %p179_p4 = pnand %p178_p3, %p172_p0 }
   0xa   :  { %182 = shalt.err (!%p179_p4)
}
   0xb   :  { %s208_s15 = smov 256   ;;  %s209_s16 = smov 16  }
   0xc   :  { %23 = dma.hbm_to_vmem [thread:$0]  %s245_s1, 1280, %s18_s13, [#allocation3], %s208_s15, %s208_s15, %s209_s16  }
   0xd   :  { %s210_s19 = smov [#allocation4]  }
   0xe   :  { %s30_s20 = sshll.u32 %s210_s19, 4  ;;  %s31_s20 = int_to_ptr.vmem [resolvable:$true] %s30_s20 }
   0xf   :  { %s191_s21 = scalar_lea.vmem %s31_s20, 32  ;;  %p196_p6 = scmp.lt.s32.totalorder %s31_s20, %s31_s20 }
  0x10   :  { %p192_p5 = scmp.ne.s32.totalorder %s31_s20, %s191_s21  ;;  %p197_p7 = scmp.lt.s32.totalorder %s191_s21, %s191_s21 }
  0x12   :  { %p198_p8 = por %p197_p7, %p196_p6 }
  0x14   :  { %p199_p9 = pnand %p198_p8, %p192_p5 }
  0x16   :  { %202 = shalt.err (!%p199_p9)
}
  0x17   :  { %33 = dma.hbm_to_vmem [thread:$0]  %s246_s2, 32, %s31_s20, [#allocation5]  }
  0x18   :  { %203 = dma.done.wait [#allocation3], 1280  }
  0x19   :  { %204 = vsyncadd [#allocation3], 4294966016 }
  0x1a   :  { %205 = dma.done.wait [#allocation5], 32  }
  0x1b   :  { %206 = vsyncadd [#allocation5], 4294967264  ;;  %v211_v0 = vmov 0.0   ;;  %v50_v1 = vld [vmem:[#allocation2 + $0x48] sm:$0xff]  ;;  %v49_v2 = vld [vmem:[#allocation2 + $0x40] sm:$0xff]  ;;  %vm63_vm0 = vcmask 326656   ;;  %v53_v12 = vlaneseq }
  0x1c   :  { %131 = vmatprep.mubr.f32.mxu0 %v211_v0  ;;  %v48_v3 = vld [vmem:[#allocation2 + $0x38] sm:$0xff]  ;;  %89 = vmatprep.subr.mxu0 %v50_v1  ;;  %v47_v4 = vld [vmem:[#allocation2 + $0x30] sm:$0xff]  ;;  %v46_v5 = vld [vmem:[#allocation2 + $0x28] sm:$0xff] }
  0x1d   :  { %90 = vmatpush1.msra.mxu0 %v49_v2  ;;  %v45_v6 = vld [vmem:[#allocation2 + $0x20] sm:$0xff]  ;;  %v44_v7 = vld [vmem:[#allocation2 + $0x18] sm:$0xff]  ;;  %v43_v8 = vld [vmem:[#allocation2 + $0x10] sm:$0xff]  ;;  %v54_v13 = vshrl.u32 %v53_v12, 7 }
  0x1e   :  { %91 = vmatprep.subr.mxu0 %v48_v3  ;;  %v42_v9 = vld [vmem:[#allocation2 + $0x8] sm:$0xff]  ;;  %v41_v10 = vld [vmem:[#allocation2] sm:$0xff]  ;;  %v51_v16 = vld [vmem:[#allocation4] sm:$0x3] }
  0x1f   :  { %92 = vmatpush1.msra.mxu0 %v47_v4  ;;  %v40_v11 = vld [vmem:[%s244_s0] sm:$0x3]  ;;  %v55_v14 = vsub.s32 0, %v54_v13  ;;  %v59_v15 = vsub.s32 1, %v54_v13 }
  0x20   :  { %93 = vmatprep.subr.mxu0 %v46_v5 }
  0x21   :  { %94 = vmatpush1.msra.mxu0 %v45_v6  ;;  %v56_v17 = vrot.slane %v51_v16, %v55_v14  ;;  %v60_v18 = vrot.slane %v51_v16, %v59_v15 }
  0x22   :  { %95 = vmatprep.subr.mxu0 %v44_v7 }
  0x23   :  { %96 = vmatpush1.msra.mxu0 %v43_v8 }
  0x24   :  { %97 = vmatprep.subr.mxu0 %v42_v9 }
  0x25   :  { %98 = vmatpush1.msra.mxu0 %v41_v10 }
  0x26   :  { %156 = vmatmul.mubr.msk.f32.vlgmr.msra.gmra.mxu0 %vm63_vm0, %v40_v11 }
  0xe6   :  { %v133_v19 = vpop.f32.mrf.mxu0 }
  0xe7   :  { %v134_v21 = vadd.f32 %v133_v19, %v56_v17 }
  0xe8   :  { %v135_v20 = vpop.f32.mrf.mxu0 }
  0xe9   :  { %v136_v22 = vadd.f32 %v135_v20, %v60_v18 }
  0xeb   :  { %v140_v23 = vcombine.low %v134_v21, %v136_v22 }
  0xed   :  { %157 = vst.sshfl [vmem:[%s247_s3] sm:$0x33 pattern:$0x76325410] %v140_v23 }
  0xee   :  { %154 = vsyncpa [#allocation3], 1 }
  0xef   :  { %155 = vsyncpa [#allocation5], 1 }

// kernel: _lambda_.6
= control target key start
LH: loop header
LB: loop body
LE: loop exit
PB: predicated region body
PF: predicated region fallthrough
CT: control target
= control target key end

     0   :  { %s1166_s21 = smov 0   ;;  %s1302_s0 = inlined_call_operand.vmem [shape: bf16[2,13,64], index: 0, kind: input, shape index: {}]   ;;  %s1303_s1 = inlined_call_operand.vmem [shape: f32[13,1], index: 1, kind: input, shape index: {}]   ;;  %s1304_s2 = inlined_call_operand.vmem [shape: f32[9,1], index: 2, kind: input, shape index: {}]   ;;  %s1305_s3 = inlined_call_operand.vmem [shape: f32[1,64], index: 3, kind: input, shape index: {}]   ;;  %s1306_s4 = inlined_call_operand.vmem [shape: f32[1,64], index: 4, kind: input, shape index: {}]   ;;  %s1307_s5 = inlined_call_operand.vmem [shape: bf16[64,128], index: 5, kind: input, shape index: {}]   ;;  %s1308_s6 = inlined_call_operand.vmem [shape: bf16[64,128], index: 6, kind: input, shape index: {}]   ;;  %s1309_s7 = inlined_call_operand.vmem [shape: bf16[64,128], index: 7, kind: input, shape index: {}]   ;;  %s1310_s8 = inlined_call_operand.vmem [shape: bf16[64,128], index: 8, kind: input, shape index: {}]   ;;  %s1311_s9 = inlined_call_operand.vmem [shape: f32[1,128], index: 9, kind: input, shape index: {}]   ;;  %s1312_s10 = inlined_call_operand.vmem [shape: bf16[2,9,128], index: 10, kind: output, shape index: {0}]   ;;  %s1313_s11 = inlined_call_operand.vmem [shape: f32[2,1,128], index: 11, kind: output, shape index: {1}]   ;;  %s1314_s12 = inlined_call_operand.vmem [shape: f32[2,1,128], index: 12, kind: output, shape index: {2}]  }
   0x1 LB: > { %s953_s22 = sadd.s32 4294967295, %s1096_s21   ;;  %p957_p0 = scmp.ge.s32.totalorder %s1096_s21, 1  ;;  %s1096_s21 = sphi %s1166_s21, %s23_s21  }
   0x2   : > { %p367_p1 = scmp.lt.s32.totalorder %s1096_s21, 3 }
   0x4   : > { %p368_p2 = pnand %p957_p0, %p367_p1 }
   0x5   : > { %p415_p3 = scmp.lt.s32.totalorder (!%p368_p2), %s953_s22, 1 }
   0x6   : > { %371 = sbr.rel (%p368_p2) target bundleno = 390 (0x186), region = 60 }
   0xb   : > { %v454_v0 = vld [vmem:[%s1303_s1] sm:$0xff]  ;;  %v1074_v1 = vld [vmem:[%s1307_s5 + $0x18] sm:$0xff]   ;;  %v1098_v2 = vmov 0   ;;  %v1099_v3 = vmov 0.0   ;;  %v1075_v4 = vld [vmem:[%s1307_s5 + $0x10] sm:$0xff]   ;;  %vm1100_vm0 = vmmov 0  }
   0xc   : > { %1072 = vset.pattern.permute.xlu0 %v1098_v2  ;;  %1025 = vmatprep.subr.bf16.mxu1 %v1099_v3  ;;  %v455_v5 = vld [vmem:[%s1303_s1 + $0x8] sm:$0x1f]  ;;  %v1076_v6 = vld [vmem:[%s1308_s6 + $0x18] sm:$0xff]   ;;  %v1078_v8 = vld [vmem:[%s1308_s6 + $0x10] sm:$0xff]   ;;  %s1316_s22 = smov (!%p415_p3, %s953_s22), 1  ;;  %vm516_vm1 = vcmask 523264  }
   0xd   : > { %458 = vperm.xlu0 %1072, %v454_v0   ;;  %1026 = vmatpush3.bf16.msra.mxu1 %v1074_v1  ;;  %v1077_v7 = vld [vmem:[%s1307_s5 + $0x8] sm:$0xff]   ;;  %v1079_v10 = vld [vmem:[%s1307_s5] sm:$0xff]   ;;  %s989_s13 = sshll.u32 %s1316_s22, 3  ;;  %v1081_v28 = vld [vmem:[%s1310_s8 + $0x18] sm:$0xff]   ;;  %vm807_vm2 = vcmask 1040384   ;;  %s427_s30 = scalar_lea.vmem %s1313_s11, %s1316_s22 }
   0xe   : > { %1027 = vmatprep.subr.bf16.mxu1 %v1099_v3  ;;  %1013 = vmatprep.subr.bf16.mxu0 %v1099_v3  ;;  %v1080_v9 = vld [vmem:[%s1308_s6 + $0x8] sm:$0xff]   ;;  %v1082_v11 = vld [vmem:[%s1308_s6] sm:$0xff]   ;;  %s419_s16 = scalar_lea.vmem %s1302_s0, %s989_s13  ;;  %v1083_v31 = vld [vmem:[%s1310_s8 + $0x10] sm:$0xff]   ;;  %s424_s28 = scalar_lea.vmem %s1312_s10, %s989_s13  ;;  %vm808_vm3 = vsmask.f32 256 }
   0xf   : > { %1073 = vset.pattern.permute.xlu1 %v1098_v2  ;;  %1014 = vmatpush3.bf16.msra.mxu0 %v1076_v6  ;;  %v814_v12 = vld [vmem:[%s1304_s2 + $0x8] sm:$0x1]  ;;  %v813_v13 = vld [vmem:[%s1304_s2] sm:$0xff]  ;;  %v1084_v34 = vld [vmem:[%s1309_s7 + $0x18] sm:$0xff]  }
  0x10   : > { %1015 = vmatprep.subr.bf16.mxu0 %v1099_v3  ;;  %1033 = vmatprep.mubr.msk.bf16.mxu1 %vm1100_vm0, %v1099_v3  ;;  %v432_v14 = vld [vmem:[%s419_s16] sm:$0xf]  ;;  %v433_v15 = vld [vmem:[%s419_s16 + $0x4] sm:$0x7]  ;;  %v1085_v36 = vld [vmem:[%s1310_s8 + $0x8] sm:$0xff]   ;;  %s430_s16 = scalar_lea.vmem %s1314_s12, %s1316_s22 }
  0x11   : > { %463 = vperm.xlu0 %1072, %v455_v5   ;;  %1028 = vmatpush3.bf16.msra.mxu1 %v1075_v4  ;;  %v434_v16 = vunpack.c.l.bf16 %v432_v14  ;;  %v435_v17 = vunpack.c.l.bf16 %v433_v15  ;;  %v962_v18 = vld [vmem:[%s1305_s3] ss:$0 sm:$0xff]  ;;  %v1086_v37 = vld [vmem:[%s1309_s7 + $0x10] sm:$0xff]   ;;  %v1088_v39 = vld [vmem:[%s1309_s7 + $0x8] sm:$0xff]  }
  0x12   : > { %1029 = vmatprep.subr.bf16.mxu1 %v1099_v3  ;;  %1021 = vmatprep.mubr.msk.bf16.mxu0 %vm1100_vm0, %v1099_v3  ;;  %v963_v21 = vld [vmem:[%s1306_s4] ss:$0 sm:$0xff]  ;;  %vm809_vm4 = vmand %vm807_vm2, %vm808_vm3 }
  0x13   : > { %1016 = vmatpush3.bf16.msra.mxu0 %v1078_v8  ;;  %822 = vperm.xlu1 %1073, %v814_v12   ;;  %v443_v19 = vmul.f32 %v962_v18, %v434_v16  ;;  %v444_v20 = vmul.f32 %v962_v18, %v435_v17  ;;  %v1087_v38 = vld [vmem:[%s1310_s8] sm:$0xff]  }
  0x14   : > { %1017 = vmatprep.subr.bf16.mxu0 %v1099_v3  ;;  %v1089_v41 = vld [vmem:[%s1309_s7] sm:$0xff]  }
  0x15   : > { %1030 = vmatpush3.bf16.msra.mxu1 %v1077_v7  ;;  %v452_v23 = vadd.f32 %v963_v21, %v443_v19  ;;  %v453_v24 = vadd.f32 %v963_v21, %v444_v20  ;;  %v984_v61 = vld [vmem:[%s1311_s9] ss:$0 sm:$0xff] }
  0x16   : > { %1031 = vmatprep.subr.bf16.mxu1 %v1099_v3 }
  0x17   : > { %1018 = vmatpush3.bf16.msra.mxu0 %v1080_v9  ;;  %817 = vperm.xlu1 %1073, %v813_v13   ;;  %v810_v9 = vld [vmem:[%s424_s28 + $0x4] sm:$0x1] }
  0x18   : > { %1019 = vmatprep.subr.bf16.mxu0 %v1099_v3 }
  0x19   : > { %1032 = vmatpush3.bf16.msra.mxu1 %v1079_v10 }
  0x1a   : > { %1049 = vmatprep.subr.bf16.mxu1 %v1099_v3 }
  0x1b   : > { %1020 = vmatpush3.bf16.msra.mxu0 %v1082_v11 }
  0x1c   : > { %1037 = vmatprep.subr.bf16.mxu0 %v1099_v3 }
  0x88   : > { %v459_v22 = vpop.permute.xlu0 %458 }
  0x89   : > { %v466_v26 = vmul.f32 %v459_v22, %v452_v23 }
  0x8c   : > { %v464_v25 = vpop.permute.xlu0 %463 }
  0x8d   : > { %v467_v27 = vmul.f32 %v464_v25, %v453_v24 }
  0x8e   : > { %v823_v60 = vpop.permute.xlu1 %822 }
  0x8f   : > { %v468_v29 = vpack.c.bf16 %v467_v27, %v466_v26 }
  0x91   : > { %v488_v30 = vshll.u32 %v468_v29, 16  ;;  %1034 = vmatmul.mubr.msk.bf16.vlgmr.msra.gmra.mxu1 %vm516_vm1, %v468_v29  ;;  %v486_v32 = vshrl.u32 %v468_v29, 16  ;;  %v718_v40 = vrot.slane %v468_v29, 2 }
  0x92   : > { %1050 = vmatpush3.bf16.msra.mxu1 %v1081_v28  ;;  %1057 = vmatprep.mubr.msk.bf16.mxu1 %vm1100_vm0, %v1099_v3  ;;  %v818_v7 = vpop.permute.xlu1 %817 }
  0x93   : > { %1051 = vmatprep.subr.bf16.mxu1 %v1099_v3  ;;  %v490_v33 = vrot.slane %v488_v30, 1  ;;  %v637_v42 = vrot.slane %v488_v30, 2  ;;  %v636_v43 = vrot.slane %v486_v32, 1 }
  0x95   : > { %v491_v35 = vor.u32 %v490_v33, %v486_v32  ;;  %v638_v44 = vor.u32 %v637_v42, %v636_v43 }
  0x96   : > { %1052 = vmatpush3.bf16.msra.mxu1 %v1083_v31 }
  0x97   : > { %1022 = vmatmul.mubr.msk.bf16.vlgmr.msra.gmra.mxu0 %vm516_vm1, %v491_v35  ;;  %1053 = vmatprep.subr.bf16.mxu1 %v1099_v3 }
  0x98   : > { %1038 = vmatpush3.bf16.msra.mxu0 %v1084_v34  ;;  %1045 = vmatprep.mubr.msk.bf16.mxu0 %vm1100_vm0, %v1099_v3 }
  0x99   : > { %1039 = vmatprep.subr.bf16.mxu0 %v1099_v3 }
  0x9a   : > { %1054 = vmatpush3.bf16.msra.mxu1 %v1085_v36 }
  0x9b   : > { %1055 = vmatprep.subr.bf16.mxu1 %v1099_v3 }
  0x9c   : > { %1040 = vmatpush3.bf16.msra.mxu0 %v1086_v37 }
  0x9d   : > { %1041 = vmatprep.subr.bf16.mxu0 %v1099_v3 }
  0x9e   : > { %1056 = vmatpush3.bf16.msra.mxu1 %v1087_v38 }
  0xa0   : > { %1042 = vmatpush3.bf16.msra.mxu0 %v1088_v39 }
  0xa1   : > { %1058 = vmatmul.mubr.msk.bf16.vlgmr.msra.gmra.mxu1 %vm516_vm1, %v718_v40  ;;  %1043 = vmatprep.subr.bf16.mxu0 %v1099_v3 }
  0xa4   : > { %1044 = vmatpush3.bf16.msra.mxu0 %v1089_v41 }
  0xa7   : > { %1046 = vmatmul.mubr.msk.bf16.vlgmr.msra.gmra.mxu0 %vm516_vm1, %v638_v44 }
 0x151   : > { %v621_v45 = vpop.f32.mrf.mxu1 }
 0x153   : > { %v1035_v46 = vpop.f32.mrf.mxu1 }
 0x155   : > { %v624_v47 = vpop.f32.mrf.mxu1 }
 0x157   : > { %v554_v48 = vpop.f32.mrf.mxu0  ;;  %v1036_v49 = vpop.f32.mrf.mxu1 }
 0x158   : > { %v622_v56 = vadd.f32 %v621_v45, %v554_v48 }
 0x159   : > { %v1023_v50 = vpop.f32.mrf.mxu0 }
 0x15b   : > { %v557_v51 = vpop.f32.mrf.mxu0 }
 0x15c   : > { %v625_v63 = vadd.f32 %v624_v47, %v557_v51 }
 0x15d   : > { %v1024_v52 = vpop.f32.mrf.mxu0 }
 0x161   : > { %v780_v53 = vpop.f32.mrf.mxu1 }
 0x163   : > { %v1059_v54 = vpop.f32.mrf.mxu1 }
 0x165   : > { %v783_v55 = vpop.f32.mrf.mxu1 }
 0x167   : > { %v700_v57 = vpop.f32.mrf.mxu0  ;;  %v1060_v58 = vpop.f32.mrf.mxu1 }
 0x168   : > { %v707_v59 = vadd.f32 %v700_v57, %v622_v56 }
 0x169   : > { %v1047_v62 = vpop.f32.mrf.mxu0 }
 0x16a   : > { %v787_v0 = vadd.f32 %v780_v53, %v707_v59 }
 0x16b   : > { %v703_v1 = vpop.f32.mrf.mxu0 }
 0x16c   : > { %v796_v2 = vadd.f32 %v984_v61, %v787_v0  ;;  %v708_v3 = vadd.f32 %v703_v1, %v625_v63 }
 0x16d   : > { %v1048_v4 = vpop.f32.mrf.mxu0 }
 0x16e   : > { %v991_v5 = vpack.c.bf16 %v796_v2, %v796_v2  ;;  %v788_v6 = vadd.f32 %v783_v55, %v708_v3  ;;  %v825_v10 = vmul.f32 %v818_v7, %v796_v2 }
 0x170   : > { %806 = vst [vmem:[%s424_s28] sm:$0xf] %v991_v5  ;;  %v797_v8 = vadd.f32 %v984_v61, %v788_v6  ;;  %v837_v17 = vmul.f32 %v825_v10, %v796_v2 }
 0x172   : > { %v992_v11 = vpack.c.bf16 %v797_v8, %v797_v8  ;;  %v826_v12 = vmul.f32 %v823_v60, %v797_v8 }
 0x174   : > { %v811_v13 = vsel %vm809_vm4, %v992_v11, %v810_v9  ;;  %v828_v14 = vsel %vm807_vm2, %v826_v12, 0.0  ;;  %v838_v15 = vmul.f32 %v826_v12, %v797_v8 }
 0x175   : > { %812 = vst [vmem:[%s424_s28 + $0x4] sm:$0x1] %v811_v13  ;;  %v829_v16 = vadd.f32 %v828_v14, %v825_v10 }
 0x176   : > { %v839_v18 = vsel %vm807_vm2, %v838_v15, 0.0 }
 0x177   : > { %v830_v19 = vrot.slane %v829_v16, 4  ;;  %v840_v20 = vadd.f32 %v839_v18, %v837_v17 }
 0x179   : > { %v831_v21 = vadd.f32 %v830_v19, %v829_v16  ;;  %v841_v22 = vrot.slane %v840_v20, 4 }
 0x17b   : > { %v832_v23 = vrot.slane %v831_v21, 2  ;;  %v842_v24 = vadd.f32 %v841_v22, %v840_v20 }
 0x17d   : > { %v833_v25 = vadd.f32 %v832_v23, %v831_v21  ;;  %v843_v26 = vrot.slane %v842_v24, 2 }
 0x17f   : > { %v834_v27 = vrot.slane %v833_v25, 1  ;;  %v844_v28 = vadd.f32 %v843_v26, %v842_v24 }
 0x181   : > { %v835_v29 = vadd.f32 %v834_v27, %v833_v25  ;;  %v845_v30 = vrot.slane %v844_v28, 1 }
 0x183   : > { %836 = vst [vmem:[%s427_s30] sm:$0x1] %v835_v29  ;;  %v846_v31 = vadd.f32 %v845_v30, %v844_v28 }
 0x185   : > { %847 = vst [vmem:[%s430_s16] sm:$0x1] %v846_v31 }
 0x186 PF: > { %s23_s21 = sadd.s32 1, %s1096_s21  }
 0x187   : > { %p20_p4 = scmp.ge.s32.totalorder %s23_s21, 4  }
 0x189   :  { %22 = sbr.rel (!%p20_p4) target bundleno = 1 (0x1), region = 114 }

// kernel: _lambda_.7
= control target key start
LH: loop header
LB: loop body
LE: loop exit
PB: predicated region body
PF: predicated region fallthrough
CT: control target
= control target key end

     0   :  { %s1208_s21 = smov 0   ;;  %s1316_s0 = inlined_call_operand.vmem [shape: bf16[2,31,32], index: 0, kind: input, shape index: {}]   ;;  %s1317_s1 = inlined_call_operand.vmem [shape: f32[31,1], index: 1, kind: input, shape index: {}]   ;;  %s1318_s2 = inlined_call_operand.vmem [shape: f32[25,1], index: 2, kind: input, shape index: {}]   ;;  %s1319_s3 = inlined_call_operand.vmem [shape: f32[1,32], index: 3, kind: input, shape index: {}]   ;;  %s1320_s4 = inlined_call_operand.vmem [shape: f32[1,32], index: 4, kind: input, shape index: {}]   ;;  %s1321_s5 = inlined_call_operand.vmem [shape: bf16[32,128], index: 5, kind: input, shape index: {}]   ;;  %s1322_s6 = inlined_call_operand.vmem [shape: bf16[32,128], index: 6, kind: input, shape index: {}]   ;;  %s1323_s7 = inlined_call_operand.vmem [shape: bf16[32,128], index: 7, kind: input, shape index: {}]   ;;  %s1324_s8 = inlined_call_operand.vmem [shape: bf16[32,128], index: 8, kind: input, shape index: {}]   ;;  %s1325_s9 = inlined_call_operand.vmem [shape: f32[1,128], index: 9, kind: input, shape index: {}]   ;;  %s1326_s10 = inlined_call_operand.vmem [shape: bf16[2,25,128], index: 10, kind: output, shape index: {0}]   ;;  %s1327_s11 = inlined_call_operand.vmem [shape: f32[2,1,128], index: 11, kind: output, shape index: {1}]   ;;  %s1328_s12 = inlined_call_operand.vmem [shape: f32[2,1,128], index: 12, kind: output, shape index: {2}]  }
   0x1 LB: > { %s1013_s22 = sadd.s32 4294967295, %s1140_s21   ;;  %p1017_p0 = scmp.ge.s32.totalorder %s1140_s21, 1  ;;  %s1140_s21 = sphi %s1208_s21, %s23_s21  }
   0x2   : > { %p367_p1 = scmp.lt.s32.totalorder %s1140_s21, 3 }
   0x4   : > { %p368_p2 = pnand %p1017_p0, %p367_p1 }
   0x5   : > { %p415_p3 = scmp.lt.s32.totalorder (!%p368_p2), %s1013_s22, 1 }
   0x6   : > { %371 = sbr.rel (%p368_p2) target bundleno = 389 (0x185), region = 60 }
   0xb   : > { %v468_v0 = vld [vmem:[%s1317_s1 + $0x10] sm:$0xff]  ;;  %v466_v1 = vld [vmem:[%s1317_s1] sm:$0xff]  ;;  %v1142_v2 = vmov 0   ;;  %v469_v3 = vld [vmem:[%s1317_s1 + $0x18] sm:$0x7f]  ;;  %s1330_s22 = smov (!%p415_p3, %s1013_s22), 1 }
   0xc   : > { %1125 = vset.pattern.permute.xlu1 %v1142_v2  ;;  %1124 = vset.pattern.permute.xlu0 %v1142_v2  ;;  %v467_v4 = vld [vmem:[%s1317_s1 + $0x8] sm:$0xff]  ;;  %v1127_v6 = vld [vmem:[%s1321_s5] sm:$0xff]   ;;  %v856_v12 = vld [vmem:[%s1318_s2 + $0x18] sm:$0x1]  ;;  %s1047_s17 = sshll.u32 %s1330_s22, 4  ;;  %vm532_vm0 = vcmask 261120   ;;  %s430_s25 = scalar_lea.vmem %s1328_s12, %s1330_s22 }
   0xd   : > { %482 = vperm.xlu1 %1125, %v468_v0   ;;  %472 = vperm.xlu0 %1124, %v466_v1   ;;  %v1126_v5 = vld [vmem:[%s1321_s5 + $0x8] sm:$0xff]   ;;  %v853_v8 = vld [vmem:[%s1318_s2] sm:$0xff]  ;;  %v855_v13 = vld [vmem:[%s1318_s2 + $0x10] sm:$0xff]  ;;  %s419_s20 = scalar_lea.vmem %s1316_s0, %s1047_s17  ;;  %vm742_vm1 = vcmask 1044480   ;;  %vm504_vm2 = vsmask.f32 7424  ;;  %s424_s18 = scalar_lea.vmem %s1326_s10, %s1047_s17 }
   0xe   : > { %v854_v7 = vld [vmem:[%s1318_s2 + $0x8] sm:$0xff]  ;;  %1091 = vmatprep.subr.bf16.mxu1 %v1126_v5  ;;  %v1130_v11 = vld [vmem:[%s1322_s6] sm:$0xff]   ;;  %vm657_vm3 = vsmask.f32 5376  ;;  %vm847_vm4 = vcmask 1040384  }
   0xf   : > { %v1128_v9 = vld [vmem:[%s1322_s6 + $0x8] sm:$0xff]   ;;  %1092 = vmatpush3.bf16.msra.mxu1 %v1126_v5  ;;  %v1054_v16 = vld [vmem:[%s419_s20] sm:$0xff]   ;;  %vm848_vm5 = vsmask.f32 256 }
  0x10   : > { %v1129_v10 = vld [vmem:[%s1324_s8 + $0x8] sm:$0xff]   ;;  %1093 = vmatprep.subr.bf16.mxu1 %v1127_v6  ;;  %1083 = vmatprep.subr.bf16.mxu0 %v1128_v9  ;;  %v1055_v18 = vunpack.c.l.bf16 %v1054_v16  ;;  %v1056_v20 = vunpack.c.h.bf16 %v1054_v16  ;;  %v1022_v21 = vld [vmem:[%s1319_s3] ss:$0 sm:$0xff]  ;;  %vm849_vm6 = vmand %vm847_vm4, %vm848_vm5 }
  0x11   : > { %487 = vperm.xlu1 %1125, %v469_v3   ;;  %477 = vperm.xlu0 %1124, %v467_v4   ;;  %v1258_v14 = vld [vmem:[%s1323_s7 + $0x8] sm:$0xff]   ;;  %v1023_v26 = vld [vmem:[%s1320_s4] ss:$0 sm:$0xff] }
  0x12   : > { %1084 = vmatpush3.bf16.msra.mxu0 %v1128_v9  ;;  %v1066_v15 = vld [vmem:[%s419_s20 + $0x8] sm:$0xff]   ;;  %v447_v23 = vmul.f32 %v1055_v18, %v1022_v21  ;;  %v448_v25 = vmul.f32 %v1056_v20, %v1022_v21  ;;  %v1131_v45 = vld [vmem:[%s1324_s8] sm:$0xff]   ;;  %s427_s20 = scalar_lea.vmem %s1327_s11, %s1330_s22 }
  0x13   : > { %1094 = vmatpush3.bf16.msra.mxu1 %v1127_v6  ;;  %1085 = vmatprep.subr.bf16.mxu0 %v1130_v11  ;;  %v1059_v17 = vunpack.c.l.bf16 %v1066_v15  ;;  %v1060_v19 = vunpack.c.h.bf16 %v1066_v15  ;;  %v1133_v0 = vld [vmem:[%s1323_s7] sm:$0xff]  }
  0x14   : > { %1107 = vmatprep.subr.bf16.mxu1 %v1129_v10  ;;  %v458_v28 = vadd.f32 %v1023_v26, %v447_v23  ;;  %v459_v30 = vadd.f32 %v1023_v26, %v448_v25  ;;  %v1040_v16 = vld [vmem:[%s1325_s9] ss:$0 sm:$0xff] }
  0x15   : > { %864 = vperm.xlu1 %1125, %v854_v7   ;;  %859 = vperm.xlu0 %1124, %v853_v8   ;;  %v449_v22 = vmul.f32 %v1059_v17, %v1022_v21  ;;  %v450_v24 = vmul.f32 %v1060_v19, %v1022_v21 }
  0x16   : > { %1086 = vmatpush3.bf16.msra.mxu0 %v1130_v11  ;;  %v462_v34 = vmax.f32 %v458_v28, 0.0  ;;  %v463_v36 = vmax.f32 %v459_v30, 0.0 }
  0x17   : > { %1099 = vmatprep.subr.bf16.mxu0 %v1258_v14  ;;  %v460_v27 = vadd.f32 %v1023_v26, %v449_v22  ;;  %v461_v29 = vadd.f32 %v1023_v26, %v450_v24 }
  0x19   : > { %874 = vperm.xlu1 %1125, %v856_v12   ;;  %869 = vperm.xlu0 %1124, %v855_v13   ;;  %v464_v33 = vmax.f32 %v460_v27, 0.0  ;;  %v465_v35 = vmax.f32 %v461_v29, 0.0 }
  0x88   : > { %v483_v31 = vpop.permute.xlu1 %482  ;;  %v473_v32 = vpop.permute.xlu0 %472 }
  0x89   : > { %v492_v39 = vmul.f32 %v483_v31, %v464_v33  ;;  %v490_v40 = vmul.f32 %v473_v32, %v462_v34 }
  0x8c   : > { %v488_v37 = vpop.permute.xlu1 %487  ;;  %v478_v38 = vpop.permute.xlu0 %477 }
  0x8d   : > { %v493_v41 = vmul.f32 %v488_v37, %v465_v35  ;;  %v491_v42 = vmul.f32 %v478_v38, %v463_v36  ;;  %v850_v36 = vld [vmem:[%s424_s18 + $0xc] sm:$0x1] }
  0x8f   : > { %v495_v43 = vpack.c.bf16 %v493_v41, %v492_v39  ;;  %v494_v44 = vpack.c.bf16 %v491_v42, %v490_v40 }
  0x90   : > { %v865_v26 = vpop.permute.xlu1 %864  ;;  %v860_v29 = vpop.permute.xlu0 %859 }
  0x91   : > { %1095 = vmatprep.mubr.msk.bf16.mxu1 %vm532_vm0, %v494_v44  ;;  %v743_v46 = vrot.slane %v494_v44, 3  ;;  %v744_v47 = vrot.slane %v495_v43, 3  ;;  %v506_v48 = vshrl.u32 %v494_v44, 16  ;;  %v508_v49 = vshll.u32 %v494_v44, 16 }
  0x92   : > { %1096 = vmatmul.mubr.msk.bf16.vlgmr.msra.gmra.mxu1 %vm532_vm0, %v495_v43  ;;  %v513_v50 = vshll.u32 %v495_v43, 16  ;;  %v517_v51 = vshrl.u32 %v495_v43, 16 }
  0x93   : > { %1108 = vmatpush3.bf16.msra.mxu1 %v1129_v10  ;;  %v745_v52 = vsel %vm742_vm1, %v743_v46, %v744_v47  ;;  %v510_v53 = vrot.slane %v508_v49, 1  ;;  %v658_v54 = vrot.slane %v506_v48, 2  ;;  %v659_v55 = vrot.slane %v508_v49, 3 }
  0x94   : > { %1111 = vmatprep.mubr.msk.bf16.mxu1 %vm532_vm0, %v745_v52  ;;  %1109 = vmatprep.subr.bf16.mxu1 %v1131_v45  ;;  %v515_v56 = vrot.slane %v513_v50, 1  ;;  %v662_v57 = vrot.slane %v513_v50, 3  ;;  %v661_v58 = vrot.slane %v517_v51, 2  ;;  %v875_v39 = vpop.permute.xlu1 %874  ;;  %v870_v42 = vpop.permute.xlu0 %869 }
  0x95   : > { %v511_v59 = vor.u32 %v510_v53, %v506_v48  ;;  %v660_v60 = vor.u32 %v659_v55, %v658_v54 }
  0x96   : > { %v663_v61 = vor.u32 %v662_v57, %v661_v58  ;;  %v519_v63 = vor.u32 %v517_v51, %v515_v56 }
  0x97   : > { %1110 = vmatpush3.bf16.msra.mxu1 %v1131_v45  ;;  %v516_v62 = vsel %vm504_vm2, %v511_v59, %v515_v56 }
  0x98   : > { %1087 = vmatprep.mubr.msk.bf16.mxu0 %vm532_vm0, %v516_v62  ;;  %v664_v1 = vsel %vm657_vm3, %v660_v60, %v663_v61 }
  0x99   : > { %1088 = vmatmul.mubr.msk.bf16.vlgmr.msra.gmra.mxu0 %vm532_vm0, %v519_v63 }
  0x9a   : > { %1100 = vmatpush3.bf16.msra.mxu0 %v1258_v14  ;;  %1103 = vmatprep.mubr.msk.bf16.mxu0 %vm532_vm0, %v664_v1 }
  0x9b   : > { %1112 = vmatmul.mubr.msk.bf16.vlgmr.msra.gmra.mxu1 %vm532_vm0, %v744_v47  ;;  %1101 = vmatprep.subr.bf16.mxu0 %v1133_v0 }
  0x9e   : > { %1102 = vmatpush3.bf16.msra.mxu0 %v1133_v0 }
  0xa1   : > { %1104 = vmatmul.mubr.msk.bf16.vlgmr.msra.gmra.mxu0 %vm532_vm0, %v663_v61 }
 0x152   : > { %v1097_v2 = vpop.f32.mrf.mxu1 }
 0x154   : > { %v638_v3 = vpop.f32.mrf.mxu1 }
 0x156   : > { %v1098_v4 = vpop.f32.mrf.mxu1 }
 0x158   : > { %v641_v6 = vpop.f32.mrf.mxu1 }
 0x159   : > { %v1089_v5 = vpop.f32.mrf.mxu0 }
 0x15a   : > { %v647_v11 = vadd.f32 %v1097_v2, %v1089_v5 }
 0x15b   : > { %v573_v7 = vpop.f32.mrf.mxu0  ;;  %v1113_v9 = vpop.f32.mrf.mxu1 }
 0x15c   : > { %v639_v13 = vadd.f32 %v638_v3, %v573_v7 }
 0x15d   : > { %v1090_v8 = vpop.f32.mrf.mxu0  ;;  %v798_v14 = vpop.f32.mrf.mxu1 }
 0x15e   : > { %v650_v18 = vadd.f32 %v1098_v4, %v1090_v8 }
 0x15f   : > { %v576_v10 = vpop.f32.mrf.mxu0  ;;  %v1114_v22 = vpop.f32.mrf.mxu1 }
 0x160   : > { %v642_v27 = vadd.f32 %v641_v6, %v576_v10 }
 0x161   : > { %v1105_v12 = vpop.f32.mrf.mxu0  ;;  %v801_v34 = vpop.f32.mrf.mxu1 }
 0x162   : > { %v734_v15 = vadd.f32 %v1105_v12, %v647_v11 }
 0x163   : > { %v717_v17 = vpop.f32.mrf.mxu0 }
 0x164   : > { %v815_v19 = vadd.f32 %v1113_v9, %v734_v15  ;;  %v732_v20 = vadd.f32 %v717_v17, %v639_v13 }
 0x165   : > { %v1106_v21 = vpop.f32.mrf.mxu0 }
 0x166   : > { %v826_v23 = vadd.f32 %v1040_v16, %v815_v19  ;;  %v813_v24 = vadd.f32 %v798_v14, %v732_v20  ;;  %v735_v25 = vadd.f32 %v1106_v21, %v650_v18 }
 0x167   : > { %v720_v28 = vpop.f32.mrf.mxu0 }
 0x168   : > { %v1051_v30 = vpack.c.bf16 %v826_v23, %v826_v23  ;;  %v816_v31 = vadd.f32 %v1114_v22, %v735_v25  ;;  %v824_v32 = vadd.f32 %v1040_v16, %v813_v24  ;;  %v733_v33 = vadd.f32 %v720_v28, %v642_v27 }
 0x169   : > { %v879_v45 = vmul.f32 %v870_v42, %v826_v23 }
 0x16a   : > { %846 = vst [vmem:[%s424_s18 + $0x8] sm:$0xf] %v1051_v30  ;;  %v827_v35 = vadd.f32 %v1040_v16, %v816_v31  ;;  %v814_v37 = vadd.f32 %v801_v34, %v733_v33  ;;  %v877_v40 = vmul.f32 %v860_v29, %v824_v32 }
 0x16b   : > { %v895_v52 = vmul.f32 %v879_v45, %v826_v23 }
 0x16c   : > { %v1052_v38 = vpack.c.bf16 %v827_v35, %v827_v35  ;;  %v825_v41 = vadd.f32 %v1040_v16, %v814_v37  ;;  %v880_v44 = vmul.f32 %v875_v39, %v827_v35  ;;  %v893_v48 = vmul.f32 %v877_v40, %v824_v32 }
 0x16e   : > { %v851_v43 = vsel %vm849_vm6, %v1052_v38, %v850_v36  ;;  %v1064_v46 = vpack.c.bf16 %v825_v41, %v824_v32  ;;  %v878_v47 = vmul.f32 %v865_v26, %v825_v41  ;;  %v896_v51 = vmul.f32 %v880_v44, %v827_v35 }
 0x16f   : > { %852 = vst [vmem:[%s424_s18 + $0xc] sm:$0x1] %v851_v43  ;;  %v884_v55 = vsel %vm847_vm4, %v880_v44, 0.0 }
 0x170   : > { %1065 = vst [vmem:[%s424_s18] sm:$0xff] %v1064_v46   ;;  %v881_v49 = vadd.f32 %v878_v47, %v877_v40  ;;  %v894_v50 = vmul.f32 %v878_v47, %v825_v41  ;;  %v899_v58 = vsel %vm847_vm4, %v896_v51, 0.0 }
 0x172   : > { %v882_v53 = vadd.f32 %v881_v49, %v879_v45  ;;  %v897_v54 = vadd.f32 %v894_v50, %v893_v48 }
 0x174   : > { %v885_v56 = vadd.f32 %v884_v55, %v882_v53  ;;  %v898_v57 = vadd.f32 %v897_v54, %v895_v52 }
 0x176   : > { %v886_v59 = vrot.slane %v885_v56, 4  ;;  %v900_v60 = vadd.f32 %v899_v58, %v898_v57 }
 0x178   : > { %v887_v61 = vadd.f32 %v886_v59, %v885_v56  ;;  %v901_v62 = vrot.slane %v900_v60, 4 }
 0x17a   : > { %v888_v63 = vrot.slane %v887_v61, 2  ;;  %v902_v0 = vadd.f32 %v901_v62, %v900_v60 }
 0x17c   : > { %v889_v1 = vadd.f32 %v888_v63, %v887_v61  ;;  %v903_v2 = vrot.slane %v902_v0, 2 }
 0x17e   : > { %v890_v3 = vrot.slane %v889_v1, 1  ;;  %v904_v4 = vadd.f32 %v903_v2, %v902_v0 }
 0x180   : > { %v891_v5 = vadd.f32 %v890_v3, %v889_v1  ;;  %v905_v6 = vrot.slane %v904_v4, 1 }
 0x182   : > { %892 = vst [vmem:[%s427_s20] sm:$0x1] %v891_v5  ;;  %v906_v7 = vadd.f32 %v905_v6, %v904_v4 }
 0x184   : > { %907 = vst [vmem:[%s430_s25] sm:$0x1] %v906_v7 }
 0x185 PF: > { %s23_s21 = sadd.s32 1, %s1140_s21  }
 0x186   : > { %p20_p4 = scmp.ge.s32.totalorder %s23_s21, 4  }
 0x188   :  { %22 = sbr.rel (!%p20_p4) target bundleno = 1 (0x1), region = 114 }

// kernel: _lambda_.8
= control target key start
LH: loop header
LB: loop body
LE: loop exit
PB: predicated region body
PF: predicated region fallthrough
CT: control target
= control target key end

     0   :  { %s1753_s21 = smov 0   ;;  %s2018_s0 = inlined_call_operand.vmem [shape: bf16[2,91,16], index: 0, kind: input, shape index: {}]   ;;  %s2019_s1 = inlined_call_operand.vmem [shape: f32[91,1], index: 1, kind: input, shape index: {}]   ;;  %s2020_s2 = inlined_call_operand.vmem [shape: f32[81,1], index: 2, kind: input, shape index: {}]   ;;  %s2021_s3 = inlined_call_operand.vmem [shape: f32[1,16], index: 3, kind: input, shape index: {}]   ;;  %s2022_s4 = inlined_call_operand.vmem [shape: f32[1,16], index: 4, kind: input, shape index: {}]   ;;  %s2023_s5 = inlined_call_operand.vmem [shape: bf16[16,128], index: 5, kind: input, shape index: {}]   ;;  %s2024_s6 = inlined_call_operand.vmem [shape: bf16[16,128], index: 6, kind: input, shape index: {}]   ;;  %s2025_s7 = inlined_call_operand.vmem [shape: bf16[16,128], index: 7, kind: input, shape index: {}]   ;;  %s2026_s8 = inlined_call_operand.vmem [shape: bf16[16,128], index: 8, kind: input, shape index: {}]   ;;  %s2027_s9 = inlined_call_operand.vmem [shape: f32[1,128], index: 9, kind: input, shape index: {}]   ;;  %s2028_s10 = inlined_call_operand.vmem [shape: bf16[2,81,128], index: 10, kind: output, shape index: {0}]   ;;  %s2029_s11 = inlined_call_operand.vmem [shape: f32[2,1,128], index: 11, kind: output, shape index: {1}]   ;;  %s2030_s12 = inlined_call_operand.vmem [shape: f32[2,1,128], index: 12, kind: output, shape index: {2}]  }
   0x1 LB: > { %s1463_s22 = sadd.s32 4294967295, %s1685_s21   ;;  %p1467_p0 = scmp.ge.s32.totalorder %s1685_s21, 1  ;;  %s1685_s21 = sphi %s1753_s21, %s23_s21  }
   0x2   : > { %p367_p1 = scmp.lt.s32.totalorder %s1685_s21, 3 }
   0x4   : > { %p368_p2 = pnand %p1467_p0, %p367_p1 }
   0x5   : > { %p415_p3 = scmp.lt.s32.totalorder (!%p368_p2), %s1463_s22, 1 }
   0x6   : > { %371 = sbr.rel (%p368_p2) target bundleno = 420 (0x1a4), region = 60 }
   0xb   : > { %v508_v0 = vld [vmem:[%s2019_s1 + $0x10] sm:$0xff]  ;;  %v506_v1 = vld [vmem:[%s2019_s1] sm:$0xff]  ;;  %v1687_v2 = vmov 0   ;;  %v509_v3 = vld [vmem:[%s2019_s1 + $0x18] sm:$0xff]  ;;  %s2032_s22 = smov (!%p415_p3, %s1463_s22), 1  ;;  %vm659_vm0 = vcmask 130048  }
   0xc   : > { %1674 = vset.pattern.permute.xlu1 %v1687_v2  ;;  %1673 = vset.pattern.permute.xlu0 %v1687_v2  ;;  %v507_v4 = vld [vmem:[%s2019_s1 + $0x8] sm:$0xff]  ;;  %v510_v6 = vld [vmem:[%s2019_s1 + $0x20] sm:$0xff]  ;;  %v513_v8 = vld [vmem:[%s2019_s1 + $0x38] sm:$0xff]  ;;  %s1662_s29 = smul.u32 48, %s2032_s22  ;;  %vm606_vm1 = vsmask.f32 7424 }
   0xd   : > { %530 = vperm.xlu1 %1674, %v508_v0   ;;  %520 = vperm.xlu0 %1673, %v506_v1   ;;  %v511_v5 = vld [vmem:[%s2019_s1 + $0x28] sm:$0xff]  ;;  %v1675_v7 = vld [vmem:[%s2023_s5] sm:$0xff]   ;;  %v512_v9 = vld [vmem:[%s2019_s1 + $0x30] sm:$0xff]  ;;  %vm1027_vm2 = vcmask 1046528   ;;  %s1663_s23 = smul.u32 44, %s2032_s22  ;;  %vm1227_vm3 = vcmask 1040384  }
   0xe   : > { %1620 = vmatprep.subr.bf16.mxu1 %v1675_v7  ;;  %v1676_v10 = vld [vmem:[%s2024_s6] sm:$0xff]   ;;  %v515_v11 = vld [vmem:[%s2019_s1 + $0x48] sm:$0xff]  ;;  %v517_v13 = vld [vmem:[%s2019_s1 + $0x58] sm:$0x7]  ;;  %s1858_s14 = scalar_lea.vmem %s2018_s0, %s1662_s29  ;;  %vm1228_vm4 = vsmask.f32 256  ;;  %s427_s29 = scalar_lea.vmem %s2029_s11, %s2032_s22 }
   0xf   : > { %1621 = vmatpush3.bf16.msra.mxu1 %v1675_v7  ;;  %1606 = vmatprep.subr.bf16.mxu0 %v1676_v10  ;;  %v514_v12 = vld [vmem:[%s2019_s1 + $0x40] sm:$0xff]  ;;  %v516_v14 = vld [vmem:[%s2019_s1 + $0x50] sm:$0xff]  ;;  %v1234_v17 = vld [vmem:[%s2020_s2 + $0x8] sm:$0xff]  ;;  %s1977_s26 = scalar_lea.vmem %s2028_s10, %s1663_s23 }
  0x10   : > { %1607 = vmatpush3.bf16.msra.mxu0 %v1676_v10  ;;  %v1806_v15 = vld [vmem:[%s2025_s7] sm:$0xff]   ;;  %v1236_v19 = vld [vmem:[%s2020_s2 + $0x18] sm:$0xff]  ;;  %v1235_v20 = vld [vmem:[%s2020_s2 + $0x10] sm:$0xff] }
  0x11   : > { %535 = vperm.xlu1 %1674, %v509_v3   ;;  %525 = vperm.xlu0 %1673, %v507_v4   ;;  %v1811_v16 = vld [vmem:[%s2026_s8] sm:$0xff]   ;;  %v1238_v21 = vld [vmem:[%s2020_s2 + $0x28] sm:$0xff]  ;;  %v1240_v23 = vld [vmem:[%s2020_s2 + $0x38] sm:$0xff] }
  0x12   : > { %v1233_v18 = vld [vmem:[%s2020_s2] sm:$0xff]  ;;  %1634 = vmatprep.subr.bf16.mxu0 %v1806_v15  ;;  %1648 = vmatprep.subr.bf16.mxu1 %v1811_v16  ;;  %v1239_v24 = vld [vmem:[%s2020_s2 + $0x30] sm:$0xff]  ;;  %v1242_v25 = vld [vmem:[%s2020_s2 + $0x48] sm:$0xff] }
  0x13   : > { %v1237_v22 = vld [vmem:[%s2020_s2 + $0x20] sm:$0xff]  ;;  %v1243_v27 = vld [vmem:[%s2020_s2 + $0x50] sm:$0x1]  ;;  %v1570_v28 = vld [vmem:[%s1858_s14 + $0x8] sm:$0xff]  }
  0x14   : > { %v1241_v26 = vld [vmem:[%s2020_s2 + $0x40] sm:$0xff]  ;;  %v1531_v30 = vunpack.c.l.bf16 %v1570_v28  ;;  %v1532_v32 = vunpack.c.h.bf16 %v1570_v28  ;;  %v1571_v35 = vld [vmem:[%s1858_s14 + $0x10] sm:$0xff]   ;;  %v1572_v40 = vld [vmem:[%s1858_s14 + $0x18] sm:$0xff]  }
  0x15   : > { %545 = vperm.xlu1 %1674, %v511_v5   ;;  %540 = vperm.xlu0 %1673, %v510_v6   ;;  %v1526_v29 = vld [vmem:[%s1858_s14] sm:$0xff]   ;;  %v1536_v42 = vunpack.c.h.bf16 %v1571_v35  ;;  %v1535_v43 = vunpack.c.l.bf16 %v1571_v35  ;;  %v1540_v44 = vunpack.c.h.bf16 %v1572_v40  ;;  %v1539_v45 = vunpack.c.l.bf16 %v1572_v40  ;;  %v442_v61 = vld [vmem:[%s1858_s14 + $0x28] sm:$0xf]  ;;  %vm1229_vm5 = vmand %vm1227_vm3, %vm1228_vm4 }
  0x16   : > { %v1527_v31 = vunpack.c.l.bf16 %v1526_v29  ;;  %v1528_v33 = vunpack.c.h.bf16 %v1526_v29  ;;  %v1865_v34 = vld [vmem:[%s2021_s3] ss:$0 sm:$0xff]  ;;  %v454_v6 = vunpack.c.l.bf16 %v442_v61 }
  0x17   : > { %v465_v36 = vmul.f32 %v1531_v30, %v1865_v34  ;;  %v466_v38 = vmul.f32 %v1532_v32, %v1865_v34  ;;  %v1876_v41 = vld [vmem:[%s2022_s4] ss:$0 sm:$0xff]  ;;  %v468_v50 = vmul.f32 %v1536_v42, %v1865_v34  ;;  %v467_v51 = vmul.f32 %v1535_v43, %v1865_v34  ;;  %v443_v32 = vld [vmem:[%s1858_s14 + $0x2c] sm:$0x3] }
  0x18   : > { %v463_v37 = vmul.f32 %v1527_v31, %v1865_v34  ;;  %v464_v39 = vmul.f32 %v1528_v33, %v1865_v34  ;;  %v1573_v52 = vld [vmem:[%s1858_s14 + $0x20] sm:$0xff]   ;;  %v470_v55 = vmul.f32 %v1540_v44, %v1865_v34  ;;  %v469_v56 = vmul.f32 %v1539_v45, %v1865_v34  ;;  %s430_s14 = scalar_lea.vmem %s2030_s12, %s2032_s22 }
  0x19   : > { %555 = vperm.xlu1 %1674, %v513_v8   ;;  %550 = vperm.xlu0 %1673, %v512_v9   ;;  %v484_v46 = vadd.f32 %v1876_v41, %v465_v36  ;;  %v485_v48 = vadd.f32 %v1876_v41, %v466_v38  ;;  %v487_v62 = vadd.f32 %v1876_v41, %v468_v50  ;;  %v1544_v0 = vunpack.c.h.bf16 %v1573_v52 }
  0x1a   : > { %v482_v47 = vadd.f32 %v1876_v41, %v463_v37  ;;  %v483_v49 = vadd.f32 %v1876_v41, %v464_v39  ;;  %v486_v63 = vadd.f32 %v1876_v41, %v467_v51  ;;  %v1543_v1 = vunpack.c.l.bf16 %v1573_v52 }
  0x1b   : > { %v496_v57 = vmax.f32 %v484_v46, 0.0  ;;  %v497_v59 = vmax.f32 %v485_v48, 0.0  ;;  %v489_v4 = vadd.f32 %v1876_v41, %v470_v55  ;;  %v488_v5 = vadd.f32 %v1876_v41, %v469_v56 }
  0x1c   : > { %v494_v58 = vmax.f32 %v482_v47, 0.0  ;;  %v495_v60 = vmax.f32 %v483_v49, 0.0  ;;  %v455_v46 = vunpack.c.l.bf16 %v443_v32 }
  0x1d   : > { %565 = vperm.xlu1 %1674, %v515_v11   ;;  %560 = vperm.xlu0 %1673, %v514_v12   ;;  %v499_v11 = vmax.f32 %v487_v62, 0.0  ;;  %v498_v12 = vmax.f32 %v486_v63, 0.0 }
  0x21   : > { %575 = vperm.xlu1 %1674, %v517_v13   ;;  %570 = vperm.xlu0 %1673, %v516_v14   ;;  %v472_v13 = vmul.f32 %v1544_v0, %v1865_v34  ;;  %v471_v14 = vmul.f32 %v1543_v1, %v1865_v34 }
  0x23   : > { %v490_v28 = vadd.f32 %v1876_v41, %v471_v14 }
  0x25   : > { %1251 = vperm.xlu1 %1674, %v1234_v17   ;;  %1246 = vperm.xlu0 %1673, %v1233_v18   ;;  %v502_v45 = vmax.f32 %v490_v28, 0.0 }
  0x29   : > { %1261 = vperm.xlu1 %1674, %v1236_v19   ;;  %1256 = vperm.xlu0 %1673, %v1235_v20  }
  0x2d   : > { %1271 = vperm.xlu1 %1674, %v1238_v21   ;;  %1266 = vperm.xlu0 %1673, %v1237_v22   ;;  %v473_v21 = vmul.f32 %v1865_v34, %v454_v6 }
  0x2f   : > { %v492_v37 = vadd.f32 %v1876_v41, %v473_v21 }
  0x31   : > { %1281 = vperm.xlu1 %1674, %v1240_v23   ;;  %1276 = vperm.xlu0 %1673, %v1239_v24   ;;  %v501_v23 = vmax.f32 %v489_v4, 0.0  ;;  %v500_v24 = vmax.f32 %v488_v5, 0.0  ;;  %v504_v55 = vmax.f32 %v492_v37, 0.0 }
  0x35   : > { %1291 = vperm.xlu1 %1674, %v1242_v25   ;;  %1286 = vperm.xlu0 %1673, %v1241_v26  }
  0x39   : > { %1296 = vperm.xlu0 %1673, %v1243_v27   ;;  %v491_v27 = vadd.f32 %v1876_v41, %v472_v13 }
  0x3b   : > { %v503_v44 = vmax.f32 %v491_v27, 0.0 }
  0x88   : > { %v531_v53 = vpop.permute.xlu1 %530  ;;  %v521_v54 = vpop.permute.xlu0 %520 }
  0x89   : > { %v580_v7 = vmul.f32 %v531_v53, %v496_v57  ;;  %v578_v8 = vmul.f32 %v521_v54, %v494_v58 }
  0x8c   : > { %v536_v2 = vpop.permute.xlu1 %535  ;;  %v526_v3 = vpop.permute.xlu0 %525 }
  0x8d   : > { %v581_v9 = vmul.f32 %v536_v2, %v497_v59  ;;  %v579_v10 = vmul.f32 %v526_v3, %v495_v60  ;;  %v474_v59 = vmul.f32 %v1865_v34, %v455_v46 }
  0x8f   : > { %v591_v17 = vpack.c.bf16 %v581_v9, %v580_v7  ;;  %v590_v18 = vpack.c.bf16 %v579_v10, %v578_v8  ;;  %v596_v63 = vpack.c.bf16 %v580_v7, %v579_v10  ;;  %v493_v6 = vadd.f32 %v1876_v41, %v474_v59 }
  0x90   : > { %v546_v19 = vpop.permute.xlu1 %545  ;;  %v541_v20 = vpop.permute.xlu0 %540 }
  0x91   : > { %v610_v22 = vshll.u32 %v590_v18, 16  ;;  %1622 = vmatprep.mubr.msk.bf16.mxu1 %vm659_vm0, %v590_v18  ;;  %v583_v25 = vmul.f32 %v546_v19, %v499_v11  ;;  %v582_v26 = vmul.f32 %v541_v20, %v498_v12  ;;  %v608_v29 = vshrl.u32 %v590_v18, 16 }
  0x92   : > { %1623 = vmatmul.mubr.msk.bf16.vlgmr.msra.gmra.mxu1 %vm659_vm0, %v591_v17  ;;  %v615_v31 = vshll.u32 %v591_v17, 16  ;;  %v619_v47 = vshrl.u32 %v591_v17, 16  ;;  %v861_v8 = vshll.u32 %v596_v63, 16  ;;  %v505_v17 = vmax.f32 %v493_v6, 0.0 }
  0x93   : > { %v612_v30 = vrot.slane %v610_v22, 1  ;;  %1649 = vmatpush3.bf16.msra.mxu1 %v1811_v16  ;;  %v592_v33 = vpack.c.bf16 %v583_v25, %v582_v26  ;;  %v1905_v56 = vpack.c.bf16 %v582_v26, %v581_v9  ;;  %v1028_v9 = vrot.slane %v596_v63, 1 }
  0x94   : > { %v556_v35 = vpop.permute.xlu1 %555  ;;  %v551_v36 = vpop.permute.xlu0 %550  ;;  %v617_v42 = vrot.slane %v615_v31, 1  ;;  %v859_v28 = vshrl.u32 %v596_v63, 16 }
  0x95   : > { %v585_v38 = vmul.f32 %v556_v35, %v501_v23  ;;  %v584_v39 = vmul.f32 %v551_v36, %v500_v24  ;;  %v613_v40 = vor.u32 %v612_v30, %v608_v29  ;;  %v623_v43 = vshll.u32 %v592_v33, 16  ;;  %1626 = vmatprep.mubr.msk.bf16.mxu1 %vm659_vm0, %v592_v33 }
  0x96   : > { %v627_v52 = vshrl.u32 %v592_v33, 16  ;;  %v621_v54 = vor.u32 %v619_v47, %v617_v42  ;;  %v1029_v4 = vrot.slane %v1905_v56, 1  ;;  %v866_v22 = vshll.u32 %v1905_v56, 16 }
  0x97   : > { %v593_v48 = vpack.c.bf16 %v585_v38, %v584_v39  ;;  %v618_v16 = vsel %vm606_vm1, %v613_v40, %v617_v42  ;;  %v625_v49 = vrot.slane %v623_v43, 1  ;;  %v598_v11 = vpack.c.bf16 %v584_v39, %v583_v25 }
  0x98   : > { %v566_v50 = vpop.permute.xlu1 %565  ;;  %v561_v51 = vpop.permute.xlu0 %560  ;;  %1608 = vmatprep.mubr.msk.bf16.mxu0 %vm659_vm0, %v618_v16  ;;  %v1030_v41 = vsel %vm1027_vm2, %v1028_v9, %v1029_v4  ;;  %v863_v23 = vrot.slane %v861_v8, 1  ;;  %v868_v29 = vrot.slane %v866_v22, 1 }
  0x99   : > { %v631_v53 = vshll.u32 %v593_v48, 16  ;;  %v587_v57 = vmul.f32 %v566_v50, %v503_v44  ;;  %v586_v58 = vmul.f32 %v561_v51, %v502_v45  ;;  %v626_v61 = vsel %vm606_vm1, %v621_v54, %v625_v49 }
  0x9a   : > { %1627 = vmatmul.mubr.msk.bf16.gmra.mxu1 %vm659_vm0, %v593_v48  ;;  %v629_v62 = vor.u32 %v627_v52, %v625_v49  ;;  %1609 = vmatmul.mubr.msk.bf16.vlgmr.msra.gmra.mxu0 %vm659_vm0, %v626_v61  ;;  %v635_v34 = vshrl.u32 %v593_v48, 16  ;;  %v1031_v24 = vrot.slane %v598_v11, 1  ;;  %v864_v32 = vor.u32 %v863_v23, %v859_v28 }
  0x9b   : > { %v633_v60 = vrot.slane %v631_v53, 1  ;;  %v594_v0 = vpack.c.bf16 %v587_v57, %v586_v58  ;;  %1635 = vmatpush3.bf16.msra.mxu0 %v1806_v15  ;;  %v599_v14 = vpack.c.bf16 %v586_v58, %v585_v38  ;;  %v874_v33 = vshll.u32 %v598_v11, 16 }
  0x9c   : > { %v571_v1 = vpop.permute.xlu0 %570  ;;  %v576_v18 = vpop.permute.xlu1 %575  ;;  %v1032_v31 = vsel %vm1027_vm2, %v1029_v4, %v1031_v24  ;;  %v869_v39 = vsel %vm606_vm1, %v864_v32, %v868_v29  ;;  %v870_v44 = vshrl.u32 %v1905_v56, 16  ;;  %v878_v45 = vshrl.u32 %v598_v11, 16 }
  0x9d   : > { %v588_v2 = vmul.f32 %v571_v1, %v504_v55  ;;  %v634_v3 = vsel %vm606_vm1, %v629_v62, %v633_v60  ;;  %v639_v5 = vshll.u32 %v594_v0, 16  ;;  %1630 = vmatprep.mubr.msk.bf16.mxu1 %vm659_vm0, %v594_v0  ;;  %v643_v15 = vshrl.u32 %v594_v0, 16 }
  0x9e   : > { %1612 = vmatprep.mubr.msk.bf16.mxu0 %vm659_vm0, %v634_v3  ;;  %v637_v13 = vor.u32 %v635_v34, %v633_v60  ;;  %v1033_v26 = vrot.slane %v599_v14, 1  ;;  %v589_v27 = vmul.f32 %v576_v18, %v505_v17  ;;  %v882_v38 = vshll.u32 %v599_v14, 16 }
  0x9f   : > { %v595_v7 = vpack.c.bf16 %v588_v2, %v588_v2  ;;  %v641_v10 = vrot.slane %v639_v5, 1  ;;  %v600_v30 = vpack.c.bf16 %v588_v2, %v587_v57  ;;  %v876_v42 = vrot.slane %v874_v33, 1 }
  0xa0   : > { %v601_v35 = vpack.c.bf16 %v589_v27, %v589_v27  ;;  %v1034_v37 = vsel %vm1027_vm2, %v1031_v24, %v1033_v26  ;;  %v884_v46 = vrot.slane %v882_v38, 1  ;;  %v872_v48 = vor.u32 %v870_v44, %v868_v29  ;;  %v1247_v23 = vpop.permute.xlu0 %1246 }
  0xa1   : > { %v647_v12 = vshll.u32 %v595_v7, 16  ;;  %v642_v20 = vsel %vm606_vm1, %v637_v13, %v641_v10  ;;  %v645_v21 = vor.u32 %v643_v15, %v641_v10  ;;  %v651_v36 = vshrl.u32 %v595_v7, 16 }
  0xa2   : > { %1631 = vmatmul.mubr.msk.bf16.gmra.mxu1 %vm659_vm0, %v595_v7  ;;  %1613 = vmatmul.mubr.msk.bf16.gmra.mxu0 %vm659_vm0, %v642_v20  ;;  %v1035_v40 = vrot.slane %v600_v30, 1  ;;  %v1037_v43 = vrot.slane %v601_v35, 1  ;;  %v890_v47 = vshll.u32 %v600_v30, 16  ;;  %v880_v49 = vor.u32 %v878_v45, %v876_v42  ;;  %v1964_v45 = vld [vmem:[%s2027_s9] ss:$0 sm:$0xff] }
  0xa3   : > { %v649_v19 = vrot.slane %v647_v12, 1  ;;  %1650 = vmatprep.mubr.msk.bf16.mxu1 %vm659_vm0, %v1030_v41  ;;  %v877_v51 = vsel %vm606_vm1, %v872_v48, %v876_v42  ;;  %v898_v54 = vshll.u32 %v601_v35, 16  ;;  %v894_v55 = vshrl.u32 %v600_v30, 16 }
  0xa4   : > { %v1036_v16 = vsel %vm1027_vm2, %v1033_v26, %v1035_v40  ;;  %v1038_v50 = vsel %vm1027_vm2, %v1035_v40, %v1037_v43  ;;  %v892_v52 = vrot.slane %v890_v47, 1  ;;  %v885_v53 = vsel %vm606_vm1, %v880_v49, %v884_v46 }
  0xa5   : > { %v650_v25 = vsel %vm606_vm1, %v645_v21, %v649_v19  ;;  %v886_v56 = vshrl.u32 %v599_v14, 16  ;;  %v900_v59 = vrot.slane %v898_v54, 1  ;;  %v902_v62 = vshrl.u32 %v601_v35, 16 }
  0xa6   : > { %1616 = vmatprep.mubr.msk.bf16.mxu0 %vm659_vm0, %v650_v25  ;;  %v896_v57 = vor.u32 %v894_v55, %v892_v52 }
  0xa7   : > { %v888_v58 = vor.u32 %v886_v56, %v884_v46 }
  0xa8   : > { %v901_v61 = vsel %vm606_vm1, %v896_v57, %v900_v59 }
  0xa9   : > { %v893_v60 = vsel %vm606_vm1, %v888_v58, %v892_v52 }
  0xaa   : > { %1651 = vmatmul.mubr.msk.bf16.vlgmr.msra.gmra.mxu1 %vm659_vm0, %v1032_v31  ;;  %1617 = vmatmul.mubr.msk.bf16.gmra.mxu0 %vm659_vm0, %v651_v36  ;;  %v1257_v31 = vpop.permute.xlu0 %1256 }
  0xab   : > { %1654 = vmatprep.mubr.msk.bf16.mxu1 %vm659_vm0, %v1034_v37  ;;  %1636 = vmatprep.mubr.msk.bf16.mxu0 %vm659_vm0, %v869_v39  ;;  %v1252_v37 = vpop.permute.xlu1 %1251 }
  0xae   : > { %v1267_v49 = vpop.permute.xlu0 %1266 }
  0xaf   : > { %v1262_v57 = vpop.permute.xlu1 %1261 }
  0xb2   : > { %1655 = vmatmul.mubr.msk.bf16.gmra.mxu1 %vm659_vm0, %v1036_v16  ;;  %1637 = vmatmul.mubr.msk.bf16.vlgmr.msra.gmra.mxu0 %vm659_vm0, %v877_v51 }
  0xb3   : > { %1658 = vmatprep.mubr.msk.bf16.mxu1 %vm659_vm0, %v1038_v50  ;;  %1640 = vmatprep.mubr.msk.bf16.mxu0 %vm659_vm0, %v885_v53 }
  0xba   : > { %1659 = vmatmul.mubr.msk.bf16.gmra.mxu1 %vm659_vm0, %v1037_v43  ;;  %1641 = vmatmul.mubr.msk.bf16.gmra.mxu0 %vm659_vm0, %v893_v60 }
  0xbb   : > { %1644 = vmatprep.mubr.msk.bf16.mxu0 %vm659_vm0, %v901_v61 }
  0xc2   : > { %1645 = vmatmul.mubr.msk.bf16.gmra.mxu0 %vm659_vm0, %v902_v62 }
 0x152   : > { %v1624_v63 = vpop.f32.mrf.mxu1 }
 0x154   : > { %v810_v0 = vpop.f32.mrf.mxu1 }
 0x156   : > { %v1625_v1 = vpop.f32.mrf.mxu1 }
 0x158   : > { %v813_v2 = vpop.f32.mrf.mxu1 }
 0x15a   : > { %v1628_v3 = vpop.f32.mrf.mxu1  ;;  %v1610_v4 = vpop.f32.mrf.mxu0 }
 0x15b   : > { %v819_v28 = vadd.f32 %v1624_v63, %v1610_v4 }
 0x15c   : > { %v826_v5 = vpop.f32.mrf.mxu1  ;;  %v712_v6 = vpop.f32.mrf.mxu0 }
 0x15d   : > { %v811_v32 = vadd.f32 %v810_v0, %v712_v6 }
 0x15e   : > { %v1629_v34 = vpop.f32.mrf.mxu1  ;;  %v1611_v7 = vpop.f32.mrf.mxu0 }
 0x15f   : > { %v822_v38 = vadd.f32 %v1625_v1, %v1611_v7 }
 0x160   : > { %v1947_v8 = vpop.f32.mrf.mxu1  ;;  %v715_v9 = vpop.f32.mrf.mxu0 }
 0x161   : > { %v814_v44 = vadd.f32 %v813_v2, %v715_v9 }
 0x162   : > { %v1949_v10 = vpop.f32.mrf.mxu1  ;;  %v1614_v11 = vpop.f32.mrf.mxu0 }
 0x163   : > { %v835_v53 = vadd.f32 %v1628_v3, %v1614_v11 }
 0x164   : > { %v1951_v15 = vpop.f32.mrf.mxu1  ;;  %v728_v12 = vpop.f32.mrf.mxu0 }
 0x165   : > { %v827_v60 = vadd.f32 %v826_v5, %v728_v12 }
 0x166   : > { %v1633_v13 = vpop.f32.mrf.mxu1  ;;  %v1615_v14 = vpop.f32.mrf.mxu0 }
 0x167   : > { %v838_v1 = vadd.f32 %v1629_v34, %v1615_v14 }
 0x168   : > { %v1953_v17 = vpop.f32.mrf.mxu1  ;;  %v731_v41 = vpop.f32.mrf.mxu0 }
 0x169   : > { %v830_v5 = vadd.f32 %v1947_v8, %v731_v41 }
 0x16a   : > { %v1652_v18 = vpop.f32.mrf.mxu1  ;;  %v1955_v19 = vpop.f32.mrf.mxu0 }
 0x16c   : > { %v1097_v20 = vpop.f32.mrf.mxu1  ;;  %v1957_v21 = vpop.f32.mrf.mxu0 }
 0x16e   : > { %v1653_v22 = vpop.f32.mrf.mxu1  ;;  %v1619_v24 = vpop.f32.mrf.mxu0 }
 0x170   : > { %v1100_v25 = vpop.f32.mrf.mxu1  ;;  %v1959_v26 = vpop.f32.mrf.mxu0 }
 0x172   : > { %v1656_v27 = vpop.f32.mrf.mxu1  ;;  %v1638_v29 = vpop.f32.mrf.mxu0 }
 0x173   : > { %v1010_v33 = vadd.f32 %v1638_v29, %v819_v28  ;;  %v851_v29 = vadd.f32 %v1949_v10, %v1955_v19 }
 0x174   : > { %v1113_v30 = vpop.f32.mrf.mxu1  ;;  %v962_v35 = vpop.f32.mrf.mxu0 }
 0x175   : > { %v1008_v39 = vadd.f32 %v962_v35, %v811_v32  ;;  %v1145_v40 = vadd.f32 %v1652_v18, %v1010_v33  ;;  %v1277_v18 = vpop.permute.xlu0 %1276 }
 0x176   : > { %v1657_v36 = vpop.f32.mrf.mxu1  ;;  %v1639_v42 = vpop.f32.mrf.mxu0 }
 0x177   : > { %v1143_v46 = vadd.f32 %v1097_v20, %v1008_v39  ;;  %v1011_v47 = vadd.f32 %v1639_v42, %v822_v38  ;;  %v1163_v54 = vadd.f32 %v1964_v45, %v1145_v40  ;;  %v843_v38 = vadd.f32 %v1951_v15, %v1957_v21 }
 0x178   : > { %v1116_v43 = vpop.f32.mrf.mxu1  ;;  %v965_v48 = vpop.f32.mrf.mxu0 }
 0x179   : > { %v1161_v50 = vadd.f32 %v1964_v45, %v1143_v46  ;;  %v1146_v51 = vadd.f32 %v1653_v22, %v1011_v47  ;;  %v1009_v52 = vadd.f32 %v965_v48, %v814_v44  ;;  %v1301_v4 = vmul.f32 %v1257_v31, %v1163_v54  ;;  %v1287_v46 = vpop.permute.xlu0 %1286 }
 0x17a   : > { %v1967_v16 = vpop.f32.mrf.mxu1  ;;  %v1642_v55 = vpop.f32.mrf.mxu0  ;;  %v846_v47 = vadd.f32 %v1953_v17, %v1959_v26 }
 0x17b   : > { %v1164_v58 = vadd.f32 %v1964_v45, %v1146_v51  ;;  %v1144_v59 = vadd.f32 %v1100_v25, %v1009_v52  ;;  %v1299_v61 = vmul.f32 %v1247_v23, %v1161_v50  ;;  %v1014_v62 = vadd.f32 %v1642_v55, %v835_v53 }
 0x17c   : > { %v1971_v56 = vpop.f32.mrf.mxu1  ;;  %v978_v63 = vpop.f32.mrf.mxu0  ;;  %v1331_v8 = vmul.f32 %v1301_v4, %v1163_v54 }
 0x17d   : > { %v1553_v2 = vpack.c.bf16 %v1164_v58, %v1163_v54  ;;  %v1162_v3 = vadd.f32 %v1964_v45, %v1144_v59  ;;  %v1149_v6 = vadd.f32 %v1656_v27, %v1014_v62  ;;  %v1012_v7 = vadd.f32 %v978_v63, %v827_v60  ;;  %v1272_v27 = vpop.permute.xlu1 %1271 }
 0x17e   : > { %v1661_v0 = vpop.f32.mrf.mxu1  ;;  %v1643_v9 = vpop.f32.mrf.mxu0  ;;  %v1329_v20 = vmul.f32 %v1299_v61, %v1161_v50  ;;  %v1302_v22 = vmul.f32 %v1262_v57, %v1164_v58 }
 0x17f   : > { %1574 = vst [vmem:[%s1977_s26 + $0x8] sm:$0xff] %v1553_v2   ;;  %v1548_v11 = vpack.c.bf16 %v1162_v3, %v1161_v50  ;;  %v1300_v12 = vmul.f32 %v1252_v37, %v1162_v3  ;;  %v1015_v13 = vadd.f32 %v1643_v9, %v838_v1  ;;  %v1147_v23 = vadd.f32 %v1113_v30, %v1012_v7 }
 0x180   : > { %v981_v24 = vpop.f32.mrf.mxu0  ;;  %v1167_v41 = vadd.f32 %v1964_v45, %v1149_v6  ;;  %v1332_v10 = vmul.f32 %v1302_v22, %v1164_v58  ;;  %v1132_v63 = vpop.f32.mrf.mxu1 }
 0x181   : > { %1549 = vst [vmem:[%s1977_s26] sm:$0xff] %v1548_v11   ;;  %v1310_v34 = vadd.f32 %v1300_v12, %v1299_v61  ;;  %v1330_v14 = vmul.f32 %v1300_v12, %v1162_v3  ;;  %v1150_v25 = vadd.f32 %v1657_v36, %v1015_v13  ;;  %v1013_v28 = vadd.f32 %v981_v24, %v830_v5  ;;  %v1282_v53 = vpop.permute.xlu1 %1281  ;;  %v1297_v3 = vpop.permute.xlu0 %1296 }
 0x182   : > { %v1165_v31 = vadd.f32 %v1964_v45, %v1147_v23  ;;  %v1646_v32 = vpop.f32.mrf.mxu0  ;;  %v1305_v21 = vmul.f32 %v1277_v18, %v1167_v41 }
 0x183   : > { %v1311_v33 = vadd.f32 %v1310_v34, %v1301_v4  ;;  %v1340_v35 = vadd.f32 %v1330_v14, %v1329_v20  ;;  %v1168_v30 = vadd.f32 %v1964_v45, %v1150_v25  ;;  %v1148_v37 = vadd.f32 %v1116_v43, %v1013_v28 }
 0x184   : > { %v1303_v36 = vmul.f32 %v1267_v49, %v1165_v31  ;;  %v1018_v39 = vadd.f32 %v1646_v32, %v851_v29  ;;  %v994_v40 = vpop.f32.mrf.mxu0  ;;  %v1335_v4 = vmul.f32 %v1305_v21, %v1167_v41 }
 0x185   : > { %v1341_v19 = vadd.f32 %v1340_v35, %v1331_v8  ;;  %v1312_v42 = vadd.f32 %v1311_v33, %v1302_v22  ;;  %v1563_v44 = vpack.c.bf16 %v1168_v30, %v1167_v41  ;;  %v1166_v48 = vadd.f32 %v1964_v45, %v1148_v37  ;;  %v1292_v12 = vpop.permute.xlu1 %1291 }
 0x186   : > { %v1153_v43 = vadd.f32 %v1967_v16, %v1018_v39  ;;  %v1016_v50 = vadd.f32 %v994_v40, %v843_v38  ;;  %v1647_v15 = vpop.f32.mrf.mxu0  ;;  %v1333_v51 = vmul.f32 %v1303_v36, %v1165_v31  ;;  %v1230_v16 = vld [vmem:[%s1977_s26 + $0x28] sm:$0x1]  ;;  %v1306_v60 = vmul.f32 %v1282_v53, %v1168_v30 }
 0x187   : > { %v1313_v49 = vadd.f32 %v1312_v42, %v1303_v36  ;;  %v1342_v52 = vadd.f32 %v1341_v19, %v1332_v10  ;;  %1576 = vst [vmem:[%s1977_s26 + $0x18] sm:$0xff] %v1563_v44   ;;  %v1558_v54 = vpack.c.bf16 %v1166_v48, %v1165_v31  ;;  %v1304_v55 = vmul.f32 %v1272_v27, %v1166_v48 }
 0x188   : > { %v1171_v57 = vadd.f32 %v1964_v45, %v1153_v43  ;;  %v1151_v17 = vadd.f32 %v1971_v56, %v1016_v50  ;;  %v997_v26 = vpop.f32.mrf.mxu0  ;;  %v1336_v13 = vmul.f32 %v1306_v60, %v1168_v30 }
 0x189   : > { %v1343_v58 = vadd.f32 %v1342_v52, %v1333_v51  ;;  %v1017_v59 = vadd.f32 %v997_v26, %v846_v47  ;;  %1575 = vst [vmem:[%s1977_s26 + $0x10] sm:$0xff] %v1558_v54   ;;  %v1314_v61 = vadd.f32 %v1313_v49, %v1304_v55  ;;  %v1334_v62 = vmul.f32 %v1304_v55, %v1166_v48 }
 0x18a   : > { %v1524_v0 = vpack.c.bf16 %v1171_v57, %v1171_v57  ;;  %v1169_v1 = vadd.f32 %v1964_v45, %v1151_v17  ;;  %v1309_v9 = vmul.f32 %v1297_v3, %v1171_v57 }
 0x18b   : > { %v1152_v2 = vadd.f32 %v1132_v63, %v1017_v59  ;;  %v1315_v56 = vadd.f32 %v1314_v61, %v1305_v21  ;;  %v1344_v6 = vadd.f32 %v1343_v58, %v1334_v62 }
 0x18c   : > { %v1231_v7 = vsel %vm1229_vm5, %v1524_v0, %v1230_v16  ;;  %v1307_v5 = vmul.f32 %v1287_v46, %v1169_v1  ;;  %v1339_v25 = vmul.f32 %v1309_v9, %v1171_v57  ;;  %v1320_v8 = vsel %vm1227_vm3, %v1309_v9, 0.0 }
 0x18d   : > { %1232 = vst [vmem:[%s1977_s26 + $0x28] sm:$0x1] %v1231_v7  ;;  %v1170_v11 = vadd.f32 %v1964_v45, %v1152_v2  ;;  %v1345_v18 = vadd.f32 %v1344_v6, %v1335_v4  ;;  %v1316_v20 = vadd.f32 %v1315_v56, %v1306_v60 }
 0x18e   : > { %v1337_v34 = vmul.f32 %v1307_v5, %v1169_v1  ;;  %v1349_v31 = vsel %vm1227_vm3, %v1339_v25, 0.0 }
 0x18f   : > { %v1568_v22 = vpack.c.bf16 %v1170_v11, %v1169_v1  ;;  %v1308_v23 = vmul.f32 %v1292_v12, %v1170_v11  ;;  %v1317_v24 = vadd.f32 %v1316_v20, %v1307_v5  ;;  %v1346_v14 = vadd.f32 %v1345_v18, %v1336_v13 }
 0x191   : > { %1577 = vst [vmem:[%s1977_s26 + $0x20] sm:$0xff] %v1568_v22   ;;  %v1338_v28 = vmul.f32 %v1308_v23, %v1170_v11  ;;  %v1347_v27 = vadd.f32 %v1346_v14, %v1337_v34  ;;  %v1318_v29 = vadd.f32 %v1317_v24, %v1308_v23 }
 0x193   : > { %v1321_v41 = vadd.f32 %v1320_v8, %v1318_v29  ;;  %v1348_v45 = vadd.f32 %v1347_v27, %v1338_v28 }
 0x195   : > { %v1322_v32 = vrot.slane %v1321_v41, 4  ;;  %v1350_v33 = vadd.f32 %v1349_v31, %v1348_v45 }
 0x197   : > { %v1323_v35 = vadd.f32 %v1322_v32, %v1321_v41  ;;  %v1351_v30 = vrot.slane %v1350_v33, 4 }
 0x199   : > { %v1324_v37 = vrot.slane %v1323_v35, 2  ;;  %v1352_v38 = vadd.f32 %v1351_v30, %v1350_v33 }
 0x19b   : > { %v1325_v36 = vadd.f32 %v1324_v37, %v1323_v35  ;;  %v1353_v39 = vrot.slane %v1352_v38, 2 }
 0x19d   : > { %v1326_v40 = vrot.slane %v1325_v36, 1  ;;  %v1354_v10 = vadd.f32 %v1353_v39, %v1352_v38 }
 0x19f   : > { %v1327_v19 = vadd.f32 %v1326_v40, %v1325_v36  ;;  %v1355_v42 = vrot.slane %v1354_v10, 1 }
 0x1a1   : > { %1328 = vst [vmem:[%s427_s29] sm:$0x1] %v1327_v19  ;;  %v1356_v44 = vadd.f32 %v1355_v42, %v1354_v10 }
 0x1a3   : > { %1357 = vst [vmem:[%s430_s14] sm:$0x1] %v1356_v44 }
 0x1a4 PF: > { %s23_s21 = sadd.s32 1, %s1685_s21  }
 0x1a5   : > { %p20_p4 = scmp.ge.s32.totalorder %s23_s21, 4  }
 0x1a7   :  { %22 = sbr.rel (!%p20_p4) target bundleno = 1 (0x1), region = 114 }

// kernel: _lambda_.9
= control target key start
LH: loop header
LB: loop body
LE: loop exit
PB: predicated region body
PF: predicated region fallthrough
CT: control target
= control target key end

     0   :  { %s3202_s12 = smov 0   ;;  %s4230_s0 = inlined_call_operand.vmem [shape: bf16[2,307,8], index: 0, kind: input, shape index: {}]   ;;  %s4231_s1 = inlined_call_operand.vmem [shape: f32[307,1], index: 1, kind: input, shape index: {}]   ;;  %s4232_s2 = inlined_call_operand.vmem [shape: f32[289,1], index: 2, kind: input, shape index: {}]   ;;  %s4233_s3 = inlined_call_operand.vmem [shape: f32[1,8], index: 3, kind: input, shape index: {}]   ;;  %s4234_s4 = inlined_call_operand.vmem [shape: f32[1,8], index: 4, kind: input, shape index: {}]   ;;  %s4235_s5 = inlined_call_operand.vmem [shape: bf16[8,128], index: 5, kind: input, shape index: {}]   ;;  %s4236_s6 = inlined_call_operand.vmem [shape: bf16[8,128], index: 6, kind: input, shape index: {}]   ;;  %s4237_s7 = inlined_call_operand.vmem [shape: bf16[8,128], index: 7, kind: input, shape index: {}]   ;;  %s4238_s8 = inlined_call_operand.vmem [shape: bf16[8,128], index: 8, kind: input, shape index: {}]   ;;  %s4239_s9 = inlined_call_operand.vmem [shape: f32[1,128], index: 9, kind: input, shape index: {}]   ;;  %s4240_s10 = inlined_call_operand.vmem [shape: bf16[2,289,128], index: 10, kind: output, shape index: {}]  }
   0x1 LB: > { %s2366_s13 = sadd.s32 4294967295, %s3142_s12   ;;  %p2370_p0 = scmp.ge.s32.totalorder %s3142_s12, 1  ;;  %s3142_s12 = sphi %s3202_s12, %s20_s12  }
   0x2   : > { %p312_p1 = scmp.lt.s32.totalorder %s3142_s12, 3 }
   0x4   : > { %p313_p2 = pnand %p2370_p0, %p312_p1 }
   0x5   : > { %p350_p3 = scmp.lt.s32.totalorder (!%p313_p2), %s2366_s13, 1 }
   0x6   : > { %316 = sbr.rel (%p313_p2) target bundleno = 651 (0x28b), region = 60 }
   0xb   : > { %v572_v0 = vld [vmem:[%s4231_s1 + $0x10] sm:$0xff]  ;;  %v570_v1 = vld [vmem:[%s4231_s1] sm:$0xff]  ;;  %v3144_v2 = vmov 0   ;;  %v573_v3 = vld [vmem:[%s4231_s1 + $0x18] sm:$0xff]  ;;  %v3145_v5 = vmov 0.0   ;;  %vm3146_vm0 = vmmov 0  }
   0xc   : > { %3135 = vset.pattern.permute.xlu1 %v3144_v2  ;;  %3134 = vset.pattern.permute.xlu0 %v3144_v2  ;;  %v571_v4 = vld [vmem:[%s4231_s1 + $0x8] sm:$0xff]  ;;  %v574_v7 = vld [vmem:[%s4231_s1 + $0x20] sm:$0xff]  ;;  %v577_v8 = vld [vmem:[%s4231_s1 + $0x38] sm:$0xff]  ;;  %vm1075_vm1 = vcmask 1043456   ;;  %s4242_s13 = smov (!%p350_p3, %s2366_s13), 1  ;;  %vm1017_vm2 = vcmask 64512  }
   0xd   : > { %621 = vperm.xlu1 %3135, %v572_v0   ;;  %611 = vperm.xlu0 %3134, %v570_v1   ;;  %v575_v6 = vld [vmem:[%s4231_s1 + $0x28] sm:$0xff]  ;;  %v576_v9 = vld [vmem:[%s4231_s1 + $0x30] sm:$0xff]  ;;  %v864_v10 = vld [vmem:[%s4235_s5] sm:$0xf]  ;;  %s3121_s27 = smul.u32 156, %s4242_s13  ;;  %vm1757_vm4 = vcmask 1046528  }
   0xe   : > { %2887 = vmatprep.subr.bf16.mxu1 %v3145_v5  ;;  %2809 = vmatprep.subr.bf16.mxu0 %v3145_v5  ;;  %v579_v11 = vld [vmem:[%s4231_s1 + $0x48] sm:$0xff]  ;;  %v578_v12 = vld [vmem:[%s4231_s1 + $0x40] sm:$0xff]  ;;  %v1302_v13 = vsel %vm1075_vm1, %v864_v10, 0  ;;  %v581_v16 = vld [vmem:[%s4231_s1 + $0x58] sm:$0xff]  ;;  %vm866_vm3 = vsmask.f32 7424 }
   0xf   : > { %2889 = vmatprep.mubr.msk.bf16.mxu1 %vm3146_vm0, %v3145_v5  ;;  %2811 = vmatprep.mubr.msk.bf16.mxu0 %vm3146_vm0, %v3145_v5  ;;  %v865_v14 = vld [vmem:[%s4236_s6] sm:$0xf]  ;;  %v580_v17 = vld [vmem:[%s4231_s1 + $0x50] sm:$0xff]  ;;  %v583_v18 = vld [vmem:[%s4231_s1 + $0x68] sm:$0xff]  ;;  %s3284_s15 = scalar_lea.vmem %s4230_s0, %s3121_s27  ;;  %s3122_s17 = smul.u32 148, %s4242_s13  ;;  %vm2305_vm5 = vcmask 1040384  }
  0x10   : > { %2888 = vmatpush3.bf16.msra.mxu1 %v1302_v13  ;;  %v1077_v15 = vsel %vm1075_vm1, %v865_v14, 0  ;;  %v582_v19 = vld [vmem:[%s4231_s1 + $0x60] sm:$0xff]  ;;  %v585_v20 = vld [vmem:[%s4231_s1 + $0x78] sm:$0xff]  ;;  %v584_v21 = vld [vmem:[%s4231_s1 + $0x70] sm:$0xff]  ;;  %vm2306_vm6 = vsmask.f32 256 }
  0x11   : > { %626 = vperm.xlu1 %3135, %v573_v3   ;;  %616 = vperm.xlu0 %3134, %v571_v4   ;;  %v2702_v22 = vld [vmem:[%s3284_s15 + $0x48] sm:$0xff]   ;;  %v2703_v23 = vld [vmem:[%s3284_s15 + $0x50] sm:$0xff]   ;;  %v586_v25 = vld [vmem:[%s4231_s1 + $0x80] sm:$0xff]  ;;  %s4136_s20 = scalar_lea.vmem %s4240_s10, %s3122_s17 }
  0x12   : > { %2810 = vmatpush3.bf16.msra.mxu0 %v1077_v15  ;;  %3043 = vmatprep.subr.bf16.mxu1 %v3145_v5  ;;  %v587_v24 = vld [vmem:[%s4231_s1 + $0x88] sm:$0xff]  ;;  %v2567_v26 = vunpack.c.h.bf16 %v2702_v22  ;;  %v3297_v27 = vld [vmem:[%s4233_s3] ss:$0 sm:$0xff]  ;;  %v2566_v28 = vunpack.c.l.bf16 %v2702_v22  ;;  %v2571_v30 = vunpack.c.h.bf16 %v2703_v23  ;;  %v2570_v31 = vunpack.c.l.bf16 %v2703_v23  ;;  %v2704_v34 = vld [vmem:[%s3284_s15 + $0x58] sm:$0xff]  }
  0x13   : > { %2965 = vmatprep.subr.bf16.mxu0 %v3145_v5  ;;  %v3303_v32 = vld [vmem:[%s4234_s4] ss:$0 sm:$0xff]  ;;  %v589_v35 = vld [vmem:[%s4231_s1 + $0x98] sm:$0xff]  ;;  %v588_v36 = vld [vmem:[%s4231_s1 + $0x90] sm:$0xff]  ;;  %v2575_v40 = vunpack.c.h.bf16 %v2704_v34  ;;  %v2574_v42 = vunpack.c.l.bf16 %v2704_v34 }
  0x14   : > { %v465_v29 = vmul.f32 %v2567_v26, %v3297_v27  ;;  %v464_v33 = vmul.f32 %v2566_v28, %v3297_v27  ;;  %v467_v38 = vmul.f32 %v2571_v30, %v3297_v27  ;;  %v466_v39 = vmul.f32 %v2570_v31, %v3297_v27  ;;  %v2705_v47 = vld [vmem:[%s3284_s15 + $0x60] sm:$0xff]   ;;  %v591_v48 = vld [vmem:[%s4231_s1 + $0xa8] sm:$0xff]  ;;  %v593_v57 = vld [vmem:[%s4231_s1 + $0xb8] sm:$0xff] }
  0x15   : > { %636 = vperm.xlu1 %3135, %v575_v6   ;;  %631 = vperm.xlu0 %3134, %v574_v7   ;;  %v469_v45 = vmul.f32 %v2575_v40, %v3297_v27  ;;  %v468_v46 = vmul.f32 %v2574_v42, %v3297_v27  ;;  %v590_v49 = vld [vmem:[%s4231_s1 + $0xa0] sm:$0xff]  ;;  %v2579_v51 = vunpack.c.h.bf16 %v2705_v47  ;;  %v2578_v53 = vunpack.c.l.bf16 %v2705_v47  ;;  %v2706_v56 = vld [vmem:[%s3284_s15 + $0x68] sm:$0xff]   ;;  %v592_v58 = vld [vmem:[%s4231_s1 + $0xb0] sm:$0xff] }
  0x16   : > { %v3314_v37 = vadd.f32 %v3303_v32, %v465_v29  ;;  %v3319_v41 = vadd.f32 %v3303_v32, %v464_v33  ;;  %v3322_v43 = vadd.f32 %v3303_v32, %v467_v38  ;;  %v3325_v44 = vadd.f32 %v3303_v32, %v466_v39  ;;  %v2707_v1 = vld [vmem:[%s3284_s15 + $0x70] sm:$0xff]   ;;  %v595_v2 = vld [vmem:[%s4231_s1 + $0xc8] sm:$0xff]  ;;  %v594_v3 = vld [vmem:[%s4231_s1 + $0xc0] sm:$0xff] }
  0x17   : > { %v3337_v50 = vadd.f32 %v3303_v32, %v469_v45  ;;  %v3340_v52 = vadd.f32 %v3303_v32, %v468_v46  ;;  %v471_v54 = vmul.f32 %v2579_v51, %v3297_v27  ;;  %v470_v55 = vmul.f32 %v2578_v53, %v3297_v27  ;;  %v596_v13 = vld [vmem:[%s4231_s1 + $0xd0] sm:$0xff]  ;;  %v598_v22 = vld [vmem:[%s4231_s1 + $0xe0] sm:$0xff]  ;;  %v2710_v30 = vld [vmem:[%s3284_s15 + $0x88] sm:$0xff]  }
  0x18   : > { %v2583_v60 = vunpack.c.h.bf16 %v2706_v56  ;;  %v2582_v61 = vunpack.c.l.bf16 %v2706_v56  ;;  %v2587_v7 = vunpack.c.h.bf16 %v2707_v1  ;;  %v601_v31 = vld [vmem:[%s4231_s1 + $0xf8] sm:$0xff]  ;;  %v600_v33 = vld [vmem:[%s4231_s1 + $0xf0] sm:$0xff]  ;;  %v2598_v38 = vunpack.c.l.bf16 %v2710_v30  ;;  %v603_v45 = vld [vmem:[%s4231_s1 + $0x108] sm:$0xff] }
  0x19   : > { %646 = vperm.xlu1 %3135, %v577_v8   ;;  %641 = vperm.xlu0 %3134, %v576_v9   ;;  %v3352_v59 = vadd.f32 %v3303_v32, %v471_v54  ;;  %v3355_v62 = vadd.f32 %v3303_v32, %v470_v55  ;;  %v2586_v8 = vunpack.c.l.bf16 %v2707_v1  ;;  %v2711_v42 = vld [vmem:[%s3284_s15 + $0x90] sm:$0xff]   ;;  %v602_v46 = vld [vmem:[%s4231_s1 + $0x100] sm:$0xff]  ;;  %v399_v55 = vld [vmem:[%s3284_s15 + $0x98] sm:$0x3] }
  0x1a   : > { %v473_v63 = vmul.f32 %v2583_v60, %v3297_v27  ;;  %v472_v0 = vmul.f32 %v2582_v61, %v3297_v27  ;;  %v475_v9 = vmul.f32 %v2587_v7, %v3297_v27  ;;  %v480_v40 = vmul.f32 %v2598_v38, %v3297_v27  ;;  %v605_v56 = vld [vmem:[%s4231_s1 + $0x118] sm:$0xff]  ;;  %v606_v1 = vld [vmem:[%s4231_s1 + $0x120] sm:$0xff]  ;;  %v2694_v7 = vld [vmem:[%s3284_s15 + $0x8] sm:$0xff]  }
  0x1b   : > { %v474_v10 = vmul.f32 %v2586_v8, %v3297_v27  ;;  %v2602_v51 = vunpack.c.l.bf16 %v2711_v42  ;;  %v438_v61 = vunpack.c.l.bf16 %v399_v55  ;;  %v2529_v8 = vld [vmem:[%s3284_s15] sm:$0xff]   ;;  %vm2307_vm7 = vmand %vm2305_vm5, %vm2306_vm6 }
  0x1c   : > { %v3367_v4 = vadd.f32 %v3303_v32, %v473_v63  ;;  %v3370_v6 = vadd.f32 %v3303_v32, %v472_v0  ;;  %v3382_v14 = vadd.f32 %v3303_v32, %v475_v9  ;;  %v607_v0 = vld [vmem:[%s4231_s1 + $0x128] sm:$0xff]  ;;  %v2695_v9 = vld [vmem:[%s3284_s15 + $0x10] sm:$0xff]  }
  0x1d   : > { %656 = vperm.xlu1 %3135, %v579_v11   ;;  %651 = vperm.xlu0 %3134, %v578_v12   ;;  %v2708_v11 = vld [vmem:[%s3284_s15 + $0x78] sm:$0xff]   ;;  %v3385_v15 = vadd.f32 %v3303_v32, %v474_v10  ;;  %v482_v54 = vmul.f32 %v2602_v51, %v3297_v27  ;;  %v484_v63 = vmul.f32 %v3297_v27, %v438_v61  ;;  %v2534_v10 = vunpack.c.l.bf16 %v2694_v7 }
  0x1e   : > { %v597_v12 = vld [vmem:[%s4231_s1 + $0xd8] sm:$0xff] }
  0x1f   : > { %v3445_v60 = vadd.f32 %v3303_v32, %v482_v54 }
  0x21   : > { %666 = vperm.xlu1 %3135, %v581_v16   ;;  %661 = vperm.xlu0 %3134, %v580_v17   ;;  %v2591_v16 = vunpack.c.h.bf16 %v2708_v11  ;;  %v2590_v17 = vunpack.c.l.bf16 %v2708_v11  ;;  %v2530_v11 = vunpack.c.l.bf16 %v2529_v8 }
  0x25   : > { %676 = vperm.xlu1 %3135, %v583_v18   ;;  %671 = vperm.xlu0 %3134, %v582_v19   ;;  %v477_v18 = vmul.f32 %v2591_v16, %v3297_v27  ;;  %v476_v19 = vmul.f32 %v2590_v17, %v3297_v27  ;;  %v2539_v16 = vunpack.c.h.bf16 %v2695_v9  ;;  %v2696_v17 = vld [vmem:[%s3284_s15 + $0x18] sm:$0xff]  }
  0x27   : > { %v3397_v23 = vadd.f32 %v3303_v32, %v477_v18  ;;  %v448_v18 = vmul.f32 %v2534_v10, %v3297_v27 }
  0x29   : > { %686 = vperm.xlu1 %3135, %v585_v20   ;;  %681 = vperm.xlu0 %3134, %v584_v21   ;;  %v2709_v20 = vld [vmem:[%s3284_s15 + $0x80] sm:$0xff]   ;;  %v599_v21 = vld [vmem:[%s4231_s1 + $0xe8] sm:$0xff] }
  0x2a   : > { %v2594_v26 = vunpack.c.l.bf16 %v2709_v20 }
  0x2c   : > { %v478_v29 = vmul.f32 %v2594_v26, %v3297_v27  ;;  %v451_v26 = vmul.f32 %v2539_v16, %v3297_v27 }
  0x2d   : > { %696 = vperm.xlu1 %3135, %v587_v24   ;;  %691 = vperm.xlu0 %3134, %v586_v25   ;;  %v3400_v24 = vadd.f32 %v3303_v32, %v476_v19  ;;  %v2595_v25 = vunpack.c.h.bf16 %v2709_v20  ;;  %v446_v19 = vmul.f32 %v2530_v11, %v3297_v27 }
  0x2f   : > { %v479_v28 = vmul.f32 %v2595_v25, %v3297_v27  ;;  %v2543_v25 = vunpack.c.h.bf16 %v2696_v17 }
  0x31   : > { %706 = vperm.xlu1 %3135, %v589_v35   ;;  %701 = vperm.xlu0 %3134, %v588_v36   ;;  %v3412_v34 = vadd.f32 %v3303_v32, %v479_v28  ;;  %v3415_v35 = vadd.f32 %v3303_v32, %v478_v29  ;;  %v2599_v36 = vunpack.c.h.bf16 %v2710_v30  ;;  %v2542_v28 = vunpack.c.l.bf16 %v2696_v17 }
  0x32   : > { %v494_v29 = vadd.f32 %v3303_v32, %v448_v18  ;;  %v492_v30 = vadd.f32 %v3303_v32, %v446_v19 }
  0x33   : > { %v481_v39 = vmul.f32 %v2599_v36, %v3297_v27  ;;  %v2697_v36 = vld [vmem:[%s3284_s15 + $0x20] sm:$0xff]  }
  0x34   : > { %v2547_v51 = vunpack.c.h.bf16 %v2697_v36  ;;  %v533_v54 = vmax.f32 %v494_v29, 0.0  ;;  %v531_v55 = vmax.f32 %v492_v30, 0.0 }
  0x35   : > { %716 = vperm.xlu1 %3135, %v591_v48   ;;  %711 = vperm.xlu0 %3134, %v590_v49   ;;  %v3427_v47 = vadd.f32 %v3303_v32, %v481_v39  ;;  %v3430_v48 = vadd.f32 %v3303_v32, %v480_v40  ;;  %v2603_v49 = vunpack.c.h.bf16 %v2711_v42  ;;  %v453_v39 = vmul.f32 %v2543_v25, %v3297_v27  ;;  %v2698_v42 = vld [vmem:[%s3284_s15 + $0x28] sm:$0xff]  }
  0x36   : > { %v497_v40 = vadd.f32 %v3303_v32, %v451_v26  ;;  %v455_v10 = vmul.f32 %v2547_v51, %v3297_v27 }
  0x37   : > { %v483_v53 = vmul.f32 %v2603_v49, %v3297_v27  ;;  %v452_v49 = vmul.f32 %v2542_v28, %v3297_v27  ;;  %v2700_v28 = vld [vmem:[%s3284_s15 + $0x38] sm:$0xff]  }
  0x39   : > { %726 = vperm.xlu1 %3135, %v593_v57   ;;  %721 = vperm.xlu0 %3134, %v592_v58   ;;  %v604_v57 = vld [vmem:[%s4231_s1 + $0x110] sm:$0xff]  ;;  %v3442_v58 = vadd.f32 %v3303_v32, %v483_v53  ;;  %v2546_v53 = vunpack.c.l.bf16 %v2697_v36 }
  0x3b   : > { %v454_v11 = vmul.f32 %v2546_v53, %v3297_v27  ;;  %v2559_v53 = vunpack.c.h.bf16 %v2700_v28 }
  0x3d   : > { %736 = vperm.xlu1 %3135, %v595_v2   ;;  %731 = vperm.xlu0 %3134, %v594_v3   ;;  %v3455_v2 = vadd.f32 %v3303_v32, %v484_v63  ;;  %v608_v3 = vld [vmem:[%s4231_s1 + $0x130] sm:$0x7]  ;;  %v499_v63 = vadd.f32 %v3303_v32, %v453_v39  ;;  %v501_v39 = vadd.f32 %v3303_v32, %v455_v10 }
  0x41   : > { %746 = vperm.xlu1 %3135, %v597_v12   ;;  %741 = vperm.xlu0 %3134, %v596_v13   ;;  %v2535_v12 = vunpack.c.h.bf16 %v2694_v7  ;;  %v2531_v13 = vunpack.c.h.bf16 %v2529_v8 }
  0x43   : > { %v449_v20 = vmul.f32 %v2535_v12, %v3297_v27  ;;  %v2550_v12 = vunpack.c.l.bf16 %v2698_v42 }
  0x45   : > { %756 = vperm.xlu1 %3135, %v599_v21   ;;  %751 = vperm.xlu0 %3134, %v598_v22   ;;  %v447_v21 = vmul.f32 %v2531_v13, %v3297_v27  ;;  %v2538_v22 = vunpack.c.l.bf16 %v2695_v9  ;;  %v498_v9 = vadd.f32 %v3303_v32, %v452_v49  ;;  %v2699_v13 = vld [vmem:[%s3284_s15 + $0x30] sm:$0xff]  }
  0x47   : > { %v450_v38 = vmul.f32 %v2538_v22, %v3297_v27  ;;  %v538_v22 = vmax.f32 %v499_v63, 0.0  ;;  %v537_v51 = vmax.f32 %v498_v9, 0.0  ;;  %v540_v9 = vmax.f32 %v501_v39, 0.0 }
  0x49   : > { %766 = vperm.xlu1 %3135, %v601_v31   ;;  %761 = vperm.xlu0 %3134, %v600_v33   ;;  %v495_v31 = vadd.f32 %v3303_v32, %v449_v20  ;;  %v493_v33 = vadd.f32 %v3303_v32, %v447_v21  ;;  %v496_v61 = vadd.f32 %v3303_v32, %v450_v38  ;;  %v1488_v20 = vld [vmem:[%s4237_s7] sm:$0xf] }
  0x4b   : > { %v535_v21 = vmax.f32 %v496_v61, 0.0 }
  0x4d   : > { %776 = vperm.xlu1 %3135, %v603_v45   ;;  %771 = vperm.xlu0 %3134, %v602_v46  }
  0x51   : > { %786 = vperm.xlu1 %3135, %v605_v56   ;;  %781 = vperm.xlu0 %3134, %v604_v57   ;;  %v534_v56 = vmax.f32 %v495_v31, 0.0  ;;  %v532_v57 = vmax.f32 %v493_v33, 0.0  ;;  %v2555_v31 = vunpack.c.h.bf16 %v2699_v13  ;;  %v2554_v33 = vunpack.c.l.bf16 %v2699_v13 }
  0x55   : > { %796 = vperm.xlu1 %3135, %v607_v0   ;;  %791 = vperm.xlu0 %3134, %v606_v1   ;;  %v2551_v0 = vunpack.c.h.bf16 %v2698_v42  ;;  %v536_v1 = vmax.f32 %v497_v40, 0.0  ;;  %v500_v40 = vadd.f32 %v3303_v32, %v454_v11  ;;  %v1514_v42 = vsel %vm1075_vm1, %v1488_v20, 0 }
  0x57   : > { %v457_v26 = vmul.f32 %v2551_v0, %v3297_v27  ;;  %v459_v0 = vmul.f32 %v2555_v31, %v3297_v27  ;;  %v539_v10 = vmax.f32 %v500_v40, 0.0 }
  0x59   : > { %801 = vperm.xlu0 %3134, %v608_v3   ;;  %v1737_v3 = vld [vmem:[%s4238_s8] sm:$0xf] }
  0x5a   : > { %v1853_v25 = vsel %vm1075_vm1, %v1737_v3, 0 }
  0x88   : > { %v622_v45 = vpop.permute.xlu1 %621  ;;  %v612_v46 = vpop.permute.xlu0 %611 }
  0x89   : > { %v806_v16 = vmul.f32 %v622_v45, %v533_v54  ;;  %v804_v17 = vmul.f32 %v612_v46, %v531_v55  ;;  %v456_v45 = vmul.f32 %v2550_v12, %v3297_v27 }
  0x8b   : > { %v502_v11 = vadd.f32 %v3303_v32, %v456_v45 }
  0x8c   : > { %v627_v7 = vpop.permute.xlu1 %626  ;;  %v617_v8 = vpop.permute.xlu0 %616 }
  0x8d   : > { %v807_v18 = vmul.f32 %v627_v7, %v534_v56  ;;  %v805_v19 = vmul.f32 %v617_v8, %v532_v57  ;;  %v503_v56 = vadd.f32 %v3303_v32, %v457_v26  ;;  %v2558_v57 = vunpack.c.l.bf16 %v2700_v28 }
  0x8f   : > { %v3494_v29 = vpack.c.bf16 %v807_v18, %v806_v16  ;;  %v843_v30 = vpack.c.bf16 %v805_v19, %v804_v17  ;;  %v2701_v18 = vld [vmem:[%s3284_s15 + $0x40] sm:$0xff]  }
  0x90   : > { %v637_v36 = vpop.permute.xlu1 %636  ;;  %v632_v38 = vpop.permute.xlu0 %631  ;;  %v2563_v39 = vunpack.c.h.bf16 %v2701_v18 }
  0x91   : > { %v870_v46 = vshll.u32 %v843_v30, 16  ;;  %v809_v49 = vmul.f32 %v637_v36, %v536_v1  ;;  %2890 = vmatmul.mubr.msk.bf16.vlgmr.msra.gmra.mxu1 %vm1017_vm2, %v843_v30  ;;  %v808_v54 = vmul.f32 %v632_v38, %v535_v21  ;;  %v875_v55 = vshll.u32 %v3494_v29, 16 }
  0x92   : > { %2893 = vmatprep.mubr.msk.bf16.mxu1 %vm3146_vm0, %v3145_v5  ;;  %3044 = vmatpush3.bf16.msra.mxu1 %v1853_v25  ;;  %v868_v61 = vshrl.u32 %v843_v30, 16  ;;  %v458_v1 = vmul.f32 %v2554_v33, %v3297_v27  ;;  %v1758_v19 = vrot.slane %v3494_v29, 1  ;;  %v461_v21 = vmul.f32 %v2559_v53, %v3297_v27 }
  0x93   : > { %v872_v63 = vrot.slane %v870_v46, 1  ;;  %v3507_v3 = vpack.c.bf16 %v809_v49, %v808_v54  ;;  %v877_v17 = vrot.slane %v875_v55, 1  ;;  %v460_v25 = vmul.f32 %v2558_v57, %v3297_v27 }
  0x94   : > { %v647_v7 = vpop.permute.xlu1 %646  ;;  %v642_v8 = vpop.permute.xlu0 %641  ;;  %v542_v30 = vmax.f32 %v503_v56, 0.0  ;;  %v505_v36 = vadd.f32 %v3303_v32, %v459_v0  ;;  %v504_v38 = vadd.f32 %v3303_v32, %v458_v1  ;;  %v541_v49 = vmax.f32 %v502_v11, 0.0 }
  0x95   : > { %v811_v12 = vmul.f32 %v647_v7, %v538_v22  ;;  %v810_v13 = vmul.f32 %v642_v8, %v537_v51  ;;  %v873_v16 = vor.u32 %v872_v63, %v868_v61  ;;  %v1759_v20 = vrot.slane %v3507_v3, 1 }
  0x96   : > { %v883_v31 = vshll.u32 %v3507_v3, 16  ;;  %v2562_v51 = vunpack.c.l.bf16 %v2701_v18  ;;  %v507_v53 = vadd.f32 %v3303_v32, %v461_v21  ;;  %v879_v56 = vshrl.u32 %v3494_v29, 16 }
  0x97   : > { %v3515_v26 = vpack.c.bf16 %v811_v12, %v810_v13  ;;  %v878_v28 = vsel %vm866_vm3, %v873_v16, %v877_v17  ;;  %v3523_v40 = vsel %vm1757_vm4, %v1758_v19, %v1759_v20  ;;  %v506_v57 = vadd.f32 %v3303_v32, %v460_v25 }
  0x98   : > { %v657_v22 = vpop.permute.xlu1 %656  ;;  %v652_v33 = vpop.permute.xlu0 %651  ;;  %2812 = vmatmul.mubr.msk.bf16.vlgmr.msra.gmra.mxu0 %vm1017_vm2, %v878_v28  ;;  %v544_v0 = vmax.f32 %v505_v36, 0.0  ;;  %v543_v1 = vmax.f32 %v504_v38, 0.0  ;;  %v463_v7 = vmul.f32 %v2563_v39, %v3297_v27  ;;  %v881_v11 = vor.u32 %v879_v56, %v877_v17 }
  0x99   : > { %v813_v45 = vmul.f32 %v657_v22, %v540_v9  ;;  %v812_v46 = vmul.f32 %v652_v33, %v539_v10  ;;  %2966 = vmatpush3.bf16.msra.mxu0 %v1514_v42  ;;  %2894 = vmatmul.mubr.msk.bf16.gmra.mxu1 %vm1017_vm2, %v3494_v29  ;;  %v1761_v54 = vrot.slane %v3515_v26, 1  ;;  %v885_v42 = vrot.slane %v883_v31, 1 }
  0x9a   : > { %2815 = vmatprep.mubr.msk.bf16.mxu0 %vm3146_vm0, %v3145_v5  ;;  %2897 = vmatprep.mubr.msk.bf16.mxu1 %vm3146_vm0, %v3145_v5  ;;  %v462_v12 = vmul.f32 %v2562_v51, %v3297_v27  ;;  %v891_v18 = vshll.u32 %v3515_v26, 16  ;;  %v509_v25 = vadd.f32 %v3303_v32, %v463_v7  ;;  %v887_v36 = vshrl.u32 %v3507_v3, 16 }
  0x9b   : > { %v3533_v55 = vpack.c.bf16 %v813_v45, %v812_v46  ;;  %v3539_v8 = vsel %vm1757_vm4, %v1759_v20, %v1761_v54  ;;  %v3546_v16 = vsel %vm866_vm3, %v881_v11, %v885_v42  ;;  %v546_v20 = vmax.f32 %v507_v53, 0.0 }
  0x9c   : > { %v667_v61 = vpop.permute.xlu1 %666  ;;  %v662_v63 = vpop.permute.xlu0 %661  ;;  %v508_v31 = vadd.f32 %v3303_v32, %v462_v12  ;;  %v893_v38 = vrot.slane %v891_v18, 1  ;;  %v548_v46 = vmax.f32 %v509_v25, 0.0  ;;  %v889_v32 = vor.u32 %v887_v36, %v885_v42 }
  0x9d   : > { %v815_v9 = vmul.f32 %v667_v61, %v542_v30  ;;  %v814_v10 = vmul.f32 %v662_v63, %v541_v49  ;;  %v1763_v13 = vrot.slane %v3533_v55, 1  ;;  %v545_v30 = vmax.f32 %v506_v57, 0.0 }
  0x9e   : > { %v3573_v61 = vsel %vm866_vm3, %v889_v32, %v893_v38  ;;  %v550_v42 = vmax.f32 %v3314_v37, 0.0 }
  0x9f   : > { %v3543_v29 = vpack.c.bf16 %v815_v9, %v814_v10  ;;  %v3553_v17 = vsel %vm1757_vm4, %v1761_v54, %v1763_v13  ;;  %v547_v54 = vmax.f32 %v508_v31, 0.0  ;;  %v549_v10 = vmax.f32 %v3319_v41, 0.0 }
  0xa0   : > { %v677_v19 = vpop.permute.xlu1 %676  ;;  %v672_v21 = vpop.permute.xlu0 %671  ;;  %2816 = vmatmul.mubr.msk.bf16.gmra.mxu0 %vm1017_vm2, %v3546_v16 }
  0xa1   : > { %v817_v27 = vmul.f32 %v677_v19, %v544_v0  ;;  %v816_v28 = vmul.f32 %v672_v21, %v543_v1  ;;  %2898 = vmatmul.mubr.msk.bf16.gmra.mxu1 %vm1017_vm2, %v3507_v3  ;;  %2819 = vmatprep.mubr.msk.bf16.mxu0 %vm3146_vm0, %v3145_v5  ;;  %v1765_v22 = vrot.slane %v3543_v29, 1  ;;  %v899_v3 = vshll.u32 %v3533_v55, 16 }
  0xa2   : > { %2901 = vmatprep.mubr.msk.bf16.mxu1 %vm3146_vm0, %v3145_v5 }
  0xa3   : > { %v3563_v33 = vpack.c.bf16 %v817_v27, %v816_v28  ;;  %v3567_v49 = vsel %vm1757_vm4, %v1763_v13, %v1765_v22  ;;  %v895_v13 = vshrl.u32 %v3515_v26, 16  ;;  %v901_v18 = vrot.slane %v899_v3, 1 }
  0xa4   : > { %v687_v39 = vpop.permute.xlu1 %686  ;;  %v682_v45 = vpop.permute.xlu0 %681  ;;  %v551_v27 = vmax.f32 %v3325_v44, 0.0 }
  0xa5   : > { %v819_v51 = vmul.f32 %v687_v39, %v546_v20  ;;  %v818_v53 = vmul.f32 %v682_v45, %v545_v30  ;;  %v1767_v56 = vrot.slane %v3563_v33, 1  ;;  %v552_v20 = vmax.f32 %v3322_v43, 0.0 }
  0xa6   : > { %v897_v28 = vor.u32 %v895_v13, %v893_v38  ;;  %v554_v43 = vmax.f32 %v3337_v50, 0.0 }
  0xa7   : > { %v3570_v57 = vpack.c.bf16 %v819_v51, %v818_v53  ;;  %v3579_v1 = vsel %vm1757_vm4, %v1765_v22, %v1767_v56 }
  0xa8   : > { %v697_v63 = vpop.permute.xlu1 %696  ;;  %v692_v0 = vpop.permute.xlu0 %691  ;;  %2820 = vmatmul.mubr.msk.bf16.gmra.mxu0 %vm1017_vm2, %v3573_v61  ;;  %v3602_v22 = vsel %vm866_vm3, %v897_v28, %v901_v18 }
  0xa9   : > { %v821_v7 = vmul.f32 %v697_v63, %v548_v46  ;;  %v820_v9 = vmul.f32 %v692_v0, %v547_v54  ;;  %2902 = vmatmul.mubr.msk.bf16.gmra.mxu1 %vm1017_vm2, %v3515_v26  ;;  %2823 = vmatprep.mubr.msk.bf16.mxu0 %vm3146_vm0, %v3145_v5  ;;  %v1769_v11 = vrot.slane %v3570_v57, 1  ;;  %v907_v26 = vshll.u32 %v3543_v29, 16 }
  0xaa   : > { %2905 = vmatprep.mubr.msk.bf16.mxu1 %vm3146_vm0, %v3145_v5  ;;  %v553_v46 = vmax.f32 %v3340_v52, 0.0  ;;  %v903_v54 = vshrl.u32 %v3533_v55, 16  ;;  %v556_v63 = vmax.f32 %v3352_v59, 0.0 }
  0xab   : > { %v3590_v12 = vpack.c.bf16 %v821_v7, %v820_v9  ;;  %v3595_v37 = vsel %vm1757_vm4, %v1767_v56, %v1769_v11  ;;  %v909_v32 = vrot.slane %v907_v26, 1 }
  0xac   : > { %v707_v19 = vpop.permute.xlu1 %706  ;;  %v702_v21 = vpop.permute.xlu0 %701 }
  0xad   : > { %v823_v41 = vmul.f32 %v707_v19, %v550_v42  ;;  %v822_v25 = vmul.f32 %v702_v21, %v549_v10  ;;  %v1771_v30 = vrot.slane %v3590_v12, 1  ;;  %v555_v42 = vmax.f32 %v3355_v62, 0.0 }
  0xae   : > { %v905_v10 = vor.u32 %v903_v54, %v901_v18  ;;  %v558_v21 = vmax.f32 %v3367_v4, 0.0  ;;  %v557_v62 = vmax.f32 %v3370_v6, 0.0  ;;  %v911_v6 = vshrl.u32 %v3543_v29, 16 }
  0xaf   : > { %v3599_v31 = vpack.c.bf16 %v823_v41, %v822_v25  ;;  %v3609_v45 = vsel %vm1757_vm4, %v1769_v11, %v1771_v30 }
  0xb0   : > { %v717_v36 = vpop.permute.xlu1 %716  ;;  %v712_v39 = vpop.permute.xlu0 %711  ;;  %2824 = vmatmul.mubr.msk.bf16.gmra.mxu0 %vm1017_vm2, %v3602_v22  ;;  %v3636_v59 = vsel %vm866_vm3, %v905_v10, %v909_v32 }
  0xb1   : > { %v825_v44 = vmul.f32 %v717_v36, %v552_v20  ;;  %v824_v38 = vmul.f32 %v712_v39, %v551_v27  ;;  %2906 = vmatmul.mubr.msk.bf16.gmra.mxu1 %vm1017_vm2, %v3533_v55  ;;  %2827 = vmatprep.mubr.msk.bf16.mxu0 %vm3146_vm0, %v3145_v5  ;;  %v939_v51 = vshll.u32 %v3599_v31, 16  ;;  %v1773_v50 = vrot.slane %v3599_v31, 1 }
  0xb2   : > { %2909 = vmatprep.mubr.msk.bf16.mxu1 %vm3146_vm0, %v3145_v5  ;;  %v943_v11 = vshrl.u32 %v3599_v31, 16  ;;  %v915_v20 = vshll.u32 %v3563_v33, 16 }
  0xb3   : > { %v3620_v53 = vpack.c.bf16 %v825_v44, %v824_v38  ;;  %v3624_v52 = vrot.slane %v939_v51, 1  ;;  %v3627_v0 = vsel %vm1757_vm4, %v1771_v30, %v1773_v50 }
  0xb4   : > { %v727_v56 = vpop.permute.xlu1 %726  ;;  %v722_v3 = vpop.permute.xlu0 %721  ;;  %v917_v38 = vrot.slane %v915_v20, 1 }
  0xb5   : > { %v827_v7 = vmul.f32 %v727_v56, %v554_v43  ;;  %v826_v9 = vmul.f32 %v722_v3, %v553_v46  ;;  %v947_v13 = vshll.u32 %v3620_v53, 16  ;;  %v1775_v55 = vrot.slane %v3620_v53, 1 }
  0xb6   : > { %v945_v18 = vor.u32 %v943_v11, %v3624_v52  ;;  %v951_v4 = vshrl.u32 %v3620_v53, 16  ;;  %v560_v56 = vmax.f32 %v3382_v14, 0.0  ;;  %v559_v3 = vmax.f32 %v3385_v15, 0.0 }
  0xb7   : > { %v3633_v19 = vpack.c.bf16 %v827_v7, %v826_v9  ;;  %v949_v27 = vrot.slane %v947_v13, 1  ;;  %v3645_v28 = vsel %vm1757_vm4, %v1773_v50, %v1775_v55  ;;  %v913_v9 = vor.u32 %v911_v6, %v909_v32 }
  0xb8   : > { %v737_v41 = vpop.permute.xlu1 %736  ;;  %v732_v25 = vpop.permute.xlu0 %731  ;;  %2828 = vmatmul.mubr.msk.bf16.gmra.mxu0 %vm1017_vm2, %v3636_v59  ;;  %v562_v15 = vmax.f32 %v3397_v23, 0.0 }
  0xb9   : > { %v829_v30 = vmul.f32 %v737_v41, %v556_v63  ;;  %v828_v26 = vmul.f32 %v732_v25, %v555_v42  ;;  %2910 = vmatmul.mubr.msk.bf16.gmra.mxu1 %vm1017_vm2, %v3543_v29  ;;  %2831 = vmatprep.mubr.msk.bf16.mxu0 %vm3146_vm0, %v3145_v5  ;;  %v955_v36 = vshll.u32 %v3633_v19, 16  ;;  %v3657_v39 = vsel %vm866_vm3, %v945_v18, %v949_v27 }
  0xba   : > { %2913 = vmatprep.mubr.msk.bf16.mxu1 %vm3146_vm0, %v3145_v5  ;;  %v1777_v43 = vrot.slane %v3633_v19, 1  ;;  %v953_v46 = vor.u32 %v951_v4, %v949_v27  ;;  %v959_v10 = vshrl.u32 %v3633_v19, 16  ;;  %v3676_v14 = vsel %vm866_vm3, %v913_v9, %v917_v38 }
  0xbb   : > { %v3660_v44 = vpack.c.bf16 %v829_v30, %v828_v26  ;;  %v957_v51 = vrot.slane %v955_v36, 1  ;;  %v561_v41 = vmax.f32 %v3400_v24, 0.0  ;;  %v919_v4 = vshrl.u32 %v3563_v33, 16 }
  0xbc   : > { %v747_v50 = vpop.permute.xlu1 %746  ;;  %v742_v54 = vpop.permute.xlu0 %741  ;;  %v3665_v29 = vsel %vm1757_vm4, %v1775_v55, %v1777_v43  ;;  %v923_v55 = vshll.u32 %v3570_v57, 16 }
  0xbd   : > { %v831_v63 = vmul.f32 %v747_v50, %v558_v21  ;;  %v830_v7 = vmul.f32 %v742_v54, %v557_v62  ;;  %v3668_v42 = vsel %vm866_vm3, %v953_v46, %v957_v51  ;;  %v963_v11 = vshll.u32 %v3660_v44, 16 }
  0xbe   : > { %v1779_v13 = vrot.slane %v3660_v44, 1  ;;  %v961_v25 = vor.u32 %v959_v10, %v957_v51  ;;  %v967_v23 = vshrl.u32 %v3660_v44, 16  ;;  %v921_v9 = vor.u32 %v919_v4, %v917_v38 }
  0xbf   : > { %v3673_v20 = vpack.c.bf16 %v831_v63, %v830_v7  ;;  %v965_v62 = vrot.slane %v963_v11, 1  ;;  %v927_v4 = vshrl.u32 %v3570_v57, 16 }
  0xc0   : > { %v757_v21 = vpop.permute.xlu1 %756  ;;  %v752_v32 = vpop.permute.xlu0 %751  ;;  %2832 = vmatmul.mubr.msk.bf16.gmra.mxu0 %vm1017_vm2, %v3676_v14  ;;  %v3684_v18 = vsel %vm1757_vm4, %v1777_v43, %v1779_v13  ;;  %v925_v43 = vrot.slane %v923_v55, 1 }
  0xc1   : > { %v833_v27 = vmul.f32 %v757_v21, %v560_v56  ;;  %v832_v30 = vmul.f32 %v752_v32, %v559_v3  ;;  %2914 = vmatmul.mubr.msk.bf16.gmra.mxu1 %vm1017_vm2, %v3563_v33  ;;  %2835 = vmatprep.mubr.msk.bf16.mxu0 %vm3146_vm0, %v3145_v5  ;;  %v971_v26 = vshll.u32 %v3673_v20, 16  ;;  %v3696_v24 = vsel %vm866_vm3, %v961_v25, %v965_v62 }
  0xc2   : > { %2917 = vmatprep.mubr.msk.bf16.mxu1 %vm3146_vm0, %v3145_v5  ;;  %v1781_v36 = vrot.slane %v3673_v20, 1  ;;  %v969_v46 = vor.u32 %v967_v23, %v965_v62  ;;  %v564_v56 = vmax.f32 %v3412_v34, 0.0  ;;  %v563_v3 = vmax.f32 %v3415_v35, 0.0 }
  0xc3   : > { %v3699_v6 = vpack.c.bf16 %v833_v27, %v832_v30  ;;  %v973_v51 = vrot.slane %v971_v26, 1  ;;  %v975_v11 = vshrl.u32 %v3673_v20, 16  ;;  %v3715_v34 = vsel %vm866_vm3, %v921_v9, %v925_v43 }
  0xc4   : > { %v767_v50 = vpop.permute.xlu1 %766  ;;  %v762_v54 = vpop.permute.xlu0 %761  ;;  %v3704_v33 = vsel %vm1757_vm4, %v1779_v13, %v1781_v36  ;;  %v566_v35 = vmax.f32 %v3427_v47, 0.0  ;;  %v931_v13 = vshll.u32 %v3590_v12, 16 }
  0xc5   : > { %v835_v63 = vmul.f32 %v767_v50, %v562_v15  ;;  %v834_v7 = vmul.f32 %v762_v54, %v561_v41  ;;  %v3707_v10 = vsel %vm866_vm3, %v969_v46, %v973_v51  ;;  %v979_v55 = vshll.u32 %v3699_v6, 16 }
  0xc6   : > { %v1783_v21 = vrot.slane %v3699_v6, 1  ;;  %v565_v41 = vmax.f32 %v3430_v48, 0.0  ;;  %v977_v25 = vor.u32 %v975_v11, %v973_v51  ;;  %v983_v47 = vshrl.u32 %v3699_v6, 16 }
  0xc7   : > { %v3712_v32 = vpack.c.bf16 %v835_v63, %v834_v7  ;;  %v981_v62 = vrot.slane %v979_v55, 1  ;;  %v933_v51 = vrot.slane %v931_v13, 1  ;;  %v568_v63 = vmax.f32 %v3442_v58, 0.0 }
  0xc8   : > { %v777_v15 = vpop.permute.xlu1 %776  ;;  %v772_v38 = vpop.permute.xlu0 %771  ;;  %2836 = vmatmul.mubr.msk.bf16.gmra.mxu0 %vm1017_vm2, %v3715_v34  ;;  %v3723_v27 = vsel %vm1757_vm4, %v1781_v36, %v1783_v21  ;;  %v929_v55 = vor.u32 %v927_v4, %v925_v43 }
  0xc9   : > { %v837_v30 = vmul.f32 %v777_v15, %v564_v56  ;;  %v836_v23 = vmul.f32 %v772_v38, %v563_v3  ;;  %2918 = vmatmul.mubr.msk.bf16.gmra.mxu1 %vm1017_vm2, %v3570_v57  ;;  %2839 = vmatprep.mubr.msk.bf16.mxu0 %vm3146_vm0, %v3145_v5  ;;  %v987_v26 = vshll.u32 %v3712_v32, 16  ;;  %v3735_v48 = vsel %vm866_vm3, %v977_v25, %v981_v62 }
  0xca   : > { %2921 = vmatprep.mubr.msk.bf16.mxu1 %vm3146_vm0, %v3145_v5  ;;  %v1785_v36 = vrot.slane %v3712_v32, 1  ;;  %v985_v50 = vor.u32 %v983_v47, %v981_v62  ;;  %v567_v57 = vmax.f32 %v3445_v60, 0.0  ;;  %v3756_v38 = vsel %vm866_vm3, %v929_v55, %v933_v51 }
  0xcb   : > { %v3738_v46 = vpack.c.bf16 %v837_v30, %v836_v23  ;;  %v3740_v54 = vrot.slane %v987_v26, 1  ;;  %v935_v62 = vshrl.u32 %v3590_v12, 16 }
  0xcc   : > { %v787_v56 = vpop.permute.xlu1 %786  ;;  %v782_v3 = vpop.permute.xlu0 %781  ;;  %v3747_v7 = vsel %vm1757_vm4, %v1783_v21, %v1785_v36 }
  0xcd   : > { %v839_v9 = vmul.f32 %v787_v56, %v566_v35  ;;  %v838_v11 = vmul.f32 %v782_v3, %v565_v41  ;;  %v3751_v13 = vsel %vm866_vm3, %v985_v50, %v3740_v54  ;;  %v569_v35 = vmax.f32 %v3455_v2, 0.0 }
  0xce   : > { %v937_v26 = vor.u32 %v935_v62, %v933_v51 }
  0xcf   : > { %v3753_v15 = vpack.c.bf16 %v839_v9, %v838_v11 }
  0xd0   : > { %v797_v58 = vpop.permute.xlu1 %796  ;;  %v792_v25 = vpop.permute.xlu0 %791  ;;  %2840 = vmatmul.mubr.msk.bf16.gmra.mxu0 %vm1017_vm2, %v3756_v38  ;;  %v3778_v2 = vsel %vm866_vm3, %v937_v26, %v3624_v52 }
  0xd1   : > { %v841_v60 = vmul.f32 %v797_v58, %v568_v63  ;;  %v3760_v21 = vmul.f32 %v792_v25, %v567_v57  ;;  %2922 = vmatmul.mubr.msk.bf16.gmra.mxu1 %vm1017_vm2, %v3590_v12  ;;  %2843 = vmatprep.mubr.msk.bf16.mxu0 %vm3146_vm0, %v3145_v5  ;;  %v1003_v43 = vshll.u32 %v3753_v15, 16  ;;  %v1007_v4 = vshrl.u32 %v3753_v15, 16 }
  0xd2   : > { %2925 = vmatprep.mubr.msk.bf16.mxu1 %vm3146_vm0, %v3145_v5 }
  0xd3   : > { %v3771_v41 = vpack.c.bf16 %v841_v60, %v3760_v21  ;;  %v1005_v30 = vrot.slane %v1003_v43, 1  ;;  %v861_v25 = vpack.c.bf16 %v3760_v21, %v3760_v21 }
  0xd4   : > { %v802_v23 = vpop.permute.xlu0 %801 }
  0xd5   : > { %v1490_v47 = vshll.u32 %v3771_v41, 16  ;;  %v842_v50 = vmul.f32 %v802_v23, %v569_v35  ;;  %v1009_v3 = vor.u32 %v1007_v4, %v1005_v30  ;;  %v1494_v51 = vshrl.u32 %v3771_v41, 16 }
  0xd6   : > { %v1791_v52 = vrot.slane %v3771_v41, 1  ;;  %v1011_v43 = vshll.u32 %v861_v25, 16 }
  0xd7   : > { %v1492_v56 = vrot.slane %v1490_v47, 1  ;;  %v3780_v63 = vpack.c.bf16 %v842_v50, %v842_v50 }
  0xd8   : > { %2844 = vmatmul.mubr.msk.bf16.gmra.mxu0 %vm1017_vm2, %v3778_v2  ;;  %v1013_v21 = vrot.slane %v1011_v43, 1 }
  0xd9   : > { %2926 = vmatmul.mubr.msk.bf16.gmra.mxu1 %vm1017_vm2, %v3599_v31  ;;  %2847 = vmatprep.mubr.msk.bf16.mxu0 %vm3146_vm0, %v3145_v5  ;;  %v3789_v12 = vsel %vm866_vm3, %v1009_v3, %v1492_v56  ;;  %v1498_v57 = vshll.u32 %v3780_v63, 16  ;;  %v1793_v9 = vrot.slane %v3780_v63, 1  ;;  %v1496_v11 = vor.u32 %v1494_v51, %v1492_v56 }
  0xda   : > { %2929 = vmatprep.mubr.msk.bf16.mxu1 %vm3146_vm0, %v3145_v5  ;;  %v1014_v62 = vsel %vm866_vm3, %v1009_v3, %v1013_v21 }
  0xdb   : > { %v1500_v55 = vrot.slane %v1498_v57, 1  ;;  %v3802_v31 = vsel %vm1757_vm4, %v1791_v52, %v1793_v9 }
  0xdd   : > { %v3805_v58 = vsel %vm866_vm3, %v1496_v11, %v1500_v55 }
  0xe0   : > { %2848 = vmatmul.mubr.msk.bf16.gmra.mxu0 %vm1017_vm2, %v3657_v39 }
  0xe1   : > { %2930 = vmatmul.mubr.msk.bf16.gmra.mxu1 %vm1017_vm2, %v3620_v53  ;;  %2851 = vmatprep.mubr.msk.bf16.mxu0 %vm3146_vm0, %v3145_v5  ;;  %v995_v53 = vshll.u32 %v3738_v46, 16 }
  0xe2   : > { %2933 = vmatprep.mubr.msk.bf16.mxu1 %vm3146_vm0, %v3145_v5 }
  0xe8   : > { %2852 = vmatmul.mubr.msk.bf16.gmra.mxu0 %vm1017_vm2, %v3668_v42 }
  0xe9   : > { %2934 = vmatmul.mubr.msk.bf16.gmra.mxu1 %vm1017_vm2, %v3633_v19  ;;  %2855 = vmatprep.mubr.msk.bf16.mxu0 %vm3146_vm0, %v3145_v5  ;;  %v991_v19 = vshrl.u32 %v3712_v32, 16 }
  0xea   : > { %2937 = vmatprep.mubr.msk.bf16.mxu1 %vm3146_vm0, %v3145_v5 }
  0xf0   : > { %2856 = vmatmul.mubr.msk.bf16.gmra.mxu0 %vm1017_vm2, %v3696_v24 }
  0xf1   : > { %2938 = vmatmul.mubr.msk.bf16.gmra.mxu1 %vm1017_vm2, %v3660_v44  ;;  %2859 = vmatprep.mubr.msk.bf16.mxu0 %vm3146_vm0, %v3145_v5  ;;  %v997_v44 = vrot.slane %v995_v53, 1 }
  0xf2   : > { %2941 = vmatprep.mubr.msk.bf16.mxu1 %vm3146_vm0, %v3145_v5 }
  0xf8   : > { %2860 = vmatmul.mubr.msk.bf16.gmra.mxu0 %vm1017_vm2, %v3707_v10 }
  0xf9   : > { %2942 = vmatmul.mubr.msk.bf16.gmra.mxu1 %vm1017_vm2, %v3673_v20  ;;  %2863 = vmatprep.mubr.msk.bf16.mxu0 %vm3146_vm0, %v3145_v5  ;;  %v993_v20 = vor.u32 %v991_v19, %v3740_v54  ;;  %v999_v54 = vshrl.u32 %v3738_v46, 16 }
  0xfa   : > { %2945 = vmatprep.mubr.msk.bf16.mxu1 %vm3146_vm0, %v3145_v5 }
  0xfb   : > { %v1001_v60 = vor.u32 %v999_v54, %v997_v44 }
  0xfd   : > { %v3873_v35 = vsel %vm866_vm3, %v1001_v60, %v1005_v30  ;;  %v1015_v30 = vshrl.u32 %v861_v25, 16 }
 0x100   : > { %2864 = vmatmul.mubr.msk.bf16.gmra.mxu0 %vm1017_vm2, %v3735_v48 }
 0x101   : > { %2946 = vmatmul.mubr.msk.bf16.gmra.mxu1 %vm1017_vm2, %v3699_v6  ;;  %2867 = vmatprep.mubr.msk.bf16.mxu0 %vm3146_vm0, %v3145_v5  ;;  %v3859_v6 = vsel %vm866_vm3, %v993_v20, %v997_v44 }
 0x102   : > { %2949 = vmatprep.mubr.msk.bf16.mxu1 %vm3146_vm0, %v3145_v5 }
 0x108   : > { %2868 = vmatmul.mubr.msk.bf16.gmra.mxu0 %vm1017_vm2, %v3751_v13 }
 0x109   : > { %2950 = vmatmul.mubr.msk.bf16.gmra.mxu1 %vm1017_vm2, %v3712_v32  ;;  %2871 = vmatprep.mubr.msk.bf16.mxu0 %vm3146_vm0, %v3145_v5 }
 0x10a   : > { %2953 = vmatprep.mubr.msk.bf16.mxu1 %vm3146_vm0, %v3145_v5 }
 0x110   : > { %2872 = vmatmul.mubr.msk.bf16.gmra.mxu0 %vm1017_vm2, %v3859_v6 }
 0x111   : > { %2954 = vmatmul.mubr.msk.bf16.gmra.mxu1 %vm1017_vm2, %v3738_v46  ;;  %2875 = vmatprep.mubr.msk.bf16.mxu0 %vm3146_vm0, %v3145_v5 }
 0x112   : > { %2957 = vmatprep.mubr.msk.bf16.mxu1 %vm3146_vm0, %v3145_v5 }
 0x118   : > { %2876 = vmatmul.mubr.msk.bf16.gmra.mxu0 %vm1017_vm2, %v3873_v35 }
 0x119   : > { %2958 = vmatmul.mubr.msk.bf16.gmra.mxu1 %vm1017_vm2, %v3753_v15  ;;  %2879 = vmatprep.mubr.msk.bf16.mxu0 %vm3146_vm0, %v3145_v5 }
 0x11a   : > { %2961 = vmatprep.mubr.msk.bf16.mxu1 %vm3146_vm0, %v3145_v5 }
 0x120   : > { %2880 = vmatmul.mubr.msk.bf16.gmra.mxu0 %vm1017_vm2, %v1014_v62 }
 0x121   : > { %2962 = vmatmul.mubr.msk.bf16.gmra.mxu1 %vm1017_vm2, %v861_v25  ;;  %2883 = vmatprep.mubr.msk.bf16.mxu0 %vm3146_vm0, %v3145_v5 }
 0x122   : > { %3045 = vmatprep.mubr.msk.bf16.mxu1 %vm3146_vm0, %v3145_v5 }
 0x128   : > { %2884 = vmatmul.mubr.msk.bf16.gmra.mxu0 %vm1017_vm2, %v1015_v30 }
 0x129   : > { %3046 = vmatmul.mubr.msk.bf16.vlgmr.msra.gmra.mxu1 %vm1017_vm2, %v3523_v40  ;;  %2967 = vmatprep.mubr.msk.bf16.mxu0 %vm3146_vm0, %v3145_v5 }
 0x12a   : > { %3049 = vmatprep.mubr.msk.bf16.mxu1 %vm3146_vm0, %v3145_v5 }
 0x130   : > { %2968 = vmatmul.mubr.msk.bf16.vlgmr.msra.gmra.mxu0 %vm1017_vm2, %v3546_v16 }
 0x131   : > { %3050 = vmatmul.mubr.msk.bf16.gmra.mxu1 %vm1017_vm2, %v3539_v8  ;;  %2971 = vmatprep.mubr.msk.bf16.mxu0 %vm3146_vm0, %v3145_v5 }
 0x132   : > { %3053 = vmatprep.mubr.msk.bf16.mxu1 %vm3146_vm0, %v3145_v5 }
 0x138   : > { %2972 = vmatmul.mubr.msk.bf16.gmra.mxu0 %vm1017_vm2, %v3573_v61 }
 0x139   : > { %3054 = vmatmul.mubr.msk.bf16.gmra.mxu1 %vm1017_vm2, %v3553_v17  ;;  %2975 = vmatprep.mubr.msk.bf16.mxu0 %vm3146_vm0, %v3145_v5 }
 0x13a   : > { %3057 = vmatprep.mubr.msk.bf16.mxu1 %vm3146_vm0, %v3145_v5 }
 0x140   : > { %2976 = vmatmul.mubr.msk.bf16.gmra.mxu0 %vm1017_vm2, %v3602_v22 }
 0x141   : > { %3058 = vmatmul.mubr.msk.bf16.gmra.mxu1 %vm1017_vm2, %v3567_v49  ;;  %2979 = vmatprep.mubr.msk.bf16.mxu0 %vm3146_vm0, %v3145_v5 }
 0x142   : > { %3061 = vmatprep.mubr.msk.bf16.mxu1 %vm3146_vm0, %v3145_v5 }
 0x148   : > { %2980 = vmatmul.mubr.msk.bf16.gmra.mxu0 %vm1017_vm2, %v3636_v59 }
 0x149   : > { %3062 = vmatmul.mubr.msk.bf16.gmra.mxu1 %vm1017_vm2, %v3579_v1  ;;  %2983 = vmatprep.mubr.msk.bf16.mxu0 %vm3146_vm0, %v3145_v5 }
 0x14a   : > { %3065 = vmatprep.mubr.msk.bf16.mxu1 %vm3146_vm0, %v3145_v5 }
 0x150   : > { %2984 = vmatmul.mubr.msk.bf16.gmra.mxu0 %vm1017_vm2, %v3676_v14 }
 0x151   : > { %v1338_v40 = vpop.f32.mrf.mxu1  ;;  %3066 = vmatmul.mubr.msk.bf16.gmra.mxu1 %vm1017_vm2, %v3595_v37  ;;  %2987 = vmatprep.mubr.msk.bf16.mxu0 %vm3146_vm0, %v3145_v5 }
 0x152   : > { %3069 = vmatprep.mubr.msk.bf16.mxu1 %vm3146_vm0, %v3145_v5 }
 0x153   : > { %v2891_v8 = vpop.f32.mrf.mxu1 }
 0x155   : > { %v1341_v16 = vpop.f32.mrf.mxu1 }
 0x157   : > { %v2892_v17 = vpop.f32.mrf.mxu1 }
 0x158   : > { %v1113_v49 = vpop.f32.mrf.mxu0  ;;  %2988 = vmatmul.mubr.msk.bf16.gmra.mxu0 %vm1017_vm2, %v3715_v34 }
 0x159   : > { %v3939_v61 = vadd.f32 %v1338_v40, %v1113_v49  ;;  %v1346_v1 = vpop.f32.mrf.mxu1  ;;  %3070 = vmatmul.mubr.msk.bf16.gmra.mxu1 %vm1017_vm2, %v3609_v45  ;;  %2991 = vmatprep.mubr.msk.bf16.mxu0 %vm3146_vm0, %v3145_v5 }
 0x15a   : > { %v2813_v37 = vpop.f32.mrf.mxu0  ;;  %3073 = vmatprep.mubr.msk.bf16.mxu1 %vm3146_vm0, %v3145_v5 }
 0x15b   : > { %v2895_v22 = vpop.f32.mrf.mxu1 }
 0x15c   : > { %v1116_v59 = vpop.f32.mrf.mxu0 }
 0x15d   : > { %v3947_v14 = vadd.f32 %v1341_v16, %v1116_v59  ;;  %v1349_v23 = vpop.f32.mrf.mxu1 }
 0x15e   : > { %v2814_v47 = vpop.f32.mrf.mxu0 }
 0x15f   : > { %v2896_v34 = vpop.f32.mrf.mxu1 }
 0x160   : > { %v1121_v26 = vpop.f32.mrf.mxu0  ;;  %2992 = vmatmul.mubr.msk.bf16.gmra.mxu0 %vm1017_vm2, %v3756_v38 }
 0x161   : > { %v3951_v4 = vadd.f32 %v1346_v1, %v1121_v26  ;;  %v1354_v45 = vpop.f32.mrf.mxu1  ;;  %3074 = vmatmul.mubr.msk.bf16.gmra.mxu1 %vm1017_vm2, %v3627_v0  ;;  %2995 = vmatprep.mubr.msk.bf16.mxu0 %vm3146_vm0, %v3145_v5 }
 0x162   : > { %v2817_v50 = vpop.f32.mrf.mxu0  ;;  %3077 = vmatprep.mubr.msk.bf16.mxu1 %vm3146_vm0, %v3145_v5 }
 0x163   : > { %v2899_v56 = vpop.f32.mrf.mxu1 }
 0x164   : > { %v1124_v3 = vpop.f32.mrf.mxu0 }
 0x165   : > { %v3959_v51 = vadd.f32 %v1349_v23, %v1124_v3  ;;  %v1357_v57 = vpop.f32.mrf.mxu1 }
 0x166   : > { %v2818_v11 = vpop.f32.mrf.mxu0 }
 0x167   : > { %v2900_v38 = vpop.f32.mrf.mxu1 }
 0x168   : > { %v1129_v55 = vpop.f32.mrf.mxu0  ;;  %2996 = vmatmul.mubr.msk.bf16.gmra.mxu0 %vm1017_vm2, %v3778_v2 }
 0x169   : > { %v3963_v53 = vadd.f32 %v1354_v45, %v1129_v55  ;;  %v1362_v0 = vpop.f32.mrf.mxu1  ;;  %3078 = vmatmul.mubr.msk.bf16.gmra.mxu1 %vm1017_vm2, %v3645_v28  ;;  %2999 = vmatprep.mubr.msk.bf16.mxu0 %vm3146_vm0, %v3145_v5 }
 0x16a   : > { %v2821_v19 = vpop.f32.mrf.mxu0  ;;  %3081 = vmatprep.mubr.msk.bf16.mxu1 %vm3146_vm0, %v3145_v5 }
 0x16b   : > { %v2903_v44 = vpop.f32.mrf.mxu1 }
 0x16c   : > { %v1132_v20 = vpop.f32.mrf.mxu0 }
 0x16d   : > { %v3971_v25 = vadd.f32 %v1357_v57, %v1132_v20  ;;  %v1365_v54 = vpop.f32.mrf.mxu1 }
 0x16e   : > { %v2822_v60 = vpop.f32.mrf.mxu0 }
 0x16f   : > { %v2904_v2 = vpop.f32.mrf.mxu1 }
 0x170   : > { %v1137_v43 = vpop.f32.mrf.mxu0  ;;  %3000 = vmatmul.mubr.msk.bf16.gmra.mxu0 %vm1017_vm2, %v3657_v39 }
 0x171   : > { %v3975_v21 = vadd.f32 %v1362_v0, %v1137_v43  ;;  %v1370_v28 = vpop.f32.mrf.mxu1  ;;  %3082 = vmatmul.mubr.msk.bf16.gmra.mxu1 %vm1017_vm2, %v3665_v29  ;;  %3003 = vmatprep.mubr.msk.bf16.mxu0 %vm3146_vm0, %v3145_v5 }
 0x172   : > { %v2825_v62 = vpop.f32.mrf.mxu0  ;;  %3085 = vmatprep.mubr.msk.bf16.mxu1 %vm3146_vm0, %v3145_v5 }
 0x173   : > { %v2907_v30 = vpop.f32.mrf.mxu1 }
 0x174   : > { %v1140_v40 = vpop.f32.mrf.mxu0 }
 0x175   : > { %v3983_v8 = vadd.f32 %v1365_v54, %v1140_v40  ;;  %v1373_v16 = vpop.f32.mrf.mxu1 }
 0x176   : > { %v2826_v17 = vpop.f32.mrf.mxu0 }
 0x177   : > { %v2908_v39 = vpop.f32.mrf.mxu1 }
 0x178   : > { %v1145_v49 = vpop.f32.mrf.mxu0  ;;  %3004 = vmatmul.mubr.msk.bf16.gmra.mxu0 %vm1017_vm2, %v3668_v42 }
 0x179   : > { %v3987_v1 = vadd.f32 %v1370_v28, %v1145_v49  ;;  %v1378_v29 = vpop.f32.mrf.mxu1  ;;  %3086 = vmatmul.mubr.msk.bf16.gmra.mxu1 %vm1017_vm2, %v3684_v18  ;;  %3007 = vmatprep.mubr.msk.bf16.mxu0 %vm3146_vm0, %v3145_v5 }
 0x17a   : > { %v2829_v37 = vpop.f32.mrf.mxu0  ;;  %3089 = vmatprep.mubr.msk.bf16.mxu1 %vm3146_vm0, %v3145_v5 }
 0x17b   : > { %v2911_v22 = vpop.f32.mrf.mxu1 }
 0x17c   : > { %v1148_v59 = vpop.f32.mrf.mxu0 }
 0x17d   : > { %v3995_v23 = vadd.f32 %v1373_v16, %v1148_v59  ;;  %v1381_v47 = vpop.f32.mrf.mxu1  ;;  %v1787_v16 = vrot.slane %v3738_v46, 1 }
 0x17e   : > { %v2830_v34 = vpop.f32.mrf.mxu0 }
 0x17f   : > { %v2912_v42 = vpop.f32.mrf.mxu1 }
 0x180   : > { %v1153_v26 = vpop.f32.mrf.mxu0  ;;  %3008 = vmatmul.mubr.msk.bf16.gmra.mxu0 %vm1017_vm2, %v3696_v24 }
 0x181   : > { %v3999_v45 = vadd.f32 %v1378_v29, %v1153_v26  ;;  %v1386_v18 = vpop.f32.mrf.mxu1  ;;  %3090 = vmatmul.mubr.msk.bf16.gmra.mxu1 %vm1017_vm2, %v3704_v33  ;;  %3011 = vmatprep.mubr.msk.bf16.mxu0 %vm3146_vm0, %v3145_v5 }
 0x182   : > { %v2833_v50 = vpop.f32.mrf.mxu0  ;;  %3093 = vmatprep.mubr.msk.bf16.mxu1 %vm3146_vm0, %v3145_v5 }
 0x183   : > { %v2915_v56 = vpop.f32.mrf.mxu1 }
 0x184   : > { %v1156_v3 = vpop.f32.mrf.mxu0 }
 0x185   : > { %v4007_v57 = vadd.f32 %v1381_v47, %v1156_v3  ;;  %v1389_v11 = vpop.f32.mrf.mxu1 }
 0x186   : > { %v2834_v38 = vpop.f32.mrf.mxu0 }
 0x187   : > { %v2916_v24 = vpop.f32.mrf.mxu1 }
 0x188   : > { %v1161_v55 = vpop.f32.mrf.mxu0  ;;  %3012 = vmatmul.mubr.msk.bf16.gmra.mxu0 %vm1017_vm2, %v3707_v10 }
 0x189   : > { %v4011_v0 = vadd.f32 %v1386_v18, %v1161_v55  ;;  %v1394_v33 = vpop.f32.mrf.mxu1  ;;  %3094 = vmatmul.mubr.msk.bf16.gmra.mxu1 %vm1017_vm2, %v3723_v27  ;;  %3015 = vmatprep.mubr.msk.bf16.mxu0 %vm3146_vm0, %v3145_v5 }
 0x18a   : > { %v2837_v19 = vpop.f32.mrf.mxu0  ;;  %3097 = vmatprep.mubr.msk.bf16.mxu1 %vm3146_vm0, %v3145_v5 }
 0x18b   : > { %v2919_v44 = vpop.f32.mrf.mxu1 }
 0x18c   : > { %v1164_v20 = vpop.f32.mrf.mxu0 }
 0x18d   : > { %v4019_v54 = vadd.f32 %v1389_v11, %v1164_v20  ;;  %v1397_v60 = vpop.f32.mrf.mxu1 }
 0x18e   : > { %v2838_v2 = vpop.f32.mrf.mxu0 }
 0x18f   : > { %v2920_v10 = vpop.f32.mrf.mxu1 }
 0x190   : > { %v1169_v43 = vpop.f32.mrf.mxu0  ;;  %3016 = vmatmul.mubr.msk.bf16.gmra.mxu0 %vm1017_vm2, %v3735_v48 }
 0x191   : > { %v4023_v28 = vadd.f32 %v1394_v33, %v1169_v43  ;;  %v1402_v27 = vpop.f32.mrf.mxu1  ;;  %3098 = vmatmul.mubr.msk.bf16.gmra.mxu1 %vm1017_vm2, %v3747_v7  ;;  %3019 = vmatprep.mubr.msk.bf16.mxu0 %vm3146_vm0, %v3145_v5  ;;  %v1788_v7 = vsel %vm1757_vm4, %v1785_v36, %v1787_v16 }
 0x192   : > { %v2841_v62 = vpop.f32.mrf.mxu0  ;;  %3101 = vmatprep.mubr.msk.bf16.mxu1 %vm3146_vm0, %v3145_v5 }
 0x193   : > { %v2923_v30 = vpop.f32.mrf.mxu1 }
 0x194   : > { %v1172_v40 = vpop.f32.mrf.mxu0 }
 0x195   : > { %v4032_v17 = vadd.f32 %v1397_v60, %v1172_v40  ;;  %v1405_v48 = vpop.f32.mrf.mxu1 }
 0x196   : > { %v2842_v39 = vpop.f32.mrf.mxu0 }
 0x197   : > { %v2924_v49 = vpop.f32.mrf.mxu1 }
 0x198   : > { %v1177_v29 = vpop.f32.mrf.mxu0  ;;  %3020 = vmatmul.mubr.msk.bf16.gmra.mxu0 %vm1017_vm2, %v3751_v13  ;;  %v1789_v13 = vrot.slane %v3753_v15, 1 }
 0x199   : > { %v4039_v37 = vadd.f32 %v1402_v27, %v1177_v29  ;;  %v1410_v22 = vpop.f32.mrf.mxu1  ;;  %3102 = vmatmul.mubr.msk.bf16.gmra.mxu1 %vm1017_vm2, %v1788_v7  ;;  %3023 = vmatprep.mubr.msk.bf16.mxu0 %vm3146_vm0, %v3145_v5 }
 0x19a   : > { %v2845_v46 = vpop.f32.mrf.mxu0  ;;  %3105 = vmatprep.mubr.msk.bf16.mxu1 %vm3146_vm0, %v3145_v5  ;;  %v1790_v18 = vsel %vm1757_vm4, %v1787_v16, %v1789_v13  ;;  %v1792_v19 = vsel %vm1757_vm4, %v1789_v13, %v1791_v52 }
 0x19b   : > { %v2927_v59 = vpop.f32.mrf.mxu1 }
 0x19c   : > { %v1180_v47 = vpop.f32.mrf.mxu0 }
 0x19d   : > { %v4047_v34 = vadd.f32 %v1405_v48, %v1180_v47  ;;  %v1413_v32 = vpop.f32.mrf.mxu1 }
 0x19e   : > { %v2846_v36 = vpop.f32.mrf.mxu0 }
 0x19f   : > { %v2928_v42 = vpop.f32.mrf.mxu1  ;;  %v1502_v36 = vshrl.u32 %v3780_v63, 16 }
 0x1a0   : > { %v1185_v26 = vpop.f32.mrf.mxu0  ;;  %3024 = vmatmul.mubr.msk.bf16.gmra.mxu0 %vm1017_vm2, %v3859_v6 }
 0x1a1   : > { %v4052_v50 = vadd.f32 %v1410_v22, %v1185_v26  ;;  %v1418_v56 = vpop.f32.mrf.mxu1  ;;  %3106 = vmatmul.mubr.msk.bf16.gmra.mxu1 %vm1017_vm2, %v1790_v18  ;;  %3027 = vmatprep.mubr.msk.bf16.mxu0 %vm3146_vm0, %v3145_v5 }
 0x1a2   : > { %v2849_v15 = vpop.f32.mrf.mxu0  ;;  %3109 = vmatprep.mubr.msk.bf16.mxu1 %vm3146_vm0, %v3145_v5 }
 0x1a3   : > { %v2931_v3 = vpop.f32.mrf.mxu1 }
 0x1a4   : > { %v1188_v11 = vpop.f32.mrf.mxu0 }
 0x1a5   : > { %v4059_v38 = vadd.f32 %v1413_v32, %v1188_v11  ;;  %v1421_v24 = vpop.f32.mrf.mxu1 }
 0x1a6   : > { %v2850_v6 = vpop.f32.mrf.mxu0 }
 0x1a7   : > { %v2932_v55 = vpop.f32.mrf.mxu1 }
 0x1a8   : > { %v1193_v33 = vpop.f32.mrf.mxu0  ;;  %3028 = vmatmul.mubr.msk.bf16.gmra.mxu0 %vm1017_vm2, %v3873_v35 }
 0x1a9   : > { %v4066_v44 = vadd.f32 %v1418_v56, %v1193_v33  ;;  %v1426_v20 = vpop.f32.mrf.mxu1  ;;  %3110 = vmatmul.mubr.msk.bf16.gmra.mxu1 %vm1017_vm2, %v1792_v19  ;;  %3031 = vmatprep.mubr.msk.bf16.mxu0 %vm3146_vm0, %v3145_v5 }
 0x1aa   : > { %v2853_v60 = vpop.f32.mrf.mxu0  ;;  %3113 = vmatprep.mubr.msk.bf16.mxu1 %vm3146_vm0, %v3145_v5 }
 0x1ab   : > { %v2935_v2 = vpop.f32.mrf.mxu1 }
 0x1ac   : > { %v1196_v10 = vpop.f32.mrf.mxu0 }
 0x1ad   : > { %v4073_v43 = vadd.f32 %v1421_v24, %v1196_v10  ;;  %v1429_v35 = vpop.f32.mrf.mxu1 }
 0x1ae   : > { %v2854_v41 = vpop.f32.mrf.mxu0 }
 0x1af   : > { %v2936_v27 = vpop.f32.mrf.mxu1 }
 0x1b0   : > { %v1201_v52 = vpop.f32.mrf.mxu0  ;;  %3032 = vmatmul.mubr.msk.bf16.gmra.mxu0 %vm1017_vm2, %v3789_v12 }
 0x1b1   : > { %v4077_v62 = vadd.f32 %v1426_v20, %v1201_v52  ;;  %v1434_v30 = vpop.f32.mrf.mxu1  ;;  %3114 = vmatmul.mubr.msk.bf16.gmra.mxu1 %vm1017_vm2, %v3802_v31  ;;  %3035 = vmatprep.mubr.msk.bf16.mxu0 %vm3146_vm0, %v3145_v5 }
 0x1b2   : > { %v2857_v40 = vpop.f32.mrf.mxu0  ;;  %3117 = vmatprep.mubr.msk.bf16.mxu1 %vm3146_vm0, %v3145_v5 }
 0x1b3   : > { %v2939_v16 = vpop.f32.mrf.mxu1 }
 0x1b4   : > { %v1204_v48 = vpop.f32.mrf.mxu0 }
 0x1b5   : > { %v4085_v39 = vadd.f32 %v1429_v35, %v1204_v48  ;;  %v1437_v49 = vpop.f32.mrf.mxu1 }
 0x1b6   : > { %v2858_v29 = vpop.f32.mrf.mxu0 }
 0x1b7   : > { %v2940_v12 = vpop.f32.mrf.mxu1 }
 0x1b8   : > { %v1209_v7 = vpop.f32.mrf.mxu0  ;;  %3036 = vmatmul.mubr.msk.bf16.gmra.mxu0 %vm1017_vm2, %v3805_v58 }
 0x1b9   : > { %v4089_v22 = vadd.f32 %v1434_v30, %v1209_v7  ;;  %v1442_v31 = vpop.f32.mrf.mxu1  ;;  %3118 = vmatmul.mubr.msk.bf16.gmra.mxu1 %vm1017_vm2, %v1793_v9  ;;  %3039 = vmatprep.mubr.msk.bf16.mxu0 %vm3146_vm0, %v3145_v5 }
 0x1ba   : > { %v2861_v46 = vpop.f32.mrf.mxu0 }
 0x1bb   : > { %v2943_v59 = vpop.f32.mrf.mxu1 }
 0x1bc   : > { %v1212_v47 = vpop.f32.mrf.mxu0 }
 0x1bd   : > { %v4096_v13 = vadd.f32 %v1437_v49, %v1212_v47  ;;  %v1445_v32 = vpop.f32.mrf.mxu1 }
 0x1be   : > { %v2862_v42 = vpop.f32.mrf.mxu0 }
 0x1bf   : > { %v2944_v58 = vpop.f32.mrf.mxu1 }
 0x1c0   : > { %v1217_v26 = vpop.f32.mrf.mxu0  ;;  %3040 = vmatmul.mubr.msk.bf16.gmra.mxu0 %vm1017_vm2, %v1502_v36 }
 0x1c1   : > { %v4100_v18 = vadd.f32 %v1442_v31, %v1217_v26  ;;  %v1450_v56 = vpop.f32.mrf.mxu1 }
 0x1c2   : > { %v2865_v9 = vpop.f32.mrf.mxu0 }
 0x1c3   : > { %v2947_v15 = vpop.f32.mrf.mxu1 }
 0x1c4   : > { %v1220_v3 = vpop.f32.mrf.mxu0 }
 0x1c5   : > { %v4102_v5 = vadd.f32 %v1445_v32, %v1220_v3  ;;  %v1453_v11 = vpop.f32.mrf.mxu1 }
 0x1c6   : > { %v2866_v24 = vpop.f32.mrf.mxu0 }
 0x1c7   : > { %v2948_v6 = vpop.f32.mrf.mxu1 }
 0x1c8   : > { %v1225_v55 = vpop.f32.mrf.mxu0 }
 0x1c9   : > { %v4104_v33 = vadd.f32 %v1450_v56, %v1225_v55  ;;  %v1458_v63 = vpop.f32.mrf.mxu1 }
 0x1ca   : > { %v2869_v19 = vpop.f32.mrf.mxu0 }
 0x1cb   : > { %v2951_v20 = vpop.f32.mrf.mxu1 }
 0x1cc   : > { %v1228_v60 = vpop.f32.mrf.mxu0 }
 0x1cd   : > { %v4106_v2 = vadd.f32 %v1453_v11, %v1228_v60  ;;  %v1461_v10 = vpop.f32.mrf.mxu1 }
 0x1ce   : > { %v2870_v35 = vpop.f32.mrf.mxu0 }
 0x1cf   : > { %v2952_v41 = vpop.f32.mrf.mxu1 }
 0x1d0   : > { %v1233_v27 = vpop.f32.mrf.mxu0 }
 0x1d1   : > { %v4108_v52 = vadd.f32 %v1458_v63, %v1233_v27  ;;  %v1466_v30 = vpop.f32.mrf.mxu1 }
 0x1d2   : > { %v2873_v40 = vpop.f32.mrf.mxu0 }
 0x1d3   : > { %v2955_v16 = vpop.f32.mrf.mxu1 }
 0x1d4   : > { %v1236_v48 = vpop.f32.mrf.mxu0 }
 0x1d5   : > { %v4110_v49 = vadd.f32 %v1461_v10, %v1236_v48  ;;  %v1469_v29 = vpop.f32.mrf.mxu1 }
 0x1d6   : > { %v2874_v12 = vpop.f32.mrf.mxu0 }
 0x1d7   : > { %v2956_v7 = vpop.f32.mrf.mxu1 }
 0x1d8   : > { %v1241_v31 = vpop.f32.mrf.mxu0 }
 0x1d9   : > { %v4112_v46 = vadd.f32 %v1466_v30, %v1241_v31  ;;  %v1474_v59 = vpop.f32.mrf.mxu1 }
 0x1da   : > { %v2877_v47 = vpop.f32.mrf.mxu0 }
 0x1db   : > { %v2959_v32 = vpop.f32.mrf.mxu1 }
 0x1dc   : > { %v1244_v36 = vpop.f32.mrf.mxu0 }
 0x1dd   : > { %v4114_v42 = vadd.f32 %v1469_v29, %v1244_v36  ;;  %v1477_v58 = vpop.f32.mrf.mxu1 }
 0x1de   : > { %v2878_v26 = vpop.f32.mrf.mxu0 }
 0x1df   : > { %v2960_v56 = vpop.f32.mrf.mxu1  ;;  %v4127_v26 = vld [vmem:[%s4239_s9] ss:$0 sm:$0xff] }
 0x1e0   : > { %v1249_v9 = vpop.f32.mrf.mxu0 }
 0x1e1   : > { %v4116_v15 = vadd.f32 %v1474_v59, %v1249_v9  ;;  %v1482_v3 = vpop.f32.mrf.mxu1 }
 0x1e2   : > { %v2881_v11 = vpop.f32.mrf.mxu0 }
 0x1e3   : > { %v2963_v24 = vpop.f32.mrf.mxu1 }
 0x1e4   : > { %v1252_v6 = vpop.f32.mrf.mxu0 }
 0x1e5   : > { %v4118_v55 = vadd.f32 %v1477_v58, %v1252_v6  ;;  %v1485_v63 = vpop.f32.mrf.mxu1 }
 0x1e6   : > { %v2882_v19 = vpop.f32.mrf.mxu0 }
 0x1e7   : > { %v2964_v20 = vpop.f32.mrf.mxu1 }
 0x1e8   : > { %v1257_v60 = vpop.f32.mrf.mxu0 }
 0x1e9   : > { %v4120_v10 = vadd.f32 %v1482_v3, %v1257_v60  ;;  %v1889_v35 = vpop.f32.mrf.mxu1 }
 0x1ea   : > { %v2885_v41 = vpop.f32.mrf.mxu0 }
 0x1eb   : > { %v3047_v27 = vpop.f32.mrf.mxu1 }
 0x1ec   : > { %v1260_v30 = vpop.f32.mrf.mxu0 }
 0x1ed   : > { %v1892_v40 = vpop.f32.mrf.mxu1 }
 0x1ee   : > { %v2886_v16 = vpop.f32.mrf.mxu0 }
 0x1ef   : > { %v3048_v48 = vpop.f32.mrf.mxu1 }
 0x1f0   : > { %v1550_v29 = vpop.f32.mrf.mxu0 }
 0x1f1   : > { %v1700_v12 = vadd.f32 %v1550_v29, %v3939_v61  ;;  %v1897_v7 = vpop.f32.mrf.mxu1 }
 0x1f2   : > { %v2969_v31 = vpop.f32.mrf.mxu0 }
 0x1f3   : > { %v3051_v59 = vpop.f32.mrf.mxu1  ;;  %v2039_v32 = vadd.f32 %v1889_v35, %v1700_v12 }
 0x1f4   : > { %v1553_v47 = vpop.f32.mrf.mxu0 }
 0x1f5   : > { %v1701_v36 = vadd.f32 %v1553_v47, %v3947_v14  ;;  %v1900_v58 = vpop.f32.mrf.mxu1  ;;  %v2083_v61 = vadd.f32 %v4127_v26, %v2039_v32 }
 0x1f6   : > { %v2970_v56 = vpop.f32.mrf.mxu0 }
 0x1f7   : > { %v2040_v9 = vadd.f32 %v1892_v40, %v1701_v36  ;;  %v3052_v3 = vpop.f32.mrf.mxu1 }
 0x1f8   : > { %v1558_v11 = vpop.f32.mrf.mxu0 }
 0x1f9   : > { %v2084_v24 = vadd.f32 %v4127_v26, %v2040_v9  ;;  %v1702_v6 = vadd.f32 %v1558_v11, %v3951_v4  ;;  %v1905_v63 = vpop.f32.mrf.mxu1 }
 0x1fa   : > { %v2973_v14 = vpop.f32.mrf.mxu0 }
 0x1fb   : > { %v2607_v19 = vpack.c.bf16 %v2084_v24, %v2083_v61  ;;  %v3055_v20 = vpop.f32.mrf.mxu1  ;;  %v2041_v35 = vadd.f32 %v1897_v7, %v1702_v6 }
 0x1fc   : > { %v1561_v60 = vpop.f32.mrf.mxu0 }
 0x1fd   : > { %2608 = vst [vmem:[%s4136_s20] sm:$0xff] %v2607_v19   ;;  %v1703_v41 = vadd.f32 %v1561_v60, %v3959_v51  ;;  %v1908_v27 = vpop.f32.mrf.mxu1  ;;  %v2085_v48 = vadd.f32 %v4127_v26, %v2041_v35 }
 0x1fe   : > { %v2974_v30 = vpop.f32.mrf.mxu0 }
 0x1ff   : > { %v2042_v40 = vadd.f32 %v1900_v58, %v1703_v41  ;;  %v3056_v4 = vpop.f32.mrf.mxu1 }
 0x200   : > { %v1566_v16 = vpop.f32.mrf.mxu0 }
 0x201   : > { %v2086_v29 = vadd.f32 %v4127_v26, %v2042_v40  ;;  %v1704_v12 = vadd.f32 %v1566_v16, %v3963_v53  ;;  %v1913_v31 = vpop.f32.mrf.mxu1 }
 0x202   : > { %v2977_v59 = vpop.f32.mrf.mxu0 }
 0x203   : > { %v2612_v47 = vpack.c.bf16 %v2086_v29, %v2085_v48  ;;  %v3059_v32 = vpop.f32.mrf.mxu1  ;;  %v2043_v7 = vadd.f32 %v1905_v63, %v1704_v12 }
 0x204   : > { %v1569_v36 = vpop.f32.mrf.mxu0 }
 0x205   : > { %2712 = vst [vmem:[%s4136_s20 + $0x8] sm:$0xff] %v2612_v47   ;;  %v1705_v51 = vadd.f32 %v1569_v36, %v3971_v25  ;;  %v1916_v56 = vpop.f32.mrf.mxu1  ;;  %v2087_v61 = vadd.f32 %v4127_v26, %v2043_v7 }
 0x206   : > { %v2978_v58 = vpop.f32.mrf.mxu0 }
 0x207   : > { %v2044_v9 = vadd.f32 %v1908_v27, %v1705_v51  ;;  %v3060_v3 = vpop.f32.mrf.mxu1 }
 0x208   : > { %v1574_v11 = vpop.f32.mrf.mxu0 }
 0x209   : > { %v2088_v24 = vadd.f32 %v4127_v26, %v2044_v9  ;;  %v1706_v53 = vadd.f32 %v1574_v11, %v3975_v21  ;;  %v1921_v6 = vpop.f32.mrf.mxu1 }
 0x20a   : > { %v2981_v14 = vpop.f32.mrf.mxu0 }
 0x20b   : > { %v2617_v19 = vpack.c.bf16 %v2088_v24, %v2087_v61  ;;  %v3063_v20 = vpop.f32.mrf.mxu1  ;;  %v2045_v63 = vadd.f32 %v1913_v31, %v1706_v53 }
 0x20c   : > { %v1577_v60 = vpop.f32.mrf.mxu0 }
 0x20d   : > { %2713 = vst [vmem:[%s4136_s20 + $0x10] sm:$0xff] %v2617_v19   ;;  %v1707_v25 = vadd.f32 %v1577_v60, %v3983_v8  ;;  %v1924_v35 = vpop.f32.mrf.mxu1  ;;  %v2089_v4 = vadd.f32 %v4127_v26, %v2045_v63 }
 0x20e   : > { %v2982_v41 = vpop.f32.mrf.mxu0 }
 0x20f   : > { %v2046_v27 = vadd.f32 %v1916_v56, %v1707_v25  ;;  %v3064_v30 = vpop.f32.mrf.mxu1 }
 0x210   : > { %v1582_v40 = vpop.f32.mrf.mxu0 }
 0x211   : > { %v2090_v16 = vadd.f32 %v4127_v26, %v2046_v27  ;;  %v1708_v21 = vadd.f32 %v1582_v40, %v3987_v1  ;;  %v1929_v48 = vpop.f32.mrf.mxu1 }
 0x212   : > { %v2985_v29 = vpop.f32.mrf.mxu0 }
 0x213   : > { %v2622_v12 = vpack.c.bf16 %v2090_v16, %v2089_v4  ;;  %v3067_v59 = vpop.f32.mrf.mxu1  ;;  %v2047_v31 = vadd.f32 %v1921_v6, %v1708_v21 }
 0x214   : > { %v1585_v47 = vpop.f32.mrf.mxu0 }
 0x215   : > { %2714 = vst [vmem:[%s4136_s20 + $0x18] sm:$0xff] %v2622_v12   ;;  %v1709_v8 = vadd.f32 %v1585_v47, %v3995_v23  ;;  %v1932_v32 = vpop.f32.mrf.mxu1  ;;  %v2091_v58 = vadd.f32 %v4127_v26, %v2047_v31 }
 0x216   : > { %v2986_v36 = vpop.f32.mrf.mxu0 }
 0x217   : > { %v2048_v7 = vadd.f32 %v1924_v35, %v1709_v8  ;;  %v3068_v51 = vpop.f32.mrf.mxu1 }
 0x218   : > { %v1590_v56 = vpop.f32.mrf.mxu0 }
 0x219   : > { %v2092_v9 = vadd.f32 %v4127_v26, %v2048_v7  ;;  %v1710_v1 = vadd.f32 %v1590_v56, %v3999_v45  ;;  %v1937_v3 = vpop.f32.mrf.mxu1 }
 0x21a   : > { %v2989_v11 = vpop.f32.mrf.mxu0 }
 0x21b   : > { %v2627_v61 = vpack.c.bf16 %v2092_v9, %v2091_v58  ;;  %v3071_v24 = vpop.f32.mrf.mxu1  ;;  %v2049_v6 = vadd.f32 %v1929_v48, %v1710_v1 }
 0x21c   : > { %v1593_v53 = vpop.f32.mrf.mxu0 }
 0x21d   : > { %2715 = vst [vmem:[%s4136_s20 + $0x20] sm:$0xff] %v2627_v61   ;;  %v1711_v23 = vadd.f32 %v1593_v53, %v4007_v57  ;;  %v1940_v14 = vpop.f32.mrf.mxu1  ;;  %v2093_v25 = vadd.f32 %v4127_v26, %v2049_v6 }
 0x21e   : > { %v2990_v19 = vpop.f32.mrf.mxu0 }
 0x21f   : > { %v2050_v20 = vadd.f32 %v1932_v32, %v1711_v23  ;;  %v3072_v60 = vpop.f32.mrf.mxu1 }
 0x220   : > { %v1598_v63 = vpop.f32.mrf.mxu0 }
 0x221   : > { %v2094_v35 = vadd.f32 %v4127_v26, %v2050_v20  ;;  %v1712_v45 = vadd.f32 %v1598_v63, %v4011_v0  ;;  %v1945_v41 = vpop.f32.mrf.mxu1 }
 0x222   : > { %v2993_v27 = vpop.f32.mrf.mxu0 }
 0x223   : > { %v2632_v30 = vpack.c.bf16 %v2094_v35, %v2093_v25  ;;  %v3075_v40 = vpop.f32.mrf.mxu1  ;;  %v2051_v16 = vadd.f32 %v1937_v3, %v1712_v45 }
 0x224   : > { %v1601_v4 = vpop.f32.mrf.mxu0 }
 0x225   : > { %2716 = vst [vmem:[%s4136_s20 + $0x28] sm:$0xff] %v2632_v30   ;;  %v1713_v57 = vadd.f32 %v1601_v4, %v4019_v54  ;;  %v1948_v21 = vpop.f32.mrf.mxu1  ;;  %v2095_v47 = vadd.f32 %v4127_v26, %v2051_v16 }
 0x226   : > { %v2994_v48 = vpop.f32.mrf.mxu0 }
 0x227   : > { %v2052_v29 = vadd.f32 %v1940_v14, %v1713_v57  ;;  %v3076_v12 = vpop.f32.mrf.mxu1 }
 0x228   : > { %v1606_v59 = vpop.f32.mrf.mxu0 }
 0x229   : > { %v2096_v31 = vadd.f32 %v4127_v26, %v2052_v29  ;;  %v1714_v0 = vadd.f32 %v1606_v59, %v4023_v28  ;;  %v1953_v8 = vpop.f32.mrf.mxu1 }
 0x22a   : > { %v2997_v32 = vpop.f32.mrf.mxu0 }
 0x22b   : > { %v2637_v36 = vpack.c.bf16 %v2096_v31, %v2095_v47  ;;  %v3079_v7 = vpop.f32.mrf.mxu1  ;;  %v2053_v56 = vadd.f32 %v1945_v41, %v1714_v0 }
 0x22c   : > { %v1609_v51 = vpop.f32.mrf.mxu0 }
 0x22d   : > { %2717 = vst [vmem:[%s4136_s20 + $0x30] sm:$0xff] %v2637_v36   ;;  %v1715_v54 = vadd.f32 %v1609_v51, %v4032_v17  ;;  %v1956_v58 = vpop.f32.mrf.mxu1  ;;  %v2097_v61 = vadd.f32 %v4127_v26, %v2053_v56 }
 0x22e   : > { %v2998_v9 = vpop.f32.mrf.mxu0 }
 0x22f   : > { %v2054_v1 = vadd.f32 %v1948_v21, %v1715_v54  ;;  %v3080_v3 = vpop.f32.mrf.mxu1 }
 0x230   : > { %v1614_v11 = vpop.f32.mrf.mxu0 }
 0x231   : > { %v2098_v24 = vadd.f32 %v4127_v26, %v2054_v1  ;;  %v1716_v28 = vadd.f32 %v1614_v11, %v4039_v37  ;;  %v1961_v53 = vpop.f32.mrf.mxu1 }
 0x232   : > { %v3001_v6 = vpop.f32.mrf.mxu0 }
 0x233   : > { %v2642_v23 = vpack.c.bf16 %v2098_v24, %v2097_v61  ;;  %v3083_v14 = vpop.f32.mrf.mxu1  ;;  %v2055_v20 = vadd.f32 %v1953_v8, %v1716_v28 }
 0x234   : > { %v1617_v19 = vpop.f32.mrf.mxu0 }
 0x235   : > { %2718 = vst [vmem:[%s4136_s20 + $0x38] sm:$0xff] %v2642_v23   ;;  %v1717_v17 = vadd.f32 %v1617_v19, %v4047_v34  ;;  %v1964_v60 = vpop.f32.mrf.mxu1  ;;  %v2099_v41 = vadd.f32 %v4127_v26, %v2055_v20 }
 0x236   : > { %v3002_v63 = vpop.f32.mrf.mxu0 }
 0x237   : > { %v2056_v25 = vadd.f32 %v1956_v58, %v1717_v17  ;;  %v3084_v35 = vpop.f32.mrf.mxu1 }
 0x238   : > { %v1622_v45 = vpop.f32.mrf.mxu0 }
 0x239   : > { %v2100_v27 = vadd.f32 %v4127_v26, %v2056_v25  ;;  %v1718_v37 = vadd.f32 %v1622_v45, %v4052_v50  ;;  %v1969_v30 = vpop.f32.mrf.mxu1 }
 0x23a   : > { %v3005_v40 = vpop.f32.mrf.mxu0 }
 0x23b   : > { %v2647_v4 = vpack.c.bf16 %v2100_v27, %v2099_v41  ;;  %v3087_v16 = vpop.f32.mrf.mxu1  ;;  %v2057_v21 = vadd.f32 %v1961_v53, %v1718_v37 }
 0x23c   : > { %v1625_v57 = vpop.f32.mrf.mxu0 }
 0x23d   : > { %2719 = vst [vmem:[%s4136_s20 + $0x40] sm:$0xff] %v2647_v4   ;;  %v1719_v34 = vadd.f32 %v1625_v57, %v4059_v38  ;;  %v1972_v48 = vpop.f32.mrf.mxu1  ;;  %v2101_v31 = vadd.f32 %v4127_v26, %v2057_v21 }
 0x23e   : > { %v3006_v29 = vpop.f32.mrf.mxu0 }
 0x23f   : > { %v2058_v12 = vadd.f32 %v1964_v60, %v1719_v34  ;;  %v3088_v59 = vpop.f32.mrf.mxu1 }
 0x240   : > { %v1630_v47 = vpop.f32.mrf.mxu0 }
 0x241   : > { %v2102_v0 = vadd.f32 %v4127_v26, %v2058_v12  ;;  %v1720_v50 = vadd.f32 %v1630_v47, %v4066_v44  ;;  %v1977_v8 = vpop.f32.mrf.mxu1 }
 0x242   : > { %v3009_v32 = vpop.f32.mrf.mxu0 }
 0x243   : > { %v2652_v36 = vpack.c.bf16 %v2102_v0, %v2101_v31  ;;  %v3091_v7 = vpop.f32.mrf.mxu1  ;;  %v2059_v56 = vadd.f32 %v1969_v30, %v1720_v50 }
 0x244   : > { %v1633_v51 = vpop.f32.mrf.mxu0 }
 0x245   : > { %2720 = vst [vmem:[%s4136_s20 + $0x48] sm:$0xff] %v2652_v36   ;;  %v1721_v38 = vadd.f32 %v1633_v51, %v4073_v43  ;;  %v1980_v54 = vpop.f32.mrf.mxu1  ;;  %v2103_v11 = vadd.f32 %v4127_v26, %v2059_v56 }
 0x246   : > { %v3010_v58 = vpop.f32.mrf.mxu0 }
 0x247   : > { %v2060_v9 = vadd.f32 %v1972_v48, %v1721_v38  ;;  %v3092_v1 = vpop.f32.mrf.mxu1 }
 0x248   : > { %v1638_v3 = vpop.f32.mrf.mxu0 }
 0x249   : > { %v2104_v61 = vadd.f32 %v4127_v26, %v2060_v9  ;;  %v1722_v44 = vadd.f32 %v1638_v3, %v4077_v62  ;;  %v1985_v24 = vpop.f32.mrf.mxu1 }
 0x24a   : > { %v3013_v28 = vpop.f32.mrf.mxu0 }
 0x24b   : > { %v2657_v53 = vpack.c.bf16 %v2104_v61, %v2103_v11  ;;  %v3095_v6 = vpop.f32.mrf.mxu1  ;;  %v2061_v14 = vadd.f32 %v1977_v8, %v1722_v44 }
 0x24c   : > { %v1641_v23 = vpop.f32.mrf.mxu0 }
 0x24d   : > { %2721 = vst [vmem:[%s4136_s20 + $0x50] sm:$0xff] %v2657_v53   ;;  %v1723_v43 = vadd.f32 %v1641_v23, %v4085_v39  ;;  %v1988_v19 = vpop.f32.mrf.mxu1  ;;  %v2105_v25 = vadd.f32 %v4127_v26, %v2061_v14 }
 0x24e   : > { %v3014_v20 = vpop.f32.mrf.mxu0 }
 0x24f   : > { %v2062_v17 = vadd.f32 %v1980_v54, %v1723_v43  ;;  %v3096_v60 = vpop.f32.mrf.mxu1 }
 0x250   : > { %v1646_v63 = vpop.f32.mrf.mxu0 }
 0x251   : > { %v2106_v35 = vadd.f32 %v4127_v26, %v2062_v17  ;;  %v1724_v62 = vadd.f32 %v1646_v63, %v4089_v22  ;;  %v1993_v45 = vpop.f32.mrf.mxu1 }
 0x252   : > { %v3017_v41 = vpop.f32.mrf.mxu0 }
 0x253   : > { %v2662_v27 = vpack.c.bf16 %v2106_v35, %v2105_v25  ;;  %v3099_v37 = vpop.f32.mrf.mxu1  ;;  %v2063_v40 = vadd.f32 %v1985_v24, %v1724_v62 }
 0x254   : > { %v1649_v30 = vpop.f32.mrf.mxu0 }
 0x255   : > { %2722 = vst [vmem:[%s4136_s20 + $0x58] sm:$0xff] %v2662_v27   ;;  %v1725_v39 = vadd.f32 %v1649_v30, %v4096_v13  ;;  %v1996_v4 = vpop.f32.mrf.mxu1  ;;  %v2107_v48 = vadd.f32 %v4127_v26, %v2063_v40 }
 0x256   : > { %v3018_v16 = vpop.f32.mrf.mxu0 }
 0x257   : > { %v2064_v57 = vadd.f32 %v1988_v19, %v1725_v39  ;;  %v3100_v21 = vpop.f32.mrf.mxu1 }
 0x258   : > { %v1654_v34 = vpop.f32.mrf.mxu0 }
 0x259   : > { %v2108_v29 = vadd.f32 %v4127_v26, %v2064_v57  ;;  %v1726_v22 = vadd.f32 %v1654_v34, %v4100_v18  ;;  %v2001_v12 = vpop.f32.mrf.mxu1 }
 0x25a   : > { %v3021_v59 = vpop.f32.mrf.mxu0 }
 0x25b   : > { %v2667_v47 = vpack.c.bf16 %v2108_v29, %v2107_v48  ;;  %v3103_v31 = vpop.f32.mrf.mxu1  ;;  %v2065_v50 = vadd.f32 %v1993_v45, %v1726_v22 }
 0x25c   : > { %v1657_v0 = vpop.f32.mrf.mxu0 }
 0x25d   : > { %2723 = vst [vmem:[%s4136_s20 + $0x60] sm:$0xff] %v2667_v47   ;;  %v1727_v13 = vadd.f32 %v1657_v0, %v4102_v5  ;;  %v2004_v8 = vpop.f32.mrf.mxu1  ;;  %v2109_v56 = vadd.f32 %v4127_v26, %v2065_v50 }
 0x25e   : > { %v3022_v32 = vpop.f32.mrf.mxu0 }
 0x25f   : > { %v2066_v36 = vadd.f32 %v1996_v4, %v1727_v13  ;;  %v3104_v7 = vpop.f32.mrf.mxu1 }
 0x260   : > { %v1662_v51 = vpop.f32.mrf.mxu0 }
 0x261   : > { %v2110_v38 = vadd.f32 %v4127_v26, %v2066_v36  ;;  %v1728_v18 = vadd.f32 %v1662_v51, %v4104_v33  ;;  %v2009_v54 = vpop.f32.mrf.mxu1 }
 0x262   : > { %v3025_v58 = vpop.f32.mrf.mxu0 }
 0x263   : > { %v2672_v9 = vpack.c.bf16 %v2110_v38, %v2109_v56  ;;  %v3107_v1 = vpop.f32.mrf.mxu1  ;;  %v2067_v11 = vadd.f32 %v2001_v12, %v1728_v18 }
 0x264   : > { %v1665_v3 = vpop.f32.mrf.mxu0  ;;  %v2308_v1 = vld [vmem:[%s4136_s20 + $0x90] sm:$0x1] }
 0x265   : > { %2724 = vst [vmem:[%s4136_s20 + $0x68] sm:$0xff] %v2672_v9   ;;  %v1729_v5 = vadd.f32 %v1665_v3, %v4106_v2  ;;  %v2012_v61 = vpop.f32.mrf.mxu1  ;;  %v2111_v6 = vadd.f32 %v4127_v26, %v2067_v11 }
 0x266   : > { %v3026_v44 = vpop.f32.mrf.mxu0 }
 0x267   : > { %v2068_v24 = vadd.f32 %v2004_v8, %v1729_v5  ;;  %v3108_v28 = vpop.f32.mrf.mxu1 }
 0x268   : > { %v1670_v53 = vpop.f32.mrf.mxu0 }
 0x269   : > { %v2112_v23 = vadd.f32 %v4127_v26, %v2068_v24  ;;  %v1730_v33 = vadd.f32 %v1670_v53, %v4108_v52  ;;  %v2017_v14 = vpop.f32.mrf.mxu1 }
 0x26a   : > { %v3029_v43 = vpop.f32.mrf.mxu0 }
 0x26b   : > { %v2677_v19 = vpack.c.bf16 %v2112_v23, %v2111_v6  ;;  %v3111_v20 = vpop.f32.mrf.mxu1  ;;  %v2069_v60 = vadd.f32 %v2009_v54, %v1730_v33 }
 0x26c   : > { %v1673_v17 = vpop.f32.mrf.mxu0 }
 0x26d   : > { %2725 = vst [vmem:[%s4136_s20 + $0x70] sm:$0xff] %v2677_v19   ;;  %v1731_v2 = vadd.f32 %v1673_v17, %v4110_v49  ;;  %v2020_v63 = vpop.f32.mrf.mxu1  ;;  %v2113_v41 = vadd.f32 %v4127_v26, %v2069_v60 }
 0x26e   : > { %v3030_v25 = vpop.f32.mrf.mxu0 }
 0x26f   : > { %v2070_v35 = vadd.f32 %v2012_v61, %v1731_v2  ;;  %v3112_v62 = vpop.f32.mrf.mxu1 }
 0x270   : > { %v1678_v45 = vpop.f32.mrf.mxu0 }
 0x271   : > { %v2114_v27 = vadd.f32 %v4127_v26, %v2070_v35  ;;  %v1732_v52 = vadd.f32 %v1678_v45, %v4112_v46  ;;  %v2025_v37 = vpop.f32.mrf.mxu1 }
 0x272   : > { %v3033_v30 = vpop.f32.mrf.mxu0 }
 0x273   : > { %v2682_v40 = vpack.c.bf16 %v2114_v27, %v2113_v41  ;;  %v3115_v39 = vpop.f32.mrf.mxu1  ;;  %v2071_v16 = vadd.f32 %v2017_v14, %v1732_v52 }
 0x274   : > { %v1681_v4 = vpop.f32.mrf.mxu0 }
 0x275   : > { %2726 = vst [vmem:[%s4136_s20 + $0x78] sm:$0xff] %v2682_v40   ;;  %v1733_v49 = vadd.f32 %v1681_v4, %v4114_v42  ;;  %v2028_v57 = vpop.f32.mrf.mxu1  ;;  %v2115_v22 = vadd.f32 %v4127_v26, %v2071_v16 }
 0x276   : > { %v3034_v21 = vpop.f32.mrf.mxu0 }
 0x277   : > { %v2072_v34 = vadd.f32 %v2020_v63, %v1733_v49  ;;  %v3116_v48 = vpop.f32.mrf.mxu1 }
 0x278   : > { %v1686_v29 = vpop.f32.mrf.mxu0 }
 0x279   : > { %v2116_v12 = vadd.f32 %v4127_v26, %v2072_v34  ;;  %v1734_v46 = vadd.f32 %v1686_v29, %v4116_v15  ;;  %v2033_v59 = vpop.f32.mrf.mxu1 }
 0x27a   : > { %v3037_v47 = vpop.f32.mrf.mxu0 }
 0x27b   : > { %v2687_v31 = vpack.c.bf16 %v2116_v12, %v2115_v22  ;;  %v3119_v0 = vpop.f32.mrf.mxu1  ;;  %v2073_v13 = vadd.f32 %v2025_v37, %v1734_v46 }
 0x27c   : > { %v1689_v50 = vpop.f32.mrf.mxu0 }
 0x27d   : > { %2727 = vst [vmem:[%s4136_s20 + $0x80] sm:$0xff] %v2687_v31   ;;  %v1735_v42 = vadd.f32 %v1689_v50, %v4118_v55  ;;  %v2036_v8 = vpop.f32.mrf.mxu1  ;;  %v2117_v56 = vadd.f32 %v4127_v26, %v2073_v13 }
 0x27e   : > { %v3038_v32 = vpop.f32.mrf.mxu0 }
 0x27f   : > { %v2074_v36 = vadd.f32 %v2028_v57, %v1735_v42  ;;  %v3120_v7 = vpop.f32.mrf.mxu1 }
 0x280   : > { %v1694_v51 = vpop.f32.mrf.mxu0 }
 0x281   : > { %v2118_v15 = vadd.f32 %v4127_v26, %v2074_v36  ;;  %v1736_v38 = vadd.f32 %v1694_v51, %v4120_v10 }
 0x282   : > { %v3041_v18 = vpop.f32.mrf.mxu0 }
 0x283   : > { %v2692_v54 = vpack.c.bf16 %v2118_v15, %v2117_v56  ;;  %v2075_v58 = vadd.f32 %v2033_v59, %v1736_v38 }
 0x284   : > { %v1697_v9 = vpop.f32.mrf.mxu0 }
 0x285   : > { %2728 = vst [vmem:[%s4136_s20 + $0x88] sm:$0xff] %v2692_v54   ;;  %v2119_v55 = vadd.f32 %v4127_v26, %v2075_v58 }
 0x286   : > { %v3042_v3 = vpop.f32.mrf.mxu0 }
 0x287   : > { %v2527_v11 = vpack.c.bf16 %v2119_v55, %v2119_v55 }
 0x289   : > { %v2309_v5 = vsel %vm2307_vm7, %v2527_v11, %v2308_v1 }
 0x28a   : > { %2310 = vst [vmem:[%s4136_s20 + $0x90] sm:$0x1] %v2309_v5 }
 0x28b PF: > { %s20_s12 = sadd.s32 1, %s3142_s12  }
 0x28c   : > { %p17_p4 = scmp.ge.s32.totalorder %s20_s12, 4  }
 0x28e   :  { %19 = sbr.rel (!%p17_p4) target bundleno = 1 (0x1), region = 90 }

</bundles_post_ra>
